<compile_context>
chip_gen: v6e
topology: v6e:2x2x1
jax: 0.10.0
libtpu: 0.0.40
codegen_flags: <defaults>
</compile_context>

<pallas_src>
import functools
import jax
import jax.numpy as jnp
from jax.experimental import pallas as pl
from jax.experimental.pallas import tpu as pltpu


def _round_up(v, m):
    return (v + m - 1) // m * m


def _pick_tile(m8):
    """Largest row tile <= 512 dividing m8, preferring >=2 tiles (v7x megacore)."""
    for cand in (512, 256, 128, 64, 32, 16, 8):
        if m8 % cand == 0 and m8 // cand >= 2:
            return cand
    return m8


def _pick_row_tile(n, h, w, budget_rows=512):
    """Row tile TH for the fused head: largest divisor of H with TH*W <= budget,
    backing off if needed so the total grid has >= 2 steps (v7x megacore)."""
    cands = [t for t in range(1, h + 1) if h % t == 0 and t * w <= budget_rows]
    if not cands:
        cands = [1]
    th = max(cands)
    if n * (h // th) < 2:
        smaller = [t for t in cands if t < th]
        if smaller:
            th = max(smaller)
    return th


# ---------------------------------------------------------------------------
# Pallas kernel 1: tiled GEMM (A[M,K] @ B[K,N]) + bias + activation
#   A/B blocks are bf16, accumulation + epilogue in f32 (v5e-safe).
#   out_dtype lets consumers receive bf16 activations (halves HBM traffic).
# ---------------------------------------------------------------------------
def _matmul_bias_act_kernel(a_ref, b_ref, bias_ref, o_ref, *, act):
    acc = jnp.dot(a_ref[...], b_ref[...], preferred_element_type=jnp.float32)
    acc = acc + bias_ref[...]                      # (1, N) broadcast over rows
    if act == "relu":
        acc = jnp.maximum(acc, 0.0)
    elif act == "sigmoid":
        acc = jax.nn.sigmoid(acc)
    o_ref[...] = acc.astype(o_ref.dtype)


def matmul_bias_act(a, b, bias, act="none", out_dtype=jnp.float32):
    """a: (M, K), b: (K, N), bias: (N,) -> (M, N) out_dtype via Pallas (bf16 MXU)."""
    M, K = a.shape
    _, N = b.shape
    m8 = _round_up(max(M, 8), 8)                   # pad rows only to a multiple of 8
    if m8 != M:
        a = jnp.pad(a, ((0, m8 - M), (0, 0)))
    tm = _pick_tile(m8)
    bias2d = bias.reshape(1, N).astype(jnp.float32)

    out = pl.pallas_call(
        functools.partial(_matmul_bias_act_kernel, act=act),
        out_shape=jax.ShapeDtypeStruct((m8, N), out_dtype),
        grid_spec=pltpu.PrefetchScalarGridSpec(
            num_scalar_prefetch=0,
            grid=(m8 // tm,),
            in_specs=[
                pl.BlockSpec((tm, K), lambda i: (i, 0)),   # A row-tile (bf16)
                pl.BlockSpec((K, N), lambda i: (0, 0)),    # full weights (bf16)
                pl.BlockSpec((1, N), lambda i: (0, 0)),    # bias row (f32)
            ],
            out_specs=pl.BlockSpec((tm, N), lambda i: (i, 0)),
        ),
        compiler_params=pltpu.CompilerParams(
            dimension_semantics=("parallel",),
            vmem_limit_bytes=32 * 1024 * 1024,
        ),
    )(a.astype(jnp.bfloat16), b.astype(jnp.bfloat16), bias2d)
    return out if m8 == M else out[:M]


# ---------------------------------------------------------------------------
# Pallas kernel 2: fused detection head (row-tiled, K-merged, lane-dense store).
#   grid = (batch, row_tile). The whole padded per-batch feature slab is resident
#   in VMEM; each step slices TH+2 halo rows, builds the (TH*W, 9*C) im2col window
#   in VMEM, runs ONE K=576 GEMM (hm_1|vec_1), bias+ReLU, then the packed 1x1 final
#   convs (hm_2/vec_2 as a block-diagonal (512,3) f32 matrix) + sigmoid on the hm
#   column, and stores a (TH, 3, W) lane-dense block. The (TH*W, 512) head_conv
#   intermediate never touches HBM.
# ---------------------------------------------------------------------------
def _head_kernel(slab_ref, w1_ref, b1_ref, w2_ref, b2_ref, o_ref, *, th, wout, cin):
    r0 = pl.multiple_of(pl.program_id(1) * th, th)
    rows = slab_ref[0, pl.ds(r0, th + 2), :, :]            # (TH+2, W+2, C) bf16

    # im2col window: taps ordered (dy, dx, cin) to match w1.reshape(9*C, 512)
    taps = []
    for dy in range(3):
        for dx in range(3):
            taps.append(rows[dy:dy + th, dx:dx + wout, :])  # (TH, W, C)
    a = jnp.concatenate(taps, axis=-1)                      # (TH, W, 9*C)
    a = a.reshape(th * wout, 9 * cin)                       # (TH*W, 576) bf16

    mid = jnp.dot(a, w1_ref[...], preferred_element_type=jnp.float32)
    mid = jnp.maximum(mid + b1_ref[...], 0.0)               # (TH*W, 512) f32 in VMEM

    out = jnp.dot(mid, w2_ref[...],
                  preferred_element_type=jnp.float32) + b2_ref[...]   # (TH*W, 3) f32
    col = jax.lax.broadcasted_iota(jnp.int32, out.shape, 1)
    out = jnp.where(col == 0, jax.nn.sigmoid(out), out)     # col 0 = hm, 1:3 = vec

    out = out.reshape(th, wout, 3)
    o_ref[0] = jnp.swapaxes(out, 1, 2).astype(o_ref.dtype)  # (TH, 3, W) lane-dense


def fused_head(feat_padded, w1, b1, w2, b2):
    """feat_padded: (N, H+2, W+2, 64) bf16 -> (N, H, 3, W) f32 ([hm, vec_x, vec_y])."""
    n, hp2, wp2, c = feat_padded.shape
    h, w = hp2 - 2, wp2 - 2
    nmid = w1.shape[-1]
    th = _pick_row_tile(n, h, w)
    w1m = w1.reshape(9 * c, nmid).astype(jnp.bfloat16)       # (576, 512)

    return pl.pallas_call(
        functools.partial(_head_kernel, th=th, wout=w, cin=c),
        out_shape=jax.ShapeDtypeStruct((n, h, 3, w), jnp.float32),
        grid_spec=pltpu.PrefetchScalarGridSpec(
            num_scalar_prefetch=0,
            grid=(n, h // th),
            in_specs=[
                pl.BlockSpec((1, hp2, wp2, c), lambda i, j: (i, 0, 0, 0)),  # slab
                pl.BlockSpec((9 * c, nmid), lambda i, j: (0, 0)),           # w1 merged
                pl.BlockSpec((1, nmid), lambda i, j: (0, 0)),               # b1
                pl.BlockSpec((nmid, 3), lambda i, j: (0, 0)),               # w2 pack f32
                pl.BlockSpec((1, 3), lambda i, j: (0, 0)),                  # b2 pack
            ],
            out_specs=pl.BlockSpec((1, th, 3, w), lambda i, j: (i, j, 0, 0)),
        ),
        compiler_params=pltpu.CompilerParams(
            dimension_semantics=("parallel", "parallel"),
            vmem_limit_bytes=32 * 1024 * 1024,
        ),
    )(feat_padded,
      w1m, b1.reshape(1, nmid).astype(jnp.float32),
      w2.astype(jnp.float32), b2.reshape(1, 3).astype(jnp.float32))


# ---------------------------------------------------------------------------
# Conv2d = im2col (bf16 glue) + Pallas fused GEMM (used for the small backbone convs)
# ---------------------------------------------------------------------------
def conv2d(x, w, b, stride=1, padding=1, act="none", out_dtype=jnp.float32):
    """x: (N, H, W, Cin); w: (kh, kw, Cin, Cout); b: (Cout,)."""
    n, h, wd, cin = x.shape
    kh, kw, _, cout = w.shape
    x = x.astype(jnp.bfloat16)
    xp = jnp.pad(x, ((0, 0), (padding, padding), (padding, padding), (0, 0)))
    hout = (h + 2 * padding - kh) // stride + 1
    wout = (wd + 2 * padding - kw) // stride + 1
    if kh == 1 and kw == 1 and stride == 1 and padding == 0:
        a = x.reshape(n * h * wd, cin)
    else:
        # TODO(synk): strided in-kernel tap gathers not expressible with plain
        #             BlockSpecs; stride-2 im2col stays in (bf16) XLA glue.
        patches = [xp[:, dy: dy + stride * hout: stride,
                      dx: dx + stride * wout: stride, :]
                   for dy in range(kh) for dx in range(kw)]
        a = jnp.concatenate(patches, axis=-1).reshape(n * hout * wout, kh * kw * cin)
    wm = w.reshape(kh * kw * cin, cout)            # (dy, dx, cin) flattening matches
    out = matmul_bias_act(a, wm, b, act=act, out_dtype=out_dtype)
    return out.reshape(n, hout, wout, cout)


def upsample_nearest(x, factor):
    x = jnp.repeat(x, factor, axis=1)
    return jnp.repeat(x, factor, axis=2)


# ---------------------------------------------------------------------------
# Parameters (deterministic synthetic init). final_kernel is a static int arg,
# NOT a pytree leaf.
# ---------------------------------------------------------------------------
def _conv_params(key, kh, kw, cin, cout, scale=0.05):
    kw_, kb_ = jax.random.split(key)
    w = jax.random.normal(kw_, (kh, kw, cin, cout), jnp.float32) * scale
    b = jax.random.normal(kb_, (cout,), jnp.float32) * scale
    return w, b


def init_params(key, final_kernel=1, channel=64, head_conv=256):
    keys = jax.random.split(key, 16)
    p = {}
    # backbone stem: /2 then /4 (branch0, 18 ch)
    p["stem1"] = _conv_params(keys[0], 3, 3, 3, 16)
    p["stem2"] = _conv_params(keys[1], 3, 3, 16, 18)
    # hrnet18-style extra scales: /8 (36), /16 (72), /32 (144)
    p["down1"] = _conv_params(keys[2], 3, 3, 18, 36)
    p["down2"] = _conv_params(keys[3], 3, 3, 36, 72)
    p["down3"] = _conv_params(keys[4], 3, 3, 72, 144)
    # Decodeing: 1x1 fuse of multi-scale (270 ch) -> channel=64
    p["fuse"] = _conv_params(keys[5], 1, 1, 18 + 36 + 72 + 144, channel)
    # heads: 'hm' (1ch, sigmoid) and 'vec_ind' (2ch)
    p["hm_1"] = _conv_params(keys[6], 3, 3, channel, head_conv)
    p["hm_2"] = _conv_params(keys[7], final_kernel, final_kernel, head_conv, 1)
    p["vec_1"] = _conv_params(keys[8], 3, 3, channel, head_conv)
    p["vec_2"] = _conv_params(keys[9], final_kernel, final_kernel, head_conv, 2)
    return p


# ---------------------------------------------------------------------------
# Forward pass (mirrors Vltenet.forward: backbone -> Decodeing -> feature dict)
# ---------------------------------------------------------------------------
def vltenet_forward(params, x_nchw, final_kernel=1):
    x = jnp.transpose(x_nchw, (0, 2, 3, 1)).astype(jnp.float32)   # -> NHWC

    # ---- backbone (multi-scale), bf16 intermediate activations ----
    bf16 = jnp.bfloat16
    f = conv2d(x, *params["stem1"], stride=2, padding=1, act="relu", out_dtype=bf16)
    f0 = conv2d(f, *params["stem2"], stride=2, padding=1, act="relu", out_dtype=bf16)
    f1 = conv2d(f0, *params["down1"], stride=2, padding=1, act="relu", out_dtype=bf16)
    f2 = conv2d(f1, *params["down2"], stride=2, padding=1, act="relu", out_dtype=bf16)
    f3 = conv2d(f2, *params["down3"], stride=2, padding=1, act="relu", out_dtype=bf16)

    # ---- Decodeing fuse: 1x1 conv commuted with nearest upsampling ----
    # concat([f0, up2(f1), up4(f2), up8(f3)]) @ W  ==  sum_i up(fi @ W_i)
    # partial sums stay bf16; upsample+add+ReLU+pad fuse into one XLA pass.
    wf, bf_ = params["fuse"]
    wf = wf.reshape(18 + 36 + 72 + 144, wf.shape[-1])
    w0, w1f, w2f, w3f = wf[0:18], wf[18:54], wf[54:126], wf[126:270]
    zero_b = jnp.zeros_like(bf_)

    def scale_branch(fi, w2d, bvec):
        n_, h_, wd_, cin_ = fi.shape
        out = matmul_bias_act(fi.reshape(n_ * h_ * wd_, cin_), w2d, bvec,
                              out_dtype=bf16)
        return out.reshape(n_, h_, wd_, -1)

    p0 = scale_branch(f0, w0, bf_)
    p1 = upsample_nearest(scale_branch(f1, w1f, zero_b), 2)
    p2 = upsample_nearest(scale_branch(f2, w2f, zero_b), 4)
    p3 = upsample_nearest(scale_branch(f3, w3f, zero_b), 8)
    feat = jnp.maximum(p0.astype(jnp.float32) + p1.astype(jnp.float32)
                       + p2.astype(jnp.float32) + p3.astype(jnp.float32), 0.0)

    # ---- heads ----
    w_hm1, b_hm1 = params["hm_1"]
    w_vec1, b_vec1 = params["vec_1"]
    w_hm2, b_hm2 = params["hm_2"]
    w_vec2, b_vec2 = params["vec_2"]

    if final_kernel == 1:
        # Fully fused head: one Pallas kernel does the 3x3 taps of hm_1|vec_1 as a
        # single K=576 GEMM per row-tile, bias+ReLU, both 1x1 final convs and the
        # sigmoid — no HBM intermediates, lane-dense (W-last) stores.
        hc = w_hm1.shape[-1]
        w1 = jnp.concatenate([w_hm1, w_vec1], axis=-1)               # (3,3,64,512)
        b1 = jnp.concatenate([b_hm1, b_vec1], axis=0)                # (512,)
        w2 = jnp.zeros((2 * hc, 3), jnp.float32)                     # block-diag pack
        w2 = w2.at[:hc, 0:1].set(w_hm2.reshape(hc, 1))
        w2 = w2.at[hc:, 1:3].set(w_vec2.reshape(hc, 2))
        b2 = jnp.concatenate([b_hm2, b_vec2], axis=0)                # (3,)

        feat_p = jnp.pad(feat.astype(bf16), ((0, 0), (1, 1), (1, 1), (0, 0)))
        head = fused_head(feat_p, w1, b1, w2, b2)                    # (N,H,3,W)
        hm = jnp.transpose(head[:, :, 0:1, :], (0, 2, 1, 3))         # (N,1,H,W)
        vec_ind = jnp.transpose(head[:, :, 1:3, :], (0, 2, 1, 3))    # (N,2,H,W)
    else:
        fk_pad = final_kernel // 2
        hm_mid = conv2d(feat, w_hm1, b_hm1, stride=1, padding=1, act="relu",
                        out_dtype=bf16)
        hm = conv2d(hm_mid, w_hm2, b_hm2, stride=1, padding=fk_pad, act="sigmoid")
        vec_mid = conv2d(feat, w_vec1, b_vec1, stride=1, padding=1, act="relu",
                         out_dtype=bf16)
        vec_ind = conv2d(vec_mid, w_vec2, b_vec2, stride=1, padding=fk_pad, act="none")
        hm = jnp.transpose(hm, (0, 3, 1, 2))
        vec_ind = jnp.transpose(vec_ind, (0, 3, 1, 2))

    # NCHW to match the PyTorch module's output convention
    return {"hm": hm, "vec_ind": vec_ind}


# ---------------------------------------------------------------------------
if __name__ == "__main__":
    key = jax.random.PRNGKey(0)
    pkey, xkey = jax.random.split(key)

    FINAL_KERNEL = 1                               # static, as in the PyTorch ctor
    params = init_params(pkey, final_kernel=FINAL_KERNEL, channel=64, head_conv=256)

    # small RGB image batch, NCHW like PyTorch
    x = jax.random.normal(xkey, (2, 3, 32, 32), jnp.float32)

    fwd = jax.jit(functools.partial(vltenet_forward, final_kernel=FINAL_KERNEL))
    out = jax.block_until_ready(fwd(params, x))

    assert out["hm"].shape == (2, 1, 8, 8), out["hm"].shape
    assert out["vec_ind"].shape == (2, 2, 8, 8), out["vec_ind"].shape
    assert bool(jnp.all(out["hm"] >= 0.0)) and bool(jnp.all(out["hm"] <= 1.0))
    assert bool(jnp.all(jnp.isfinite(out["vec_ind"])))

    print("KERNEL_OK")
</pallas_src>

<mosaic_0001>
module attributes {stable_mosaic.version = 11 : i64} {
  func.func @_matmul_bias_act_kernel(%arg0: i32, %arg1: memref<256x27xbf16, #tpu.memory_space<vmem>>, %arg2: memref<27x16xbf16, #tpu.memory_space<vmem>>, %arg3: memref<1x16xf32, #tpu.memory_space<vmem>>, %arg4: memref<256x16xbf16, #tpu.memory_space<vmem>>) attributes {dimension_semantics = [#tpu.dimension_semantics<parallel>], iteration_bounds = array<i64: 2>, scalar_prefetch = 0 : i64, scratch_operands = 0 : i64, tpu.core_type = #tpu.core_type<tc>, window_params = [{transform_indices = @transform_0, window_bounds = array<i64: 256, 27>}, {pipeline_mode = #tpu.pipeline_mode<synchronous>, transform_indices = @transform_1, window_bounds = array<i64: 27, 16>}, {pipeline_mode = #tpu.pipeline_mode<synchronous>, transform_indices = @transform_2, window_bounds = array<i64: 1, 16>}, {transform_indices = @transform_3, window_bounds = array<i64: 256, 16>}]} {
    %c0 = arith.constant 0 : index
    %c0_0 = arith.constant 0 : index
    %0 = vector.load %arg1[%c0, %c0_0] : memref<256x27xbf16, #tpu.memory_space<vmem>>, vector<256x27xbf16>
    %c0_1 = arith.constant 0 : index
    %c0_2 = arith.constant 0 : index
    %1 = vector.load %arg2[%c0_1, %c0_2] : memref<27x16xbf16, #tpu.memory_space<vmem>>, vector<27x16xbf16>
    %cst = arith.constant dense<0.000000e+00> : vector<256x16xf32>
    %2 = tpu.matmul %0, %1, %cst {dimension_numbers = #tpu.dot_dimension_numbers<[1], [0], [0], [1], [0, 0, 1, 1], [], []>} : vector<256x27xbf16>, vector<27x16xbf16>, vector<256x16xf32> -> vector<256x16xf32>
    %c0_3 = arith.constant 0 : index
    %c0_4 = arith.constant 0 : index
    %3 = vector.load %arg3[%c0_3, %c0_4] : memref<1x16xf32, #tpu.memory_space<vmem>>, vector<1x16xf32>
    %4 = vector.broadcast %3 : vector<1x16xf32> to vector<256x16xf32>
    %5 = arith.addf %2, %4 : vector<256x16xf32>
    %cst_5 = arith.constant 0.000000e+00 : f32
    %6 = vector.broadcast %cst_5 : f32 to vector<256x16xf32>
    %7 = arith.maximumf %5, %6 : vector<256x16xf32>
    %8 = arith.truncf %7 : vector<256x16xf32> to vector<256x16xbf16>
    %c0_6 = arith.constant 0 : index
    %c0_7 = arith.constant 0 : index
    %9 = vector.load %arg4[%c0_6, %c0_7] : memref<256x16xbf16, #tpu.memory_space<vmem>>, vector<256x16xbf16>
    tpu.vector_store %arg4[%c0_6, %c0_7], %8 {strides = array<i32>} : memref<256x16xbf16, #tpu.memory_space<vmem>>, vector<256x16xbf16>,
    return
  }
  func.func @transform_0(%arg0: i32) -> (i32, i32) {
    %c0_i32 = arith.constant 0 : i32
    %c0_i32_0 = arith.constant 0 : i32
    return %arg0, %c0_i32 : i32, i32
  }
  func.func @transform_1(%arg0: i32) -> (i32, i32) {
    %c0_i32 = arith.constant 0 : i32
    %c0_i32_0 = arith.constant 0 : i32
    %c0_i32_1 = arith.constant 0 : i32
    return %c0_i32, %c0_i32_0 : i32, i32
  }
  func.func @transform_2(%arg0: i32) -> (i32, i32) {
    %c0_i32 = arith.constant 0 : i32
    %c0_i32_0 = arith.constant 0 : i32
    %c0_i32_1 = arith.constant 0 : i32
    return %c0_i32, %c0_i32_0 : i32, i32
  }
  func.func @transform_3(%arg0: i32) -> (i32, i32) {
    %c0_i32 = arith.constant 0 : i32
    %c0_i32_0 = arith.constant 0 : i32
    return %arg0, %c0_i32 : i32, i32
  }
}

module attributes {stable_mosaic.version = 11 : i64} {
  func.func @_matmul_bias_act_kernel(%arg0: i32, %arg1: memref<64x144xbf16, #tpu.memory_space<vmem>>, %arg2: memref<144x18xbf16, #tpu.memory_space<vmem>>, %arg3: memref<1x18xf32, #tpu.memory_space<vmem>>, %arg4: memref<64x18xbf16, #tpu.memory_space<vmem>>) attributes {dimension_semantics = [#tpu.dimension_semantics<parallel>], iteration_bounds = array<i64: 2>, scalar_prefetch = 0 : i64, scratch_operands = 0 : i64, tpu.core_type = #tpu.core_type<tc>, window_params = [{transform_indices = @transform_0, window_bounds = array<i64: 64, 144>}, {pipeline_mode = #tpu.pipeline_mode<synchronous>, transform_indices = @transform_1, window_bounds = array<i64: 144, 18>}, {pipeline_mode = #tpu.pipeline_mode<synchronous>, transform_indices = @transform_2, window_bounds = array<i64: 1, 18>}, {transform_indices = @transform_3, window_bounds = array<i64: 64, 18>}]} {
    %c0 = arith.constant 0 : index
    %c0_0 = arith.constant 0 : index
    %0 = vector.load %arg1[%c0, %c0_0] : memref<64x144xbf16, #tpu.memory_space<vmem>>, vector<64x144xbf16>
    %c0_1 = arith.constant 0 : index
    %c0_2 = arith.constant 0 : index
    %1 = vector.load %arg2[%c0_1, %c0_2] : memref<144x18xbf16, #tpu.memory_space<vmem>>, vector<144x18xbf16>
    %cst = arith.constant dense<0.000000e+00> : vector<64x18xf32>
    %2 = tpu.matmul %0, %1, %cst {dimension_numbers = #tpu.dot_dimension_numbers<[1], [0], [0], [1], [0, 0, 1, 1], [], []>} : vector<64x144xbf16>, vector<144x18xbf16>, vector<64x18xf32> -> vector<64x18xf32>
    %c0_3 = arith.constant 0 : index
    %c0_4 = arith.constant 0 : index
    %3 = vector.load %arg3[%c0_3, %c0_4] : memref<1x18xf32, #tpu.memory_space<vmem>>, vector<1x18xf32>
    %4 = vector.broadcast %3 : vector<1x18xf32> to vector<64x18xf32>
    %5 = arith.addf %2, %4 : vector<64x18xf32>
    %cst_5 = arith.constant 0.000000e+00 : f32
    %6 = vector.broadcast %cst_5 : f32 to vector<64x18xf32>
    %7 = arith.maximumf %5, %6 : vector<64x18xf32>
    %8 = arith.truncf %7 : vector<64x18xf32> to vector<64x18xbf16>
    %c0_6 = arith.constant 0 : index
    %c0_7 = arith.constant 0 : index
    %9 = vector.load %arg4[%c0_6, %c0_7] : memref<64x18xbf16, #tpu.memory_space<vmem>>, vector<64x18xbf16>
    tpu.vector_store %arg4[%c0_6, %c0_7], %8 {strides = array<i32>} : memref<64x18xbf16, #tpu.memory_space<vmem>>, vector<64x18xbf16>,
    return
  }
  func.func @transform_0(%arg0: i32) -> (i32, i32) {
    %c0_i32 = arith.constant 0 : i32
    %c0_i32_0 = arith.constant 0 : i32
    return %arg0, %c0_i32 : i32, i32
  }
  func.func @transform_1(%arg0: i32) -> (i32, i32) {
    %c0_i32 = arith.constant 0 : i32
    %c0_i32_0 = arith.constant 0 : i32
    %c0_i32_1 = arith.constant 0 : i32
    return %c0_i32, %c0_i32_0 : i32, i32
  }
  func.func @transform_2(%arg0: i32) -> (i32, i32) {
    %c0_i32 = arith.constant 0 : i32
    %c0_i32_0 = arith.constant 0 : i32
    %c0_i32_1 = arith.constant 0 : i32
    return %c0_i32, %c0_i32_0 : i32, i32
  }
  func.func @transform_3(%arg0: i32) -> (i32, i32) {
    %c0_i32 = arith.constant 0 : i32
    %c0_i32_0 = arith.constant 0 : i32
    return %arg0, %c0_i32 : i32, i32
  }
}

module attributes {stable_mosaic.version = 11 : i64} {
  func.func @_matmul_bias_act_kernel(%arg0: i32, %arg1: memref<16x162xbf16, #tpu.memory_space<vmem>>, %arg2: memref<162x36xbf16, #tpu.memory_space<vmem>>, %arg3: memref<1x36xf32, #tpu.memory_space<vmem>>, %arg4: memref<16x36xbf16, #tpu.memory_space<vmem>>) attributes {dimension_semantics = [#tpu.dimension_semantics<parallel>], iteration_bounds = array<i64: 2>, scalar_prefetch = 0 : i64, scratch_operands = 0 : i64, tpu.core_type = #tpu.core_type<tc>, window_params = [{transform_indices = @transform_0, window_bounds = array<i64: 16, 162>}, {pipeline_mode = #tpu.pipeline_mode<synchronous>, transform_indices = @transform_1, window_bounds = array<i64: 162, 36>}, {pipeline_mode = #tpu.pipeline_mode<synchronous>, transform_indices = @transform_2, window_bounds = array<i64: 1, 36>}, {transform_indices = @transform_3, window_bounds = array<i64: 16, 36>}]} {
    %c0 = arith.constant 0 : index
    %c0_0 = arith.constant 0 : index
    %0 = vector.load %arg1[%c0, %c0_0] : memref<16x162xbf16, #tpu.memory_space<vmem>>, vector<16x162xbf16>
    %c0_1 = arith.constant 0 : index
    %c0_2 = arith.constant 0 : index
    %1 = vector.load %arg2[%c0_1, %c0_2] : memref<162x36xbf16, #tpu.memory_space<vmem>>, vector<162x36xbf16>
    %cst = arith.constant dense<0.000000e+00> : vector<16x36xf32>
    %2 = tpu.matmul %0, %1, %cst {dimension_numbers = #tpu.dot_dimension_numbers<[1], [0], [0], [1], [0, 0, 1, 1], [], []>} : vector<16x162xbf16>, vector<162x36xbf16>, vector<16x36xf32> -> vector<16x36xf32>
    %c0_3 = arith.constant 0 : index
    %c0_4 = arith.constant 0 : index
    %3 = vector.load %arg3[%c0_3, %c0_4] : memref<1x36xf32, #tpu.memory_space<vmem>>, vector<1x36xf32>
    %4 = vector.broadcast %3 : vector<1x36xf32> to vector<16x36xf32>
    %5 = arith.addf %2, %4 : vector<16x36xf32>
    %cst_5 = arith.constant 0.000000e+00 : f32
    %6 = vector.broadcast %cst_5 : f32 to vector<16x36xf32>
    %7 = arith.maximumf %5, %6 : vector<16x36xf32>
    %8 = arith.truncf %7 : vector<16x36xf32> to vector<16x36xbf16>
    %c0_6 = arith.constant 0 : index
    %c0_7 = arith.constant 0 : index
    %9 = vector.load %arg4[%c0_6, %c0_7] : memref<16x36xbf16, #tpu.memory_space<vmem>>, vector<16x36xbf16>
    tpu.vector_store %arg4[%c0_6, %c0_7], %8 {strides = array<i32>} : memref<16x36xbf16, #tpu.memory_space<vmem>>, vector<16x36xbf16>,
    return
  }
  func.func @transform_0(%arg0: i32) -> (i32, i32) {
    %c0_i32 = arith.constant 0 : i32
    %c0_i32_0 = arith.constant 0 : i32
    return %arg0, %c0_i32 : i32, i32
  }
  func.func @transform_1(%arg0: i32) -> (i32, i32) {
    %c0_i32 = arith.constant 0 : i32
    %c0_i32_0 = arith.constant 0 : i32
    %c0_i32_1 = arith.constant 0 : i32
    return %c0_i32, %c0_i32_0 : i32, i32
  }
  func.func @transform_2(%arg0: i32) -> (i32, i32) {
    %c0_i32 = arith.constant 0 : i32
    %c0_i32_0 = arith.constant 0 : i32
    %c0_i32_1 = arith.constant 0 : i32
    return %c0_i32, %c0_i32_0 : i32, i32
  }
  func.func @transform_3(%arg0: i32) -> (i32, i32) {
    %c0_i32 = arith.constant 0 : i32
    %c0_i32_0 = arith.constant 0 : i32
    return %arg0, %c0_i32 : i32, i32
  }
}

module attributes {stable_mosaic.version = 11 : i64} {
  func.func @_matmul_bias_act_kernel(%arg0: i32, %arg1: memref<8x324xbf16, #tpu.memory_space<vmem>>, %arg2: memref<324x72xbf16, #tpu.memory_space<vmem>>, %arg3: memref<1x72xf32, #tpu.memory_space<vmem>>, %arg4: memref<8x72xbf16, #tpu.memory_space<vmem>>) attributes {dimension_semantics = [#tpu.dimension_semantics<parallel>], iteration_bounds = array<i64: 1>, scalar_prefetch = 0 : i64, scratch_operands = 0 : i64, tpu.core_type = #tpu.core_type<tc>, window_params = [{transform_indices = @transform_0, window_bounds = array<i64: 8, 324>}, {pipeline_mode = #tpu.pipeline_mode<synchronous>, transform_indices = @transform_1, window_bounds = array<i64: 324, 72>}, {pipeline_mode = #tpu.pipeline_mode<synchronous>, transform_indices = @transform_2, window_bounds = array<i64: 1, 72>}, {transform_indices = @transform_3, window_bounds = array<i64: 8, 72>}]} {
    %c0 = arith.constant 0 : index
    %c0_0 = arith.constant 0 : index
    %0 = vector.load %arg1[%c0, %c0_0] : memref<8x324xbf16, #tpu.memory_space<vmem>>, vector<8x324xbf16>
    %c0_1 = arith.constant 0 : index
    %c0_2 = arith.constant 0 : index
    %1 = vector.load %arg2[%c0_1, %c0_2] : memref<324x72xbf16, #tpu.memory_space<vmem>>, vector<324x72xbf16>
    %cst = arith.constant dense<0.000000e+00> : vector<8x72xf32>
    %2 = tpu.matmul %0, %1, %cst {dimension_numbers = #tpu.dot_dimension_numbers<[1], [0], [0], [1], [0, 0, 1, 1], [], []>} : vector<8x324xbf16>, vector<324x72xbf16>, vector<8x72xf32> -> vector<8x72xf32>
    %c0_3 = arith.constant 0 : index
    %c0_4 = arith.constant 0 : index
    %3 = vector.load %arg3[%c0_3, %c0_4] : memref<1x72xf32, #tpu.memory_space<vmem>>, vector<1x72xf32>
    %4 = vector.broadcast %3 : vector<1x72xf32> to vector<8x72xf32>
    %5 = arith.addf %2, %4 : vector<8x72xf32>
    %cst_5 = arith.constant 0.000000e+00 : f32
    %6 = vector.broadcast %cst_5 : f32 to vector<8x72xf32>
    %7 = arith.maximumf %5, %6 : vector<8x72xf32>
    %8 = arith.truncf %7 : vector<8x72xf32> to vector<8x72xbf16>
    %c0_6 = arith.constant 0 : index
    %c0_7 = arith.constant 0 : index
    %9 = vector.load %arg4[%c0_6, %c0_7] : memref<8x72xbf16, #tpu.memory_space<vmem>>, vector<8x72xbf16>
    tpu.vector_store %arg4[%c0_6, %c0_7], %8 {strides = array<i32>} : memref<8x72xbf16, #tpu.memory_space<vmem>>, vector<8x72xbf16>,
    return
  }
  func.func @transform_0(%arg0: i32) -> (i32, i32) {
    %c0_i32 = arith.constant 0 : i32
    %c0_i32_0 = arith.constant 0 : i32
    return %arg0, %c0_i32 : i32, i32
  }
  func.func @transform_1(%arg0: i32) -> (i32, i32) {
    %c0_i32 = arith.constant 0 : i32
    %c0_i32_0 = arith.constant 0 : i32
    %c0_i32_1 = arith.constant 0 : i32
    return %c0_i32, %c0_i32_0 : i32, i32
  }
  func.func @transform_2(%arg0: i32) -> (i32, i32) {
    %c0_i32 = arith.constant 0 : i32
    %c0_i32_0 = arith.constant 0 : i32
    %c0_i32_1 = arith.constant 0 : i32
    return %c0_i32, %c0_i32_0 : i32, i32
  }
  func.func @transform_3(%arg0: i32) -> (i32, i32) {
    %c0_i32 = arith.constant 0 : i32
    %c0_i32_0 = arith.constant 0 : i32
    return %arg0, %c0_i32 : i32, i32
  }
}

module attributes {stable_mosaic.version = 11 : i64} {
  func.func @_matmul_bias_act_kernel(%arg0: i32, %arg1: memref<8x648xbf16, #tpu.memory_space<vmem>>, %arg2: memref<648x144xbf16, #tpu.memory_space<vmem>>, %arg3: memref<1x144xf32, #tpu.memory_space<vmem>>, %arg4: memref<8x144xbf16, #tpu.memory_space<vmem>>) attributes {dimension_semantics = [#tpu.dimension_semantics<parallel>], iteration_bounds = array<i64: 1>, scalar_prefetch = 0 : i64, scratch_operands = 0 : i64, tpu.core_type = #tpu.core_type<tc>, window_params = [{transform_indices = @transform_0, window_bounds = array<i64: 8, 648>}, {pipeline_mode = #tpu.pipeline_mode<synchronous>, transform_indices = @transform_1, window_bounds = array<i64: 648, 144>}, {pipeline_mode = #tpu.pipeline_mode<synchronous>, transform_indices = @transform_2, window_bounds = array<i64: 1, 144>}, {transform_indices = @transform_3, window_bounds = array<i64: 8, 144>}]} {
    %c0 = arith.constant 0 : index
    %c0_0 = arith.constant 0 : index
    %0 = vector.load %arg1[%c0, %c0_0] : memref<8x648xbf16, #tpu.memory_space<vmem>>, vector<8x648xbf16>
    %c0_1 = arith.constant 0 : index
    %c0_2 = arith.constant 0 : index
    %1 = vector.load %arg2[%c0_1, %c0_2] : memref<648x144xbf16, #tpu.memory_space<vmem>>, vector<648x144xbf16>
    %cst = arith.constant dense<0.000000e+00> : vector<8x144xf32>
    %2 = tpu.matmul %0, %1, %cst {dimension_numbers = #tpu.dot_dimension_numbers<[1], [0], [0], [1], [0, 0, 1, 1], [], []>} : vector<8x648xbf16>, vector<648x144xbf16>, vector<8x144xf32> -> vector<8x144xf32>
    %c0_3 = arith.constant 0 : index
    %c0_4 = arith.constant 0 : index
    %3 = vector.load %arg3[%c0_3, %c0_4] : memref<1x144xf32, #tpu.memory_space<vmem>>, vector<1x144xf32>
    %4 = vector.broadcast %3 : vector<1x144xf32> to vector<8x144xf32>
    %5 = arith.addf %2, %4 : vector<8x144xf32>
    %cst_5 = arith.constant 0.000000e+00 : f32
    %6 = vector.broadcast %cst_5 : f32 to vector<8x144xf32>
    %7 = arith.maximumf %5, %6 : vector<8x144xf32>
    %8 = arith.truncf %7 : vector<8x144xf32> to vector<8x144xbf16>
    %c0_6 = arith.constant 0 : index
    %c0_7 = arith.constant 0 : index
    %9 = vector.load %arg4[%c0_6, %c0_7] : memref<8x144xbf16, #tpu.memory_space<vmem>>, vector<8x144xbf16>
    tpu.vector_store %arg4[%c0_6, %c0_7], %8 {strides = array<i32>} : memref<8x144xbf16, #tpu.memory_space<vmem>>, vector<8x144xbf16>,
    return
  }
  func.func @transform_0(%arg0: i32) -> (i32, i32) {
    %c0_i32 = arith.constant 0 : i32
    %c0_i32_0 = arith.constant 0 : i32
    return %arg0, %c0_i32 : i32, i32
  }
  func.func @transform_1(%arg0: i32) -> (i32, i32) {
    %c0_i32 = arith.constant 0 : i32
    %c0_i32_0 = arith.constant 0 : i32
    %c0_i32_1 = arith.constant 0 : i32
    return %c0_i32, %c0_i32_0 : i32, i32
  }
  func.func @transform_2(%arg0: i32) -> (i32, i32) {
    %c0_i32 = arith.constant 0 : i32
    %c0_i32_0 = arith.constant 0 : i32
    %c0_i32_1 = arith.constant 0 : i32
    return %c0_i32, %c0_i32_0 : i32, i32
  }
  func.func @transform_3(%arg0: i32) -> (i32, i32) {
    %c0_i32 = arith.constant 0 : i32
    %c0_i32_0 = arith.constant 0 : i32
    return %arg0, %c0_i32 : i32, i32
  }
}

module attributes {stable_mosaic.version = 11 : i64} {
  func.func @_matmul_bias_act_kernel(%arg0: i32, %arg1: memref<8x72xbf16, #tpu.memory_space<vmem>>, %arg2: memref<72x64xbf16, #tpu.memory_space<vmem>>, %arg3: memref<1x64xf32, #tpu.memory_space<vmem>>, %arg4: memref<8x64xbf16, #tpu.memory_space<vmem>>) attributes {dimension_semantics = [#tpu.dimension_semantics<parallel>], iteration_bounds = array<i64: 1>, scalar_prefetch = 0 : i64, scratch_operands = 0 : i64, tpu.core_type = #tpu.core_type<tc>, window_params = [{transform_indices = @transform_0, window_bounds = array<i64: 8, 72>}, {pipeline_mode = #tpu.pipeline_mode<synchronous>, transform_indices = @transform_1, window_bounds = array<i64: 72, 64>}, {pipeline_mode = #tpu.pipeline_mode<synchronous>, transform_indices = @transform_2, window_bounds = array<i64: 1, 64>}, {transform_indices = @transform_3, window_bounds = array<i64: 8, 64>}]} {
    %c0 = arith.constant 0 : index
    %c0_0 = arith.constant 0 : index
    %0 = vector.load %arg1[%c0, %c0_0] : memref<8x72xbf16, #tpu.memory_space<vmem>>, vector<8x72xbf16>
    %c0_1 = arith.constant 0 : index
    %c0_2 = arith.constant 0 : index
    %1 = vector.load %arg2[%c0_1, %c0_2] : memref<72x64xbf16, #tpu.memory_space<vmem>>, vector<72x64xbf16>
    %cst = arith.constant dense<0.000000e+00> : vector<8x64xf32>
    %2 = tpu.matmul %0, %1, %cst {dimension_numbers = #tpu.dot_dimension_numbers<[1], [0], [0], [1], [0, 0, 1, 1], [], []>} : vector<8x72xbf16>, vector<72x64xbf16>, vector<8x64xf32> -> vector<8x64xf32>
    %c0_3 = arith.constant 0 : index
    %c0_4 = arith.constant 0 : index
    %3 = vector.load %arg3[%c0_3, %c0_4] : memref<1x64xf32, #tpu.memory_space<vmem>>, vector<1x64xf32>
    %4 = vector.broadcast %3 : vector<1x64xf32> to vector<8x64xf32>
    %5 = arith.addf %2, %4 : vector<8x64xf32>
    %6 = arith.truncf %5 : vector<8x64xf32> to vector<8x64xbf16>
    %c0_5 = arith.constant 0 : index
    %c0_6 = arith.constant 0 : index
    %7 = vector.load %arg4[%c0_5, %c0_6] : memref<8x64xbf16, #tpu.memory_space<vmem>>, vector<8x64xbf16>
    tpu.vector_store %arg4[%c0_5, %c0_6], %6 {strides = array<i32>} : memref<8x64xbf16, #tpu.memory_space<vmem>>, vector<8x64xbf16>,
    return
  }
  func.func @transform_0(%arg0: i32) -> (i32, i32) {
    %c0_i32 = arith.constant 0 : i32
    %c0_i32_0 = arith.constant 0 : i32
    return %arg0, %c0_i32 : i32, i32
  }
  func.func @transform_1(%arg0: i32) -> (i32, i32) {
    %c0_i32 = arith.constant 0 : i32
    %c0_i32_0 = arith.constant 0 : i32
    %c0_i32_1 = arith.constant 0 : i32
    return %c0_i32, %c0_i32_0 : i32, i32
  }
  func.func @transform_2(%arg0: i32) -> (i32, i32) {
    %c0_i32 = arith.constant 0 : i32
    %c0_i32_0 = arith.constant 0 : i32
    %c0_i32_1 = arith.constant 0 : i32
    return %c0_i32, %c0_i32_0 : i32, i32
  }
  func.func @transform_3(%arg0: i32) -> (i32, i32) {
    %c0_i32 = arith.constant 0 : i32
    %c0_i32_0 = arith.constant 0 : i32
    return %arg0, %c0_i32 : i32, i32
  }
}

module attributes {stable_mosaic.version = 11 : i64} {
  func.func @_matmul_bias_act_kernel(%arg0: i32, %arg1: memref<8x144xbf16, #tpu.memory_space<vmem>>, %arg2: memref<144x64xbf16, #tpu.memory_space<vmem>>, %arg3: memref<1x64xf32, #tpu.memory_space<vmem>>, %arg4: memref<8x64xbf16, #tpu.memory_space<vmem>>) attributes {dimension_semantics = [#tpu.dimension_semantics<parallel>], iteration_bounds = array<i64: 1>, scalar_prefetch = 0 : i64, scratch_operands = 0 : i64, tpu.core_type = #tpu.core_type<tc>, window_params = [{transform_indices = @transform_0, window_bounds = array<i64: 8, 144>}, {pipeline_mode = #tpu.pipeline_mode<synchronous>, transform_indices = @transform_1, window_bounds = array<i64: 144, 64>}, {pipeline_mode = #tpu.pipeline_mode<synchronous>, transform_indices = @transform_2, window_bounds = array<i64: 1, 64>}, {transform_indices = @transform_3, window_bounds = array<i64: 8, 64>}]} {
    %c0 = arith.constant 0 : index
    %c0_0 = arith.constant 0 : index
    %0 = vector.load %arg1[%c0, %c0_0] : memref<8x144xbf16, #tpu.memory_space<vmem>>, vector<8x144xbf16>
    %c0_1 = arith.constant 0 : index
    %c0_2 = arith.constant 0 : index
    %1 = vector.load %arg2[%c0_1, %c0_2] : memref<144x64xbf16, #tpu.memory_space<vmem>>, vector<144x64xbf16>
    %cst = arith.constant dense<0.000000e+00> : vector<8x64xf32>
    %2 = tpu.matmul %0, %1, %cst {dimension_numbers = #tpu.dot_dimension_numbers<[1], [0], [0], [1], [0, 0, 1, 1], [], []>} : vector<8x144xbf16>, vector<144x64xbf16>, vector<8x64xf32> -> vector<8x64xf32>
    %c0_3 = arith.constant 0 : index
    %c0_4 = arith.constant 0 : index
    %3 = vector.load %arg3[%c0_3, %c0_4] : memref<1x64xf32, #tpu.memory_space<vmem>>, vector<1x64xf32>
    %4 = vector.broadcast %3 : vector<1x64xf32> to vector<8x64xf32>
    %5 = arith.addf %2, %4 : vector<8x64xf32>
    %6 = arith.truncf %5 : vector<8x64xf32> to vector<8x64xbf16>
    %c0_5 = arith.constant 0 : index
    %c0_6 = arith.constant 0 : index
    %7 = vector.load %arg4[%c0_5, %c0_6] : memref<8x64xbf16, #tpu.memory_space<vmem>>, vector<8x64xbf16>
    tpu.vector_store %arg4[%c0_5, %c0_6], %6 {strides = array<i32>} : memref<8x64xbf16, #tpu.memory_space<vmem>>, vector<8x64xbf16>,
    return
  }
  func.func @transform_0(%arg0: i32) -> (i32, i32) {
    %c0_i32 = arith.constant 0 : i32
    %c0_i32_0 = arith.constant 0 : i32
    return %arg0, %c0_i32 : i32, i32
  }
  func.func @transform_1(%arg0: i32) -> (i32, i32) {
    %c0_i32 = arith.constant 0 : i32
    %c0_i32_0 = arith.constant 0 : i32
    %c0_i32_1 = arith.constant 0 : i32
    return %c0_i32, %c0_i32_0 : i32, i32
  }
  func.func @transform_2(%arg0: i32) -> (i32, i32) {
    %c0_i32 = arith.constant 0 : i32
    %c0_i32_0 = arith.constant 0 : i32
    %c0_i32_1 = arith.constant 0 : i32
    return %c0_i32, %c0_i32_0 : i32, i32
  }
  func.func @transform_3(%arg0: i32) -> (i32, i32) {
    %c0_i32 = arith.constant 0 : i32
    %c0_i32_0 = arith.constant 0 : i32
    return %arg0, %c0_i32 : i32, i32
  }
}

module attributes {stable_mosaic.version = 11 : i64} {
  func.func @_matmul_bias_act_kernel(%arg0: i32, %arg1: memref<16x36xbf16, #tpu.memory_space<vmem>>, %arg2: memref<36x64xbf16, #tpu.memory_space<vmem>>, %arg3: memref<1x64xf32, #tpu.memory_space<vmem>>, %arg4: memref<16x64xbf16, #tpu.memory_space<vmem>>) attributes {dimension_semantics = [#tpu.dimension_semantics<parallel>], iteration_bounds = array<i64: 2>, scalar_prefetch = 0 : i64, scratch_operands = 0 : i64, tpu.core_type = #tpu.core_type<tc>, window_params = [{transform_indices = @transform_0, window_bounds = array<i64: 16, 36>}, {pipeline_mode = #tpu.pipeline_mode<synchronous>, transform_indices = @transform_1, window_bounds = array<i64: 36, 64>}, {pipeline_mode = #tpu.pipeline_mode<synchronous>, transform_indices = @transform_2, window_bounds = array<i64: 1, 64>}, {transform_indices = @transform_3, window_bounds = array<i64: 16, 64>}]} {
    %c0 = arith.constant 0 : index
    %c0_0 = arith.constant 0 : index
    %0 = vector.load %arg1[%c0, %c0_0] : memref<16x36xbf16, #tpu.memory_space<vmem>>, vector<16x36xbf16>
    %c0_1 = arith.constant 0 : index
    %c0_2 = arith.constant 0 : index
    %1 = vector.load %arg2[%c0_1, %c0_2] : memref<36x64xbf16, #tpu.memory_space<vmem>>, vector<36x64xbf16>
    %cst = arith.constant dense<0.000000e+00> : vector<16x64xf32>
    %2 = tpu.matmul %0, %1, %cst {dimension_numbers = #tpu.dot_dimension_numbers<[1], [0], [0], [1], [0, 0, 1, 1], [], []>} : vector<16x36xbf16>, vector<36x64xbf16>, vector<16x64xf32> -> vector<16x64xf32>
    %c0_3 = arith.constant 0 : index
    %c0_4 = arith.constant 0 : index
    %3 = vector.load %arg3[%c0_3, %c0_4] : memref<1x64xf32, #tpu.memory_space<vmem>>, vector<1x64xf32>
    %4 = vector.broadcast %3 : vector<1x64xf32> to vector<16x64xf32>
    %5 = arith.addf %2, %4 : vector<16x64xf32>
    %6 = arith.truncf %5 : vector<16x64xf32> to vector<16x64xbf16>
    %c0_5 = arith.constant 0 : index
    %c0_6 = arith.constant 0 : index
    %7 = vector.load %arg4[%c0_5, %c0_6] : memref<16x64xbf16, #tpu.memory_space<vmem>>, vector<16x64xbf16>
    tpu.vector_store %arg4[%c0_5, %c0_6], %6 {strides = array<i32>} : memref<16x64xbf16, #tpu.memory_space<vmem>>, vector<16x64xbf16>,
    return
  }
  func.func @transform_0(%arg0: i32) -> (i32, i32) {
    %c0_i32 = arith.constant 0 : i32
    %c0_i32_0 = arith.constant 0 : i32
    return %arg0, %c0_i32 : i32, i32
  }
  func.func @transform_1(%arg0: i32) -> (i32, i32) {
    %c0_i32 = arith.constant 0 : i32
    %c0_i32_0 = arith.constant 0 : i32
    %c0_i32_1 = arith.constant 0 : i32
    return %c0_i32, %c0_i32_0 : i32, i32
  }
  func.func @transform_2(%arg0: i32) -> (i32, i32) {
    %c0_i32 = arith.constant 0 : i32
    %c0_i32_0 = arith.constant 0 : i32
    %c0_i32_1 = arith.constant 0 : i32
    return %c0_i32, %c0_i32_0 : i32, i32
  }
  func.func @transform_3(%arg0: i32) -> (i32, i32) {
    %c0_i32 = arith.constant 0 : i32
    %c0_i32_0 = arith.constant 0 : i32
    return %arg0, %c0_i32 : i32, i32
  }
}

module attributes {stable_mosaic.version = 11 : i64} {
  func.func @_matmul_bias_act_kernel(%arg0: i32, %arg1: memref<64x18xbf16, #tpu.memory_space<vmem>>, %arg2: memref<18x64xbf16, #tpu.memory_space<vmem>>, %arg3: memref<1x64xf32, #tpu.memory_space<vmem>>, %arg4: memref<64x64xbf16, #tpu.memory_space<vmem>>) attributes {dimension_semantics = [#tpu.dimension_semantics<parallel>], iteration_bounds = array<i64: 2>, scalar_prefetch = 0 : i64, scratch_operands = 0 : i64, tpu.core_type = #tpu.core_type<tc>, window_params = [{transform_indices = @transform_0, window_bounds = array<i64: 64, 18>}, {pipeline_mode = #tpu.pipeline_mode<synchronous>, transform_indices = @transform_1, window_bounds = array<i64: 18, 64>}, {pipeline_mode = #tpu.pipeline_mode<synchronous>, transform_indices = @transform_2, window_bounds = array<i64: 1, 64>}, {transform_indices = @transform_3, window_bounds = array<i64: 64, 64>}]} {
    %c0 = arith.constant 0 : index
    %c0_0 = arith.constant 0 : index
    %0 = vector.load %arg1[%c0, %c0_0] : memref<64x18xbf16, #tpu.memory_space<vmem>>, vector<64x18xbf16>
    %c0_1 = arith.constant 0 : index
    %c0_2 = arith.constant 0 : index
    %1 = vector.load %arg2[%c0_1, %c0_2] : memref<18x64xbf16, #tpu.memory_space<vmem>>, vector<18x64xbf16>
    %cst = arith.constant dense<0.000000e+00> : vector<64x64xf32>
    %2 = tpu.matmul %0, %1, %cst {dimension_numbers = #tpu.dot_dimension_numbers<[1], [0], [0], [1], [0, 0, 1, 1], [], []>} : vector<64x18xbf16>, vector<18x64xbf16>, vector<64x64xf32> -> vector<64x64xf32>
    %c0_3 = arith.constant 0 : index
    %c0_4 = arith.constant 0 : index
    %3 = vector.load %arg3[%c0_3, %c0_4] : memref<1x64xf32, #tpu.memory_space<vmem>>, vector<1x64xf32>
    %4 = vector.broadcast %3 : vector<1x64xf32> to vector<64x64xf32>
    %5 = arith.addf %2, %4 : vector<64x64xf32>
    %6 = arith.truncf %5 : vector<64x64xf32> to vector<64x64xbf16>
    %c0_5 = arith.constant 0 : index
    %c0_6 = arith.constant 0 : index
    %7 = vector.load %arg4[%c0_5, %c0_6] : memref<64x64xbf16, #tpu.memory_space<vmem>>, vector<64x64xbf16>
    tpu.vector_store %arg4[%c0_5, %c0_6], %6 {strides = array<i32>} : memref<64x64xbf16, #tpu.memory_space<vmem>>, vector<64x64xbf16>,
    return
  }
  func.func @transform_0(%arg0: i32) -> (i32, i32) {
    %c0_i32 = arith.constant 0 : i32
    %c0_i32_0 = arith.constant 0 : i32
    return %arg0, %c0_i32 : i32, i32
  }
  func.func @transform_1(%arg0: i32) -> (i32, i32) {
    %c0_i32 = arith.constant 0 : i32
    %c0_i32_0 = arith.constant 0 : i32
    %c0_i32_1 = arith.constant 0 : i32
    return %c0_i32, %c0_i32_0 : i32, i32
  }
  func.func @transform_2(%arg0: i32) -> (i32, i32) {
    %c0_i32 = arith.constant 0 : i32
    %c0_i32_0 = arith.constant 0 : i32
    %c0_i32_1 = arith.constant 0 : i32
    return %c0_i32, %c0_i32_0 : i32, i32
  }
  func.func @transform_3(%arg0: i32) -> (i32, i32) {
    %c0_i32 = arith.constant 0 : i32
    %c0_i32_0 = arith.constant 0 : i32
    return %arg0, %c0_i32 : i32, i32
  }
}

module attributes {stable_mosaic.version = 11 : i64} {
  func.func @_head_kernel(%arg0: i32, %arg1: i32, %arg2: memref<1x10x10x64xbf16, #tpu.memory_space<vmem>>, %arg3: memref<576x512xbf16, #tpu.memory_space<vmem>>, %arg4: memref<1x512xf32, #tpu.memory_space<vmem>>, %arg5: memref<512x3xf32, #tpu.memory_space<vmem>>, %arg6: memref<1x3xf32, #tpu.memory_space<vmem>>, %arg7: memref<1x8x3x8xf32, #tpu.memory_space<vmem>>) attributes {dimension_semantics = [#tpu.dimension_semantics<parallel>, #tpu.dimension_semantics<parallel>], iteration_bounds = array<i64: 2, 1>, scalar_prefetch = 0 : i64, scratch_operands = 0 : i64, tpu.core_type = #tpu.core_type<tc>, window_params = [{transform_indices = @transform_0, window_bounds = array<i64: 1, 10, 10, 64>}, {pipeline_mode = #tpu.pipeline_mode<synchronous>, transform_indices = @transform_1, window_bounds = array<i64: 576, 512>}, {pipeline_mode = #tpu.pipeline_mode<synchronous>, transform_indices = @transform_2, window_bounds = array<i64: 1, 512>}, {pipeline_mode = #tpu.pipeline_mode<synchronous>, transform_indices = @transform_3, window_bounds = array<i64: 512, 3>}, {pipeline_mode = #tpu.pipeline_mode<synchronous>, transform_indices = @transform_4, window_bounds = array<i64: 1, 3>}, {transform_indices = @transform_5, window_bounds = array<i64: 1, 8, 3, 8>}]} {
    %c8_i32 = arith.constant 8 : i32
    %0 = arith.muli %arg1, %c8_i32 : i32
    %1 = tpu.assume_multiple %0, 8 : i32
    %c0 = arith.constant 0 : index
    %2 = arith.index_cast %1 : i32 to index
    %c0_0 = arith.constant 0 : index
    %c0_1 = arith.constant 0 : index
    %3 = vector.load %arg2[%c0, %2, %c0_0, %c0_1] : memref<1x10x10x64xbf16, #tpu.memory_space<vmem>>, vector<1x10x10x64xbf16>
    %4 = vector.shape_cast %3 : vector<1x10x10x64xbf16> to vector<10x10x64xbf16>
    %5 = vector.extract_strided_slice %4 {offsets = [0, 0, 0], sizes = [8, 8, 64], strides = [1, 1, 1]} : vector<10x10x64xbf16> to vector<8x8x64xbf16>
    %6 = vector.extract_strided_slice %4 {offsets = [0, 1, 0], sizes = [8, 8, 64], strides = [1, 1, 1]} : vector<10x10x64xbf16> to vector<8x8x64xbf16>
    %7 = vector.extract_strided_slice %4 {offsets = [0, 2, 0], sizes = [8, 8, 64], strides = [1, 1, 1]} : vector<10x10x64xbf16> to vector<8x8x64xbf16>
    %8 = vector.extract_strided_slice %4 {offsets = [1, 0, 0], sizes = [8, 8, 64], strides = [1, 1, 1]} : vector<10x10x64xbf16> to vector<8x8x64xbf16>
    %9 = vector.extract_strided_slice %4 {offsets = [1, 1, 0], sizes = [8, 8, 64], strides = [1, 1, 1]} : vector<10x10x64xbf16> to vector<8x8x64xbf16>
    %10 = vector.extract_strided_slice %4 {offsets = [1, 2, 0], sizes = [8, 8, 64], strides = [1, 1, 1]} : vector<10x10x64xbf16> to vector<8x8x64xbf16>
    %11 = vector.extract_strided_slice %4 {offsets = [2, 0, 0], sizes = [8, 8, 64], strides = [1, 1, 1]} : vector<10x10x64xbf16> to vector<8x8x64xbf16>
    %12 = vector.extract_strided_slice %4 {offsets = [2, 1, 0], sizes = [8, 8, 64], strides = [1, 1, 1]} : vector<10x10x64xbf16> to vector<8x8x64xbf16>
    %13 = vector.extract_strided_slice %4 {offsets = [2, 2, 0], sizes = [8, 8, 64], strides = [1, 1, 1]} : vector<10x10x64xbf16> to vector<8x8x64xbf16>
    %14 = tpu.concatenate %5, %6, %7, %8, %9, %10, %11, %12, %13 in 2 : vector<8x8x64xbf16>, vector<8x8x64xbf16>, vector<8x8x64xbf16>, vector<8x8x64xbf16>, vector<8x8x64xbf16>, vector<8x8x64xbf16>, vector<8x8x64xbf16>, vector<8x8x64xbf16>, vector<8x8x64xbf16> -> vector<8x8x576xbf16>
    %15 = vector.shape_cast %14 : vector<8x8x576xbf16> to vector<64x576xbf16>
    %c0_2 = arith.constant 0 : index
    %c0_3 = arith.constant 0 : index
    %16 = vector.load %arg3[%c0_2, %c0_3] : memref<576x512xbf16, #tpu.memory_space<vmem>>, vector<576x512xbf16>
    %cst = arith.constant dense<0.000000e+00> : vector<64x512xf32>
    %17 = tpu.matmul %15, %16, %cst {dimension_numbers = #tpu.dot_dimension_numbers<[1], [0], [0], [1], [0, 0, 1, 1], [], []>} : vector<64x576xbf16>, vector<576x512xbf16>, vector<64x512xf32> -> vector<64x512xf32>
    %c0_4 = arith.constant 0 : index
    %c0_5 = arith.constant 0 : index
    %18 = vector.load %arg4[%c0_4, %c0_5] : memref<1x512xf32, #tpu.memory_space<vmem>>, vector<1x512xf32>
    %19 = vector.broadcast %18 : vector<1x512xf32> to vector<64x512xf32>
    %20 = arith.addf %17, %19 : vector<64x512xf32>
    %cst_6 = arith.constant 0.000000e+00 : f32
    %21 = vector.broadcast %cst_6 : f32 to vector<64x512xf32>
    %22 = arith.maximumf %20, %21 : vector<64x512xf32>
    %c0_7 = arith.constant 0 : index
    %c0_8 = arith.constant 0 : index
    %23 = vector.load %arg5[%c0_7, %c0_8] : memref<512x3xf32, #tpu.memory_space<vmem>>, vector<512x3xf32>
    %cst_9 = arith.constant dense<0.000000e+00> : vector<64x3xf32>
    %24 = tpu.matmul %22, %23, %cst_9 {dimension_numbers = #tpu.dot_dimension_numbers<[1], [0], [0], [1], [0, 0, 1, 1], [], []>} : vector<64x512xf32>, vector<512x3xf32>, vector<64x3xf32> -> vector<64x3xf32>
    %c0_10 = arith.constant 0 : index
    %c0_11 = arith.constant 0 : index
    %25 = vector.load %arg6[%c0_10, %c0_11] : memref<1x3xf32, #tpu.memory_space<vmem>>, vector<1x3xf32>
    %26 = vector.broadcast %25 : vector<1x3xf32> to vector<64x3xf32>
    %27 = arith.addf %24, %26 : vector<64x3xf32>
    %28 = tpu.iota {dimensions = array<i32: 1>} : vector<64x3xi32>
    %c0_i32 = arith.constant 0 : i32
    %29 = vector.broadcast %c0_i32 : i32 to vector<64x3xi32>
    %30 = arith.cmpi eq, %28, %29 : vector<64x3xi32>
    %31 = arith.negf %27 : vector<64x3xf32>
    %32 = math.exp %31 : vector<64x3xf32>
    %cst_12 = arith.constant 1.000000e+00 : f32
    %33 = vector.broadcast %cst_12 : f32 to vector<64x3xf32>
    %34 = arith.addf %33, %32 : vector<64x3xf32>
    %35 = arith.divf %33, %34 : vector<64x3xf32>
    %36 = arith.select %30, %35, %27 : vector<64x3xi1>, vector<64x3xf32>
    %37 = vector.shape_cast %36 : vector<64x3xf32> to vector<8x8x3xf32>
    %38 = tpu.transpose %37, [0, 2, 1] : vector<8x8x3xf32> -> vector<8x3x8xf32>
    %c0_13 = arith.constant 0 : index
    %c0_14 = arith.constant 0 : index
    %c0_15 = arith.constant 0 : index
    %c0_16 = arith.constant 0 : index
    %39 = vector.load %arg7[%c0_13, %c0_14, %c0_15, %c0_16] : memref<1x8x3x8xf32, #tpu.memory_space<vmem>>, vector<1x8x3x8xf32>
    %40 = vector.shape_cast %39 : vector<1x8x3x8xf32> to vector<8x3x8xf32>
    %41 = vector.shape_cast %38 : vector<8x3x8xf32> to vector<1x8x3x8xf32>
    tpu.vector_store %arg7[%c0_13, %c0_14, %c0_15, %c0_16], %41 {strides = array<i32>} : memref<1x8x3x8xf32, #tpu.memory_space<vmem>>, vector<1x8x3x8xf32>,
    return
  }
  func.func @transform_0(%arg0: i32, %arg1: i32) -> (i32, i32, i32, i32) {
    %c0_i32 = arith.constant 0 : i32
    %c0_i32_0 = arith.constant 0 : i32
    %c0_i32_1 = arith.constant 0 : i32
    %c0_i32_2 = arith.constant 0 : i32
    return %arg0, %c0_i32, %c0_i32_0, %c0_i32_1 : i32, i32, i32, i32
  }
  func.func @transform_1(%arg0: i32, %arg1: i32) -> (i32, i32) {
    %c0_i32 = arith.constant 0 : i32
    %c0_i32_0 = arith.constant 0 : i32
    %c0_i32_1 = arith.constant 0 : i32
    return %c0_i32, %c0_i32_0 : i32, i32
  }
  func.func @transform_2(%arg0: i32, %arg1: i32) -> (i32, i32) {
    %c0_i32 = arith.constant 0 : i32
    %c0_i32_0 = arith.constant 0 : i32
    %c0_i32_1 = arith.constant 0 : i32
    return %c0_i32, %c0_i32_0 : i32, i32
  }
  func.func @transform_3(%arg0: i32, %arg1: i32) -> (i32, i32) {
    %c0_i32 = arith.constant 0 : i32
    %c0_i32_0 = arith.constant 0 : i32
    %c0_i32_1 = arith.constant 0 : i32
    return %c0_i32, %c0_i32_0 : i32, i32
  }
  func.func @transform_4(%arg0: i32, %arg1: i32) -> (i32, i32) {
    %c0_i32 = arith.constant 0 : i32
    %c0_i32_0 = arith.constant 0 : i32
    %c0_i32_1 = arith.constant 0 : i32
    return %c0_i32, %c0_i32_0 : i32, i32
  }
  func.func @transform_5(%arg0: i32, %arg1: i32) -> (i32, i32, i32, i32) {
    %c0_i32 = arith.constant 0 : i32
    %c0_i32_0 = arith.constant 0 : i32
    %c0_i32_1 = arith.constant 0 : i32
    return %arg0, %arg1, %c0_i32, %c0_i32_0 : i32, i32, i32, i32
  }
}

</mosaic_0001>

<bundles_post_ra>
// kernel: vltenet_forward.10
= control target key start
LH: loop header
LB: loop body
LE: loop exit
PB: predicated region body
PF: predicated region fallthrough
CT: control target
= control target key end

     0   :  { %s999_s12 = smov 0   ;;  %s1166_s0 = inlined_call_operand.vmem [shape: bf16[512,27], index: 0, kind: input, shape index: {}]   ;;  %s1167_s1 = inlined_call_operand.vmem [shape: bf16[27,16], index: 1, kind: input, shape index: {}]   ;;  %s1168_s2 = inlined_call_operand.vmem [shape: f32[1,16], index: 2, kind: input, shape index: {}]   ;;  %s1169_s3 = inlined_call_operand.vmem [shape: bf16[512,16], index: 3, kind: output, shape index: {}]  }
   0x1 LB: > { %s775_s13 = sadd.s32 4294967295, %s976_s12   ;;  %p779_p0 = scmp.ge.s32.totalorder %s976_s12, 1  ;;  %s976_s12 = sphi %s999_s12, %s13_s12  }
   0x2   : > { %p138_p1 = scmp.lt.s32.totalorder %s976_s12, 3 }
   0x4   : > { %p139_p2 = pnand %p779_p0, %p138_p1 }
   0x5   : > { %s780_s16 = sshll.u32 (!%p139_p2), %s775_s13, 5 }
   0x6   : > { %142 = sbr.rel (%p139_p2) target bundleno = 255 (0xff), region = 32  ;;  %p163_p3 = scmp.lt.s32.totalorder (!%p139_p2), %s780_s16, 63 }
   0xb   : > { %v952_v0 = vld [vmem:[%s1167_s1 + $0x8] sm:$0x3f]   ;;  %vm358_vm0 = vcmask 1044480   ;;  %vm359_vm1 = vcmask 1045504   ;;  %v978_v1 = vmov 65535   ;;  %v953_v5 = vld [vmem:[%s1167_s1] sm:$0xff]  }
   0xc   : > { %v360_v2 = vsel %vm358_vm0, 4294967295, %v978_v1  ;;  %s1171_s16 = smov (!%p163_p3, %s780_s16), 63  ;;  %vm309_vm2 = vcmask 220160   ;;  %v1058_v22 = vld [vmem:[%s1168_s2] ss:$0 sm:$0xff]  ;;  %vm686_vm3 = vcmask 125952  }
   0xd   : > { %v361_v3 = vsel %vm359_vm1, %v360_v2, 0  ;;  %s781_s19 = sshll.u32 %s1171_s16, 2 }
   0xe   : > { %v363_v4 = vand.u32 %v952_v0, %v361_v3  ;;  %s1021_s22 = scalar_lea.vmem %s1166_s0, %s781_s19  ;;  %s1069_s27 = scalar_lea.vmem %s1169_s3, %s781_s19 }
   0xf   : > { %v954_v6 = vld [vmem:[%s1021_s22] sm:$0xff]   ;;  %v956_v8 = vld [vmem:[%s1021_s22 + $0x8] sm:$0xff]   ;;  %v958_v10 = vld [vmem:[%s1021_s22 + $0x10] sm:$0xff]  }
  0x10   : > { %903 = vmatprep.subr.bf16.mxu0 %v363_v4  ;;  %939 = vmatprep.subr.bf16.mxu1 %v363_v4  ;;  %v955_v7 = vld [vmem:[%s1021_s22 + $0x40] sm:$0xff]   ;;  %v957_v9 = vld [vmem:[%s1021_s22 + $0x48] sm:$0xff]   ;;  %v959_v11 = vld [vmem:[%s1021_s22 + $0x50] sm:$0xff]  }
  0x11   : > { %904 = vmatpush3.bf16.msra.mxu0 %v363_v4  ;;  %941 = vmatpush3.bf16.msra.mxu1 %v363_v4  ;;  %v960_v12 = vld [vmem:[%s1021_s22 + $0x18] sm:$0xff]   ;;  %v962_v14 = vld [vmem:[%s1021_s22 + $0x20] sm:$0xff]   ;;  %v964_v16 = vld [vmem:[%s1021_s22 + $0x28] sm:$0xff]  }
  0x12   : > { %905 = vmatprep.subr.bf16.mxu0 %v953_v5  ;;  %940 = vmatprep.subr.bf16.mxu1 %v953_v5  ;;  %v961_v13 = vld [vmem:[%s1021_s22 + $0x58] sm:$0xff]   ;;  %v963_v15 = vld [vmem:[%s1021_s22 + $0x60] sm:$0xff]   ;;  %v965_v17 = vld [vmem:[%s1021_s22 + $0x68] sm:$0xff]  }
  0x13   : > { %907 = vmatprep.mubr.msk.bf16.mxu0 %vm309_vm2, %v954_v6  ;;  %923 = vmatprep.mubr.msk.bf16.mxu1 %vm309_vm2, %v955_v7  ;;  %v966_v18 = vld [vmem:[%s1021_s22 + $0x30] sm:$0xff]   ;;  %v968_v20 = vld [vmem:[%s1021_s22 + $0x38] sm:$0xff]  }
  0x14   : > { %v967_v19 = vld [vmem:[%s1021_s22 + $0x70] sm:$0xff]   ;;  %v969_v21 = vld [vmem:[%s1021_s22 + $0x78] sm:$0xff]  }
  0x15   : > { %906 = vmatpush3.bf16.msra.mxu0 %v953_v5  ;;  %942 = vmatpush3.bf16.msra.mxu1 %v953_v5 }
  0x18   : > { %908 = vmatmul.mubr.msk.bf16.vlgmr.msra.gmra.mxu0 %vm309_vm2, %v956_v8  ;;  %924 = vmatmul.mubr.msk.bf16.vlgmr.msra.gmra.mxu1 %vm309_vm2, %v957_v9 }
  0x19   : > { %911 = vmatprep.mubr.msk.bf16.mxu0 %vm309_vm2, %v958_v10  ;;  %927 = vmatprep.mubr.msk.bf16.mxu1 %vm309_vm2, %v959_v11 }
  0x20   : > { %912 = vmatmul.mubr.msk.bf16.gmra.mxu0 %vm309_vm2, %v960_v12  ;;  %928 = vmatmul.mubr.msk.bf16.gmra.mxu1 %vm309_vm2, %v961_v13 }
  0x21   : > { %915 = vmatprep.mubr.msk.bf16.mxu0 %vm309_vm2, %v962_v14  ;;  %931 = vmatprep.mubr.msk.bf16.mxu1 %vm309_vm2, %v963_v15 }
  0x28   : > { %916 = vmatmul.mubr.msk.bf16.gmra.mxu0 %vm309_vm2, %v964_v16  ;;  %932 = vmatmul.mubr.msk.bf16.gmra.mxu1 %vm309_vm2, %v965_v17 }
  0x29   : > { %919 = vmatprep.mubr.msk.bf16.mxu0 %vm309_vm2, %v966_v18  ;;  %935 = vmatprep.mubr.msk.bf16.mxu1 %vm309_vm2, %v967_v19 }
  0x30   : > { %920 = vmatmul.mubr.msk.bf16.gmra.mxu0 %vm309_vm2, %v968_v20  ;;  %936 = vmatmul.mubr.msk.bf16.gmra.mxu1 %vm309_vm2, %v969_v21 }
  0xd8   : > { %v909_v23 = vpop.f32.mrf.mxu0  ;;  %v925_v24 = vpop.f32.mrf.mxu1 }
  0xd9   : > { %v408_v25 = vadd.f32 %v909_v23, %v1058_v22  ;;  %v472_v26 = vadd.f32 %v925_v24, %v1058_v22 }
  0xda   : > { %v399_v27 = vpop.f32.mrf.mxu0  ;;  %v463_v28 = vpop.f32.mrf.mxu1 }
  0xdb   : > { %v528_v29 = vmax.f32 %v408_v25, 0.0  ;;  %v544_v30 = vmax.f32 %v472_v26, 0.0  ;;  %v400_v31 = vadd.f32 %v1058_v22, %v399_v27  ;;  %v464_v32 = vadd.f32 %v1058_v22, %v463_v28 }
  0xdc   : > { %v910_v33 = vpop.f32.mrf.mxu0  ;;  %v926_v34 = vpop.f32.mrf.mxu1 }
  0xdd   : > { %v855_v35 = vpack.c.bf16 %v528_v29, %v528_v29  ;;  %v871_v36 = vpack.c.bf16 %v544_v30, %v544_v30  ;;  %v526_v37 = vmax.f32 %v400_v31, 0.0  ;;  %v542_v38 = vmax.f32 %v464_v32, 0.0 }
  0xde   : > { %v411_v39 = vadd.f32 %v910_v33, %v1058_v22  ;;  %v475_v40 = vadd.f32 %v926_v34, %v1058_v22  ;;  %v402_v41 = vpop.f32.mrf.mxu0  ;;  %v466_v42 = vpop.f32.mrf.mxu1 }
  0xdf   : > { %689 = vst.msk [vmem:[%s1069_s27 + $0x8] sm:$0xf] %vm686_vm3, %v855_v35  ;;  %705 = vst.msk [vmem:[%s1069_s27 + $0x48] sm:$0xf] %vm686_vm3, %v871_v36  ;;  %v853_v43 = vpack.c.bf16 %v526_v37, %v526_v37  ;;  %v869_v44 = vpack.c.bf16 %v542_v38, %v542_v38  ;;  %v403_v45 = vadd.f32 %v1058_v22, %v402_v41 }
  0xe0   : > { %v467_v46 = vadd.f32 %v1058_v22, %v466_v42  ;;  %v529_v47 = vmax.f32 %v411_v39, 0.0  ;;  %v545_v48 = vmax.f32 %v475_v40, 0.0  ;;  %v913_v49 = vpop.f32.mrf.mxu0  ;;  %v929_v50 = vpop.f32.mrf.mxu1 }
  0xe1   : > { %687 = vst.msk [vmem:[%s1069_s27] sm:$0xf] %vm686_vm3, %v853_v43  ;;  %703 = vst.msk [vmem:[%s1069_s27 + $0x40] sm:$0xf] %vm686_vm3, %v869_v44  ;;  %v527_v51 = vmax.f32 %v403_v45, 0.0  ;;  %v424_v53 = vadd.f32 %v913_v49, %v1058_v22  ;;  %v488_v54 = vadd.f32 %v929_v50, %v1058_v22 }
  0xe2   : > { %v543_v52 = vmax.f32 %v467_v46, 0.0  ;;  %v856_v55 = vpack.c.bf16 %v529_v47, %v529_v47  ;;  %v872_v56 = vpack.c.bf16 %v545_v48, %v545_v48  ;;  %v415_v57 = vpop.f32.mrf.mxu0  ;;  %v479_v58 = vpop.f32.mrf.mxu1 }
  0xe3   : > { %v854_v59 = vpack.c.bf16 %v527_v51, %v527_v51  ;;  %v532_v61 = vmax.f32 %v424_v53, 0.0  ;;  %v548_v62 = vmax.f32 %v488_v54, 0.0  ;;  %v416_v63 = vadd.f32 %v1058_v22, %v415_v57 }
  0xe4   : > { %v870_v60 = vpack.c.bf16 %v543_v52, %v543_v52  ;;  %690 = vst.msk [vmem:[%s1069_s27 + $0xc] sm:$0xf] %vm686_vm3, %v856_v55  ;;  %706 = vst.msk [vmem:[%s1069_s27 + $0x4c] sm:$0xf] %vm686_vm3, %v872_v56  ;;  %v480_v0 = vadd.f32 %v1058_v22, %v479_v58  ;;  %v914_v1 = vpop.f32.mrf.mxu0  ;;  %v930_v2 = vpop.f32.mrf.mxu1 }
  0xe5   : > { %688 = vst.msk [vmem:[%s1069_s27 + $0x4] sm:$0xf] %vm686_vm3, %v854_v59  ;;  %v859_v3 = vpack.c.bf16 %v532_v61, %v532_v61  ;;  %v875_v4 = vpack.c.bf16 %v548_v62, %v548_v62  ;;  %v427_v5 = vadd.f32 %v914_v1, %v1058_v22  ;;  %v491_v6 = vadd.f32 %v930_v2, %v1058_v22 }
  0xe6   : > { %704 = vst.msk [vmem:[%s1069_s27 + $0x44] sm:$0xf] %vm686_vm3, %v870_v60  ;;  %v530_v7 = vmax.f32 %v416_v63, 0.0  ;;  %v546_v8 = vmax.f32 %v480_v0, 0.0  ;;  %v418_v9 = vpop.f32.mrf.mxu0  ;;  %v482_v10 = vpop.f32.mrf.mxu1 }
  0xe7   : > { %693 = vst.msk [vmem:[%s1069_s27 + $0x18] sm:$0xf] %vm686_vm3, %v859_v3  ;;  %709 = vst.msk [vmem:[%s1069_s27 + $0x58] sm:$0xf] %vm686_vm3, %v875_v4  ;;  %v533_v11 = vmax.f32 %v427_v5, 0.0  ;;  %v549_v12 = vmax.f32 %v491_v6, 0.0  ;;  %v419_v13 = vadd.f32 %v1058_v22, %v418_v9  ;;  %v483_v14 = vadd.f32 %v1058_v22, %v482_v10 }
  0xe8   : > { %v857_v15 = vpack.c.bf16 %v530_v7, %v530_v7  ;;  %v873_v16 = vpack.c.bf16 %v546_v8, %v546_v8  ;;  %v917_v17 = vpop.f32.mrf.mxu0  ;;  %v933_v18 = vpop.f32.mrf.mxu1 }
  0xe9   : > { %v860_v19 = vpack.c.bf16 %v533_v11, %v533_v11  ;;  %v876_v20 = vpack.c.bf16 %v549_v12, %v549_v12  ;;  %v531_v21 = vmax.f32 %v419_v13, 0.0  ;;  %v547_v23 = vmax.f32 %v483_v14, 0.0 }
  0xea   : > { %691 = vst.msk [vmem:[%s1069_s27 + $0x10] sm:$0xf] %vm686_vm3, %v857_v15  ;;  %707 = vst.msk [vmem:[%s1069_s27 + $0x50] sm:$0xf] %vm686_vm3, %v873_v16  ;;  %v440_v24 = vadd.f32 %v917_v17, %v1058_v22  ;;  %v504_v25 = vadd.f32 %v933_v18, %v1058_v22  ;;  %v431_v26 = vpop.f32.mrf.mxu0  ;;  %v495_v27 = vpop.f32.mrf.mxu1 }
  0xeb   : > { %694 = vst.msk [vmem:[%s1069_s27 + $0x1c] sm:$0xf] %vm686_vm3, %v860_v19  ;;  %710 = vst.msk [vmem:[%s1069_s27 + $0x5c] sm:$0xf] %vm686_vm3, %v876_v20  ;;  %v858_v28 = vpack.c.bf16 %v531_v21, %v531_v21  ;;  %v874_v29 = vpack.c.bf16 %v547_v23, %v547_v23  ;;  %v432_v30 = vadd.f32 %v1058_v22, %v431_v26 }
  0xec   : > { %v496_v31 = vadd.f32 %v1058_v22, %v495_v27  ;;  %v536_v32 = vmax.f32 %v440_v24, 0.0  ;;  %v552_v33 = vmax.f32 %v504_v25, 0.0  ;;  %v918_v34 = vpop.f32.mrf.mxu0  ;;  %v934_v35 = vpop.f32.mrf.mxu1 }
  0xed   : > { %692 = vst.msk [vmem:[%s1069_s27 + $0x14] sm:$0xf] %vm686_vm3, %v858_v28  ;;  %708 = vst.msk [vmem:[%s1069_s27 + $0x54] sm:$0xf] %vm686_vm3, %v874_v29  ;;  %v534_v36 = vmax.f32 %v432_v30, 0.0  ;;  %v443_v38 = vadd.f32 %v918_v34, %v1058_v22  ;;  %v507_v39 = vadd.f32 %v934_v35, %v1058_v22 }
  0xee   : > { %v550_v37 = vmax.f32 %v496_v31, 0.0  ;;  %v863_v40 = vpack.c.bf16 %v536_v32, %v536_v32  ;;  %v879_v41 = vpack.c.bf16 %v552_v33, %v552_v33  ;;  %v434_v42 = vpop.f32.mrf.mxu0  ;;  %v498_v43 = vpop.f32.mrf.mxu1 }
  0xef   : > { %v861_v44 = vpack.c.bf16 %v534_v36, %v534_v36  ;;  %v537_v46 = vmax.f32 %v443_v38, 0.0  ;;  %v553_v47 = vmax.f32 %v507_v39, 0.0  ;;  %v435_v48 = vadd.f32 %v1058_v22, %v434_v42 }
  0xf0   : > { %v877_v45 = vpack.c.bf16 %v550_v37, %v550_v37  ;;  %697 = vst.msk [vmem:[%s1069_s27 + $0x28] sm:$0xf] %vm686_vm3, %v863_v40  ;;  %713 = vst.msk [vmem:[%s1069_s27 + $0x68] sm:$0xf] %vm686_vm3, %v879_v41  ;;  %v499_v49 = vadd.f32 %v1058_v22, %v498_v43  ;;  %v921_v50 = vpop.f32.mrf.mxu0  ;;  %v937_v51 = vpop.f32.mrf.mxu1 }
  0xf1   : > { %695 = vst.msk [vmem:[%s1069_s27 + $0x20] sm:$0xf] %vm686_vm3, %v861_v44  ;;  %v864_v52 = vpack.c.bf16 %v537_v46, %v537_v46  ;;  %v880_v53 = vpack.c.bf16 %v553_v47, %v553_v47  ;;  %v456_v54 = vadd.f32 %v921_v50, %v1058_v22  ;;  %v520_v55 = vadd.f32 %v937_v51, %v1058_v22 }
  0xf2   : > { %711 = vst.msk [vmem:[%s1069_s27 + $0x60] sm:$0xf] %vm686_vm3, %v877_v45  ;;  %v535_v56 = vmax.f32 %v435_v48, 0.0  ;;  %v551_v57 = vmax.f32 %v499_v49, 0.0  ;;  %v447_v58 = vpop.f32.mrf.mxu0  ;;  %v511_v59 = vpop.f32.mrf.mxu1 }
  0xf3   : > { %698 = vst.msk [vmem:[%s1069_s27 + $0x2c] sm:$0xf] %vm686_vm3, %v864_v52  ;;  %714 = vst.msk [vmem:[%s1069_s27 + $0x6c] sm:$0xf] %vm686_vm3, %v880_v53  ;;  %v540_v60 = vmax.f32 %v456_v54, 0.0  ;;  %v556_v61 = vmax.f32 %v520_v55, 0.0  ;;  %v448_v62 = vadd.f32 %v1058_v22, %v447_v58  ;;  %v512_v63 = vadd.f32 %v1058_v22, %v511_v59 }
  0xf4   : > { %v862_v0 = vpack.c.bf16 %v535_v56, %v535_v56  ;;  %v878_v1 = vpack.c.bf16 %v551_v57, %v551_v57  ;;  %v922_v2 = vpop.f32.mrf.mxu0  ;;  %v938_v3 = vpop.f32.mrf.mxu1 }
  0xf5   : > { %v867_v4 = vpack.c.bf16 %v540_v60, %v540_v60  ;;  %v883_v5 = vpack.c.bf16 %v556_v61, %v556_v61  ;;  %v538_v6 = vmax.f32 %v448_v62, 0.0  ;;  %v554_v7 = vmax.f32 %v512_v63, 0.0 }
  0xf6   : > { %696 = vst.msk [vmem:[%s1069_s27 + $0x24] sm:$0xf] %vm686_vm3, %v862_v0  ;;  %712 = vst.msk [vmem:[%s1069_s27 + $0x64] sm:$0xf] %vm686_vm3, %v878_v1  ;;  %v459_v8 = vadd.f32 %v922_v2, %v1058_v22  ;;  %v523_v9 = vadd.f32 %v938_v3, %v1058_v22  ;;  %v450_v10 = vpop.f32.mrf.mxu0  ;;  %v514_v11 = vpop.f32.mrf.mxu1 }
  0xf7   : > { %701 = vst.msk [vmem:[%s1069_s27 + $0x38] sm:$0xf] %vm686_vm3, %v867_v4  ;;  %717 = vst.msk [vmem:[%s1069_s27 + $0x78] sm:$0xf] %vm686_vm3, %v883_v5  ;;  %v865_v12 = vpack.c.bf16 %v538_v6, %v538_v6  ;;  %v881_v13 = vpack.c.bf16 %v554_v7, %v554_v7  ;;  %v451_v14 = vadd.f32 %v1058_v22, %v450_v10 }
  0xf8   : > { %v515_v15 = vadd.f32 %v1058_v22, %v514_v11  ;;  %v541_v16 = vmax.f32 %v459_v8, 0.0  ;;  %v557_v17 = vmax.f32 %v523_v9, 0.0 }
  0xf9   : > { %699 = vst.msk [vmem:[%s1069_s27 + $0x30] sm:$0xf] %vm686_vm3, %v865_v12  ;;  %715 = vst.msk [vmem:[%s1069_s27 + $0x70] sm:$0xf] %vm686_vm3, %v881_v13  ;;  %v539_v18 = vmax.f32 %v451_v14, 0.0 }
  0xfa   : > { %v555_v19 = vmax.f32 %v515_v15, 0.0  ;;  %v868_v20 = vpack.c.bf16 %v541_v16, %v541_v16  ;;  %v884_v21 = vpack.c.bf16 %v557_v17, %v557_v17 }
  0xfb   : > { %v866_v23 = vpack.c.bf16 %v539_v18, %v539_v18 }
  0xfc   : > { %v882_v24 = vpack.c.bf16 %v555_v19, %v555_v19  ;;  %702 = vst.msk [vmem:[%s1069_s27 + $0x3c] sm:$0xf] %vm686_vm3, %v868_v20  ;;  %718 = vst.msk [vmem:[%s1069_s27 + $0x7c] sm:$0xf] %vm686_vm3, %v884_v21 }
  0xfd   : > { %700 = vst.msk [vmem:[%s1069_s27 + $0x34] sm:$0xf] %vm686_vm3, %v866_v23 }
  0xfe   : > { %716 = vst.msk [vmem:[%s1069_s27 + $0x74] sm:$0xf] %vm686_vm3, %v882_v24 }
  0xff PF: > { %s13_s12 = sadd.s32 1, %s976_s12  }
 0x100   : > { %p10_p4 = scmp.ge.s32.totalorder %s13_s12, 4  }
 0x102   :  { %12 = sbr.rel (!%p10_p4) target bundleno = 1 (0x1), region = 62 }

// kernel: vltenet_forward.11
= control target key start
LH: loop header
LB: loop body
LE: loop exit
PB: predicated region body
PF: predicated region fallthrough
CT: control target
= control target key end

     0   :  { %s612_s12 = smov 0   ;;  %s695_s0 = inlined_call_operand.vmem [shape: bf16[128,144], index: 0, kind: input, shape index: {}]   ;;  %s696_s1 = inlined_call_operand.vmem [shape: bf16[144,18], index: 1, kind: input, shape index: {}]   ;;  %s697_s2 = inlined_call_operand.vmem [shape: f32[1,18], index: 2, kind: input, shape index: {}]   ;;  %s698_s3 = inlined_call_operand.vmem [shape: bf16[128,18], index: 3, kind: output, shape index: {}]  }
   0x1 LB: > { %s484_s13 = sadd.s32 4294967295, %s589_s12   ;;  %p488_p0 = scmp.ge.s32.totalorder %s589_s12, 1  ;;  %s589_s12 = sphi %s612_s12, %s13_s12  }
   0x2   : > { %p139_p1 = scmp.lt.s32.totalorder %s589_s12, 3 }
   0x4   : > { %p140_p2 = pnand %p488_p0, %p139_p1 }
   0x5   : > { %s489_s16 = sshll.u32 (!%p140_p2), %s484_s13, 3 }
   0x6   : > { %143 = sbr.rel (%p140_p2) target bundleno = 260 (0x104), region = 32  ;;  %p165_p3 = scmp.lt.s32.totalorder (!%p140_p2), %s489_s16, 15 }
   0xb   : > { %v562_v0 = vld [vmem:[%s696_s1 + $0x38] sm:$0xff]   ;;  %v591_v1 = vmov 0   ;;  %v563_v2 = vld [vmem:[%s696_s1 + $0x30] sm:$0xff]   ;;  %s700_s16 = smov (!%p165_p3, %s489_s16), 15  ;;  %v564_v3 = vld [vmem:[%s696_s1 + $0x28] sm:$0xff]   ;;  %vm301_vm0 = vcmask 130048  }
   0xc   : > { %314 = vmatprep.subr.bf16.mxu0 %v591_v1  ;;  %535 = vmatprep.subr.bf16.mxu1 %v591_v1  ;;  %s526_s21 = sshll.u32 %s700_s16, 3  ;;  %v565_v4 = vld [vmem:[%s696_s1 + $0x20] sm:$0xff]   ;;  %v566_v7 = vld [vmem:[%s696_s1 + $0x18] sm:$0xff]   ;;  %v567_v8 = vld [vmem:[%s696_s1 + $0x10] sm:$0xff]   ;;  %s493_s13 = sshll.u32 %s700_s16, 2  ;;  %vm419_vm1 = vcmask 142336  }
   0xd   : > { %315 = vmatpush1.bf16.msra.mxu0 %v562_v0  ;;  %544 = vmatpush1.bf16.msra.mxu1 %v562_v0  ;;  %s635_s24 = scalar_lea.vmem %s695_s0, %s526_s21  ;;  %v568_v9 = vld [vmem:[%s696_s1 + $0x8] sm:$0xff]   ;;  %v569_v10 = vld [vmem:[%s696_s1] sm:$0xff]   ;;  %s674_s17 = scalar_lea.vmem %s698_s3, %s493_s13 }
   0xe   : > { %316 = vmatprep.subr.bf16.mxu0 %v591_v1  ;;  %536 = vmatprep.subr.bf16.mxu1 %v591_v1  ;;  %v573_v5 = vld [vmem:[%s635_s24 + $0x4] ss:$8 sps:$4 sm:$0xff]   ;;  %v571_v12 = vld [vmem:[%s635_s24] ss:$8 sps:$4 sm:$0xff]   ;;  %v577_v14 = vld [vmem:[%s635_s24 + $0x14] ss:$8 sps:$4 sm:$0xff]  }
   0xf   : > { %v576_v6 = vld [vmem:[%s635_s24 + $0x24] ss:$8 sps:$4 sm:$0xff]   ;;  %512 = vmatprep.mubr.msk.bf16.mxu0 %vm301_vm0, %v573_v5  ;;  %v574_v13 = vld [vmem:[%s635_s24 + $0x20] ss:$8 sps:$4 sm:$0xff]   ;;  %v579_v15 = vld [vmem:[%s635_s24 + $0x34] ss:$8 sps:$4 sm:$0xff]  }
  0x10   : > { %514 = vmatprep.mubr.msk.bf16.mxu1 %vm301_vm0, %v576_v6  ;;  %v570_v11 = vld [vmem:[%s696_s1 + $0x40] sm:$0xff]   ;;  %v581_v16 = vld [vmem:[%s635_s24 + $0x10] ss:$8 sps:$4 sm:$0xff]  }
  0x11   : > { %317 = vmatpush1.bf16.msra.mxu0 %v563_v2  ;;  %545 = vmatpush1.bf16.msra.mxu1 %v563_v2  ;;  %v582_v17 = vld [vmem:[%s635_s24 + $0x30] ss:$8 sps:$4 sm:$0xff]   ;;  %v494_v18 = vld [vmem:[%s697_s2] ss:$0 sm:$0xff] }
  0x12   : > { %318 = vmatprep.subr.bf16.mxu0 %v591_v1  ;;  %537 = vmatprep.subr.bf16.mxu1 %v591_v1 }
  0x15   : > { %319 = vmatpush1.bf16.msra.mxu0 %v564_v3  ;;  %546 = vmatpush1.bf16.msra.mxu1 %v564_v3 }
  0x16   : > { %320 = vmatprep.subr.bf16.mxu0 %v591_v1  ;;  %538 = vmatprep.subr.bf16.mxu1 %v591_v1 }
  0x19   : > { %321 = vmatpush1.bf16.msra.mxu0 %v565_v4  ;;  %547 = vmatpush1.bf16.msra.mxu1 %v565_v4 }
  0x1a   : > { %322 = vmatprep.subr.bf16.mxu0 %v591_v1  ;;  %539 = vmatprep.subr.bf16.mxu1 %v591_v1 }
  0x1d   : > { %323 = vmatpush1.bf16.msra.mxu0 %v566_v7  ;;  %548 = vmatpush1.bf16.msra.mxu1 %v566_v7 }
  0x1e   : > { %324 = vmatprep.subr.bf16.mxu0 %v591_v1  ;;  %540 = vmatprep.subr.bf16.mxu1 %v591_v1 }
  0x21   : > { %325 = vmatpush1.bf16.msra.mxu0 %v567_v8  ;;  %549 = vmatpush1.bf16.msra.mxu1 %v567_v8 }
  0x22   : > { %326 = vmatprep.subr.bf16.mxu0 %v591_v1  ;;  %541 = vmatprep.subr.bf16.mxu1 %v591_v1 }
  0x25   : > { %327 = vmatpush1.bf16.msra.mxu0 %v568_v9  ;;  %550 = vmatpush1.bf16.msra.mxu1 %v568_v9 }
  0x26   : > { %328 = vmatprep.subr.bf16.mxu0 %v591_v1  ;;  %542 = vmatprep.subr.bf16.mxu1 %v591_v1 }
  0x29   : > { %329 = vmatpush1.bf16.msra.mxu0 %v569_v10  ;;  %551 = vmatpush1.bf16.msra.mxu1 %v569_v10 }
  0x2a   : > { %344 = vmatprep.subr.bf16.mxu0 %v591_v1  ;;  %543 = vmatprep.subr.bf16.mxu1 %v591_v1 }
  0x2d   : > { %345 = vmatpush2.bf16.msra.mxu0 %v570_v11  ;;  %552 = vmatpush2.bf16.msra.mxu1 %v570_v11 }
  0x30   : > { %347 = vmatmul.mubr.bf16.vlgmr.msra.gmra.mxu0 %v571_v12  ;;  %363 = vmatmul.mubr.bf16.vlgmr.msra.gmra.mxu1 %v574_v13 }
  0x31   : > { %513 = vmatprep.mubr.msk.bf16.mxu0 %vm301_vm0, %v577_v14  ;;  %515 = vmatprep.mubr.msk.bf16.mxu1 %vm301_vm0, %v579_v15 }
  0x38   : > { %355 = vmatmul.mubr.bf16.gmra.mxu0 %v581_v16  ;;  %371 = vmatmul.mubr.bf16.gmra.mxu1 %v582_v17 }
  0xf0   : > { %v348_v19 = vpop.f32.mrf.mxu0  ;;  %v364_v20 = vpop.f32.mrf.mxu1 }
  0xf1   : > { %v349_v21 = vadd.f32 %v494_v18, %v348_v19  ;;  %v365_v22 = vadd.f32 %v494_v18, %v364_v20 }
  0xf2   : > { %v350_v23 = vpop.f32.mrf.mxu0  ;;  %v366_v24 = vpop.f32.mrf.mxu1 }
  0xf3   : > { %v379_v25 = vmax.f32 %v349_v21, 0.0  ;;  %v383_v26 = vmax.f32 %v365_v22, 0.0 }
  0xf4   : > { %v351_v27 = vpop.f32.mrf.mxu0  ;;  %v367_v28 = vpop.f32.mrf.mxu1 }
  0xf5   : > { %v527_v29 = vpack.c.bf16 %v379_v25, %v379_v25  ;;  %v531_v30 = vpack.c.bf16 %v383_v26, %v383_v26  ;;  %v352_v31 = vadd.f32 %v494_v18, %v351_v27  ;;  %v368_v32 = vadd.f32 %v494_v18, %v367_v28 }
  0xf6   : > { %v353_v33 = vpop.f32.mrf.mxu0  ;;  %v369_v34 = vpop.f32.mrf.mxu1 }
  0xf7   : > { %420 = vst.msk [vmem:[%s674_s17] sm:$0xf] %vm419_vm1, %v527_v29  ;;  %424 = vst.msk [vmem:[%s674_s17 + $0x10] sm:$0xf] %vm419_vm1, %v531_v30  ;;  %v380_v35 = vmax.f32 %v352_v31, 0.0  ;;  %v384_v36 = vmax.f32 %v368_v32, 0.0 }
  0xf8   : > { %v356_v37 = vpop.f32.mrf.mxu0  ;;  %v372_v38 = vpop.f32.mrf.mxu1 }
  0xf9   : > { %v528_v39 = vpack.c.bf16 %v380_v35, %v380_v35  ;;  %v532_v40 = vpack.c.bf16 %v384_v36, %v384_v36  ;;  %v357_v41 = vadd.f32 %v494_v18, %v356_v37  ;;  %v373_v42 = vadd.f32 %v494_v18, %v372_v38 }
  0xfa   : > { %v358_v43 = vpop.f32.mrf.mxu0  ;;  %v374_v44 = vpop.f32.mrf.mxu1 }
  0xfb   : > { %421 = vst.msk [vmem:[%s674_s17 + $0x4] sm:$0xf] %vm419_vm1, %v528_v39  ;;  %425 = vst.msk [vmem:[%s674_s17 + $0x14] sm:$0xf] %vm419_vm1, %v532_v40  ;;  %v381_v45 = vmax.f32 %v357_v41, 0.0  ;;  %v385_v46 = vmax.f32 %v373_v42, 0.0 }
  0xfc   : > { %v359_v47 = vpop.f32.mrf.mxu0  ;;  %v375_v48 = vpop.f32.mrf.mxu1 }
  0xfd   : > { %v529_v49 = vpack.c.bf16 %v381_v45, %v381_v45  ;;  %v533_v50 = vpack.c.bf16 %v385_v46, %v385_v46  ;;  %v360_v51 = vadd.f32 %v494_v18, %v359_v47  ;;  %v376_v52 = vadd.f32 %v494_v18, %v375_v48 }
  0xfe   : > { %v361_v53 = vpop.f32.mrf.mxu0  ;;  %v377_v54 = vpop.f32.mrf.mxu1 }
  0xff   : > { %422 = vst.msk [vmem:[%s674_s17 + $0x8] sm:$0xf] %vm419_vm1, %v529_v49  ;;  %426 = vst.msk [vmem:[%s674_s17 + $0x18] sm:$0xf] %vm419_vm1, %v533_v50  ;;  %v382_v55 = vmax.f32 %v360_v51, 0.0  ;;  %v386_v56 = vmax.f32 %v376_v52, 0.0 }
 0x101   : > { %v530_v57 = vpack.c.bf16 %v382_v55, %v382_v55  ;;  %v534_v58 = vpack.c.bf16 %v386_v56, %v386_v56 }
 0x103   : > { %423 = vst.msk [vmem:[%s674_s17 + $0xc] sm:$0xf] %vm419_vm1, %v530_v57  ;;  %427 = vst.msk [vmem:[%s674_s17 + $0x1c] sm:$0xf] %vm419_vm1, %v534_v58 }
 0x104 PF: > { %s13_s12 = sadd.s32 1, %s589_s12  }
 0x105   : > { %p10_p4 = scmp.ge.s32.totalorder %s13_s12, 4  }
 0x107   :  { %12 = sbr.rel (!%p10_p4) target bundleno = 1 (0x1), region = 62 }

// kernel: vltenet_forward.12
= control target key start
LH: loop header
LB: loop body
LE: loop exit
PB: predicated region body
PF: predicated region fallthrough
CT: control target
= control target key end

     0   :  { %s482_s12 = smov 0   ;;  %s539_s0 = inlined_call_operand.vmem [shape: bf16[32,162], index: 0, kind: input, shape index: {}]   ;;  %s540_s1 = inlined_call_operand.vmem [shape: bf16[162,36], index: 1, kind: input, shape index: {}]   ;;  %s541_s2 = inlined_call_operand.vmem [shape: f32[1,36], index: 2, kind: input, shape index: {}]   ;;  %s542_s3 = inlined_call_operand.vmem [shape: bf16[32,36], index: 3, kind: output, shape index: {}]  }
   0x1 LB: > { %s398_s13 = sadd.s32 4294967295, %s459_s12   ;;  %p402_p0 = scmp.ge.s32.totalorder %s459_s12, 1  ;;  %s459_s12 = sphi %s482_s12, %s13_s12  }
   0x2   : > { %p139_p1 = scmp.lt.s32.totalorder %s459_s12, 3 }
   0x4   : > { %p140_p2 = pnand %p402_p0, %p139_p1 }
   0x5   : > { %s403_s18 = sshll.u32 (!%p140_p2), %s398_s13, 1 }
   0x6   : > { %143 = sbr.rel (%p140_p2) target bundleno = 260 (0x104), region = 32  ;;  %p165_p3 = scmp.lt.s32.totalorder (!%p140_p2), %s403_s18, 3 }
   0xb   : > { %v439_v0 = vld [vmem:[%s540_s1 + $0x38] sm:$0xff]   ;;  %v461_v1 = vmov 0   ;;  %v440_v2 = vld [vmem:[%s540_s1 + $0x30] sm:$0xff]   ;;  %s544_s18 = smov (!%p165_p3, %s403_s18), 3  ;;  %v441_v3 = vld [vmem:[%s540_s1 + $0x28] sm:$0xff]   ;;  %vm280_vm0 = vcmask 277504  }
   0xc   : > { %288 = vmatprep.subr.bf16.mxu0 %v461_v1  ;;  %s427_s21 = sshll.u32 %s544_s18, 3  ;;  %v442_v4 = vld [vmem:[%s540_s1 + $0x20] sm:$0xff]   ;;  %v443_v6 = vld [vmem:[%s540_s1 + $0x18] sm:$0xff]   ;;  %v444_v7 = vld [vmem:[%s540_s1 + $0x10] sm:$0xff]   ;;  %vm284_vm1 = vcmask 1040384   ;;  %s407_s17 = sshll.u32 %s544_s18, 2 }
   0xd   : > { %289 = vmatpush1.bf16.msra.mxu0 %v439_v0  ;;  %s169_s24 = scalar_lea.vmem %s539_s0, %s427_s21  ;;  %v445_v8 = vld [vmem:[%s540_s1 + $0x8] sm:$0xff]   ;;  %v446_v9 = vld [vmem:[%s540_s1] sm:$0xff]   ;;  %v447_v10 = vld [vmem:[%s540_s1 + $0x50] ss:$0 sps:$4 sm:$0x11]   ;;  %s175_s21 = scalar_lea.vmem %s542_s3, %s407_s17  ;;  %vm339_vm2 = vcmask 289792  }
   0xe   : > { %290 = vmatprep.subr.bf16.mxu0 %v461_v1  ;;  %v452_v5 = vld [vmem:[%s169_s24 + $0x4] ss:$8 sps:$4 sm:$0xff]   ;;  %v286_v11 = vsel %vm284_vm1, %v447_v10, 0  ;;  %v450_v14 = vld [vmem:[%s169_s24] ss:$8 sps:$4 sm:$0xff]  }
   0xf   : > { %422 = vmatprep.mubr.msk.bf16.mxu0 %vm280_vm0, %v452_v5  ;;  %v448_v12 = vld [vmem:[%s540_s1 + $0x48] sm:$0xff]   ;;  %v449_v13 = vld [vmem:[%s540_s1 + $0x40] sm:$0xff]  }
  0x10   : > { %v408_v15 = vld [vmem:[%s541_s2] ss:$0 sm:$0xff] }
  0x11   : > { %291 = vmatpush1.bf16.msra.mxu0 %v440_v2 }
  0x12   : > { %292 = vmatprep.subr.bf16.mxu0 %v461_v1 }
  0x15   : > { %293 = vmatpush1.bf16.msra.mxu0 %v441_v3 }
  0x16   : > { %294 = vmatprep.subr.bf16.mxu0 %v461_v1 }
  0x19   : > { %295 = vmatpush1.bf16.msra.mxu0 %v442_v4 }
  0x1a   : > { %296 = vmatprep.subr.bf16.mxu0 %v461_v1 }
  0x1d   : > { %297 = vmatpush1.bf16.msra.mxu0 %v443_v6 }
  0x1e   : > { %298 = vmatprep.subr.bf16.mxu0 %v461_v1 }
  0x21   : > { %299 = vmatpush1.bf16.msra.mxu0 %v444_v7 }
  0x22   : > { %300 = vmatprep.subr.bf16.mxu0 %v461_v1 }
  0x25   : > { %301 = vmatpush1.bf16.msra.mxu0 %v445_v8 }
  0x26   : > { %302 = vmatprep.subr.bf16.mxu0 %v461_v1 }
  0x29   : > { %303 = vmatpush1.bf16.msra.mxu0 %v446_v9 }
  0x2a   : > { %314 = vmatprep.subr.bf16.mxu0 %v461_v1 }
  0x2d   : > { %315 = vmatpush2.bf16.msra.mxu0 %v286_v11 }
  0x2e   : > { %316 = vmatprep.subr.bf16.mxu0 %v461_v1 }
  0x31   : > { %317 = vmatpush2.bf16.msra.mxu0 %v448_v12 }
  0x32   : > { %318 = vmatprep.subr.bf16.mxu0 %v461_v1 }
  0x35   : > { %319 = vmatpush2.bf16.msra.mxu0 %v449_v13 }
  0x38   : > { %321 = vmatmul.mubr.bf16.vlgmr.msra.gmra.mxu0 %v450_v14 }
  0xf8   : > { %v322_v16 = vpop.f32.mrf.mxu0 }
  0xf9   : > { %v323_v17 = vadd.f32 %v408_v15, %v322_v16 }
  0xfa   : > { %v324_v18 = vpop.f32.mrf.mxu0 }
  0xfb   : > { %v329_v19 = vmax.f32 %v323_v17, 0.0 }
  0xfc   : > { %v325_v20 = vpop.f32.mrf.mxu0 }
  0xfd   : > { %v428_v21 = vpack.c.bf16 %v329_v19, %v329_v19  ;;  %v326_v22 = vadd.f32 %v408_v15, %v325_v20 }
  0xfe   : > { %v327_v23 = vpop.f32.mrf.mxu0 }
  0xff   : > { %340 = vst.msk [vmem:[%s175_s21] sm:$0xf] %vm339_vm2, %v428_v21  ;;  %v330_v24 = vmax.f32 %v326_v22, 0.0 }
 0x101   : > { %v429_v25 = vpack.c.bf16 %v330_v24, %v330_v24 }
 0x103   : > { %341 = vst.msk [vmem:[%s175_s21 + $0x4] sm:$0xf] %vm339_vm2, %v429_v25 }
 0x104 PF: > { %s13_s12 = sadd.s32 1, %s459_s12  }
 0x105   : > { %p10_p4 = scmp.ge.s32.totalorder %s13_s12, 4  }
 0x107   :  { %12 = sbr.rel (!%p10_p4) target bundleno = 1 (0x1), region = 62 }

// kernel: vltenet_forward.13
= control target key start
LH: loop header
LB: loop body
LE: loop exit
PB: predicated region body
PF: predicated region fallthrough
CT: control target
= control target key end

     0   :  { %v388_v1 = vmov 0.0   ;;  %vm389_vm0 = vmmov 0   ;;  %vm202_vm1 = vcmask 1041408   ;;  %vm198_vm2 = vcmask 556032   ;;  %s485_s1 = inlined_call_operand.vmem [shape: bf16[324,72], index: 1, kind: input, shape index: {}]   ;;  %s486_s0 = inlined_call_operand.vmem [shape: bf16[8,324], index: 0, kind: input, shape index: {}]   ;;  %s487_s2 = inlined_call_operand.vmem [shape: f32[1,72], index: 2, kind: input, shape index: {}]   ;;  %s488_s3 = inlined_call_operand.vmem [shape: bf16[8,72], index: 3, kind: output, shape index: {}]  }
   0x1   :  { %v364_v0 = vld [vmem:[%s485_s1 + $0x78] sm:$0xff]   ;;  %348 = vmatprep.subr.bf16.mxu1 %v388_v1  ;;  %358 = vmatprep.mubr.msk.bf16.mxu1 %vm389_vm0, %v388_v1  ;;  %v366_v3 = vld [vmem:[%s485_s1 + $0x70] sm:$0xff]   ;;  %v368_v5 = vld [vmem:[%s485_s1 + $0x68] sm:$0xff]   ;;  %vm288_vm3 = vcmask 584704  }
   0x2   :  { %v365_v2 = vld [vmem:[%s485_s1 + $0x38] sm:$0xff]   ;;  %320 = vmatprep.subr.bf16.mxu0 %v364_v0  ;;  %v367_v4 = vld [vmem:[%s485_s1 + $0x30] sm:$0xff]   ;;  %v369_v6 = vld [vmem:[%s485_s1 + $0x28] sm:$0xff]  }
   0x3   :  { %321 = vmatpush3.bf16.msra.mxu0 %v365_v2  ;;  %v370_v7 = vld [vmem:[%s485_s1 + $0x60] sm:$0xff]   ;;  %v375_v11 = vld [vmem:[%s485_s1 + $0x98] sm:$0xff]   ;;  %v378_v14 = vld [vmem:[%s485_s1 + $0x90] sm:$0xff]  }
   0x4   :  { %322 = vmatprep.subr.bf16.mxu0 %v366_v3  ;;  %v372_v8 = vld [vmem:[%s485_s1 + $0xa0] ss:$0 sps:$4 sm:$0x33]   ;;  %v373_v12 = vld [vmem:[%s485_s1 + $0x58] sm:$0xff]   ;;  %v376_v15 = vld [vmem:[%s485_s1 + $0x50] sm:$0xff]  }
   0x5   :  { %v371_v9 = vld [vmem:[%s485_s1 + $0x20] sm:$0xff]   ;;  %v204_v10 = vsel %vm202_vm1, %v372_v8, 0  ;;  %v374_v13 = vld [vmem:[%s485_s1 + $0x18] sm:$0xff]   ;;  %v377_v16 = vld [vmem:[%s485_s1 + $0x10] sm:$0xff]  }
   0x6   :  { %349 = vmatpush3.bf16.msra.mxu1 %v204_v10  ;;  %v381_v17 = vld [vmem:[%s485_s1 + $0x88] sm:$0xff]   ;;  %v15_v19 = vld [vmem:[%s486_s0] sm:$0xff] }
   0x7   :  { %323 = vmatpush3.bf16.msra.mxu0 %v367_v4  ;;  %350 = vmatprep.subr.bf16.mxu1 %v388_v1  ;;  %v379_v18 = vld [vmem:[%s485_s1 + $0x48] sm:$0xff]   ;;  %v296_v20 = vcombine.high %v15_v19, %v15_v19  ;;  %v384_v22 = vld [vmem:[%s485_s1 + $0x80] sm:$0xff]   ;;  %v295_v26 = vcombine.low %v15_v19, %v15_v19 }
   0x8   :  { %324 = vmatprep.subr.bf16.mxu0 %v368_v5  ;;  %v380_v21 = vld [vmem:[%s485_s1 + $0x8] sm:$0xff]   ;;  %v382_v23 = vld [vmem:[%s485_s1 + $0x40] sm:$0xff]  }
   0x9   :  { %238 = vmatprep.mubr.bf16.mxu0 %v296_v20  ;;  %v387_v24 = vld [vmem:[%s486_s0 + $0x8] ss:$0 sps:$4 sm:$0xff]   ;;  %v383_v25 = vld [vmem:[%s485_s1] sm:$0xff]  }
   0xa   :  { %351 = vmatpush3.bf16.msra.mxu1 %v375_v11  ;;  %v294_v31 = vld [vmem:[%s487_s2] ss:$0 sm:$0xff] }
   0xb   :  { %325 = vmatpush3.bf16.msra.mxu0 %v369_v6  ;;  %352 = vmatprep.subr.bf16.mxu1 %v388_v1 }
   0xc   :  { %326 = vmatprep.subr.bf16.mxu0 %v370_v7 }
   0xe   :  { %353 = vmatpush3.bf16.msra.mxu1 %v378_v14 }
   0xf   :  { %327 = vmatpush3.bf16.msra.mxu0 %v371_v9  ;;  %354 = vmatprep.subr.bf16.mxu1 %v388_v1 }
  0x10   :  { %328 = vmatprep.subr.bf16.mxu0 %v373_v12 }
  0x12   :  { %355 = vmatpush3.bf16.msra.mxu1 %v381_v17 }
  0x13   :  { %329 = vmatpush3.bf16.msra.mxu0 %v374_v13  ;;  %356 = vmatprep.subr.bf16.mxu1 %v388_v1 }
  0x14   :  { %330 = vmatprep.subr.bf16.mxu0 %v376_v15 }
  0x16   :  { %357 = vmatpush3.bf16.msra.mxu1 %v384_v22 }
  0x17   :  { %331 = vmatpush3.bf16.msra.mxu0 %v377_v16 }
  0x18   :  { %332 = vmatprep.subr.bf16.mxu0 %v379_v18 }
  0x19   :  { %359 = vmatmul.mubr.msk.bf16.vlgmr.msra.gmra.mxu1 %vm198_vm2, %v387_v24 }
  0x1b   :  { %333 = vmatpush3.bf16.msra.mxu0 %v380_v21 }
  0x1c   :  { %334 = vmatprep.subr.bf16.mxu0 %v382_v23 }
  0x1f   :  { %335 = vmatpush3.bf16.msra.mxu0 %v383_v25 }
  0x22   :  { %239 = vmatmul.mubr.bf16.vlgmr.msra.gmra.mxu0 %v295_v26 }
  0xd9   :  { %v280_v27 = vpop.f32.mrf.mxu1 }
  0xdb   :  { %v360_v28 = vpop.f32.mrf.mxu1 }
  0xdd   :  { %v283_v30 = vpop.f32.mrf.mxu1 }
  0xdf   :  { %v361_v33 = vpop.f32.mrf.mxu1 }
  0xe2   :  { %v336_v29 = vpop.f32.mrf.mxu0 }
  0xe4   :  { %v337_v32 = vpop.f32.mrf.mxu0 }
  0xe5   :  { %v338_v34 = vadd.f32 %v337_v32, %v336_v29 }
  0xe6   :  { %v339_v35 = vpop.f32.mrf.mxu0 }
  0xe7   :  { %v241_v36 = vadd.f32 %v338_v34, %v294_v31 }
  0xe8   :  { %v340_v37 = vpop.f32.mrf.mxu0 }
  0xe9   :  { %v281_v38 = vadd.f32 %v280_v27, %v241_v36 }
  0xeb   :  { %v286_v39 = vmax.f32 %v281_v38, 0.0 }
  0xed   :  { %v287_v40 = vpack.c.bf16 %v286_v39, %v286_v39 }
  0xef   :  { %289 = vst.msk [vmem:[%s488_s3] sm:$0xf] %vm288_vm3, %v287_v40 }

// kernel: vltenet_forward.14
= control target key start
LH: loop header
LB: loop body
LE: loop exit
PB: predicated region body
PF: predicated region fallthrough
CT: control target
= control target key end

     0   :  { %vm536_vm0 = vcmask 64512   ;;  %vm540_vm1 = vcmask 1043456   ;;  %vm680_vm2 = vcmask 130052   ;;  %s1188_s1 = inlined_call_operand.vmem [shape: bf16[648,144], index: 1, kind: input, shape index: {}]   ;;  %s1189_s0 = inlined_call_operand.vmem [shape: bf16[8,648], index: 0, kind: input, shape index: {}]   ;;  %s1190_s2 = inlined_call_operand.vmem [shape: f32[1,144], index: 2, kind: input, shape index: {}]   ;;  %s1191_s3 = inlined_call_operand.vmem [shape: bf16[8,144], index: 3, kind: output, shape index: {}]  }
   0x1   :  { %v779_v0 = vld [vmem:[%s1188_s1 + $0x74] ss:$8 sps:$4 sm:$0xff]   ;;  %v781_v1 = vld [vmem:[%s1188_s1 + $0x70] ss:$8 sps:$4 sm:$0xff]   ;;  %v785_v4 = vld [vmem:[%s1188_s1 + $0x64] ss:$8 sps:$4 sm:$0xff]  }
   0x2   :  { %547 = vmatprep.subr.bf16.mxu0 %v779_v0  ;;  %v782_v2 = vld [vmem:[%s1188_s1 + $0x174] ss:$8 sps:$4 sm:$0xff]   ;;  %v784_v3 = vld [vmem:[%s1188_s1 + $0x170] ss:$8 sps:$4 sm:$0xff]   ;;  %v787_v5 = vld [vmem:[%s1188_s1 + $0x60] ss:$8 sps:$4 sm:$0xff]  }
   0x3   :  { %548 = vmatpush1.bf16.msra.mxu0 %v781_v1  ;;  %588 = vmatprep.subr.bf16.mxu1 %v782_v2  ;;  %v788_v6 = vld [vmem:[%s1188_s1 + $0x164] ss:$8 sps:$4 sm:$0xff]   ;;  %v790_v7 = vld [vmem:[%s1188_s1 + $0x160] ss:$8 sps:$4 sm:$0xff]   ;;  %v791_v8 = vld [vmem:[%s1188_s1 + $0x54] ss:$8 sps:$4 sm:$0xff]  }
   0x4   :  { %589 = vmatpush1.bf16.msra.mxu1 %v784_v3  ;;  %549 = vmatprep.subr.bf16.mxu0 %v785_v4  ;;  %v793_v9 = vld [vmem:[%s1188_s1 + $0x50] ss:$8 sps:$4 sm:$0xff]   ;;  %v794_v10 = vld [vmem:[%s1188_s1 + $0x154] ss:$8 sps:$4 sm:$0xff]   ;;  %v797_v11 = vld [vmem:[%s1188_s1 + $0x44] ss:$8 sps:$4 sm:$0xff]  }
   0x5   :  { %590 = vmatprep.subr.bf16.mxu1 %v788_v6  ;;  %v796_v12 = vld [vmem:[%s1188_s1 + $0x150] ss:$8 sps:$4 sm:$0xff]   ;;  %v800_v13 = vld [vmem:[%s1188_s1 + $0x144] ss:$8 sps:$4 sm:$0xff]   ;;  %v799_v14 = vld [vmem:[%s1188_s1 + $0x40] ss:$8 sps:$4 sm:$0xff]  }
   0x6   :  { %v803_v15 = vld [vmem:[%s1188_s1 + $0x34] ss:$8 sps:$4 sm:$0xff]   ;;  %v802_v16 = vld [vmem:[%s1188_s1 + $0x140] ss:$8 sps:$4 sm:$0xff]   ;;  %v805_v18 = vld [vmem:[%s1188_s1 + $0x30] ss:$8 sps:$4 sm:$0xff]  }
   0x7   :  { %550 = vmatpush1.bf16.msra.mxu0 %v787_v5  ;;  %v806_v17 = vld [vmem:[%s1188_s1 + $0x134] ss:$8 sps:$4 sm:$0xff]   ;;  %v809_v19 = vld [vmem:[%s1188_s1 + $0x24] ss:$8 sps:$4 sm:$0xff]   ;;  %v808_v20 = vld [vmem:[%s1188_s1 + $0x130] ss:$8 sps:$4 sm:$0xff]  }
   0x8   :  { %551 = vmatprep.subr.bf16.mxu0 %v791_v8  ;;  %591 = vmatpush1.bf16.msra.mxu1 %v790_v7  ;;  %v812_v21 = vld [vmem:[%s1188_s1 + $0x124] ss:$8 sps:$4 sm:$0xff]   ;;  %v811_v22 = vld [vmem:[%s1188_s1 + $0x20] ss:$8 sps:$4 sm:$0xff]   ;;  %v815_v23 = vld [vmem:[%s1188_s1 + $0x14] ss:$8 sps:$4 sm:$0xff]  }
   0x9   :  { %592 = vmatprep.subr.bf16.mxu1 %v794_v10  ;;  %v814_v24 = vld [vmem:[%s1188_s1 + $0x120] ss:$8 sps:$4 sm:$0xff]   ;;  %v818_v25 = vld [vmem:[%s1188_s1 + $0x114] ss:$8 sps:$4 sm:$0xff]   ;;  %v817_v26 = vld [vmem:[%s1188_s1 + $0x10] ss:$8 sps:$4 sm:$0xff]  }
   0xa   :  { %v821_v27 = vld [vmem:[%s1188_s1 + $0x4] ss:$8 sps:$4 sm:$0xff]   ;;  %v820_v28 = vld [vmem:[%s1188_s1 + $0x110] ss:$8 sps:$4 sm:$0xff]   ;;  %v823_v30 = vld [vmem:[%s1188_s1] ss:$8 sps:$4 sm:$0xff]  }
   0xb   :  { %552 = vmatpush1.bf16.msra.mxu0 %v793_v9  ;;  %v824_v29 = vld [vmem:[%s1188_s1 + $0x104] ss:$8 sps:$4 sm:$0xff]   ;;  %v827_v31 = vld [vmem:[%s1188_s1 + $0xf4] ss:$8 sps:$4 sm:$0xff]   ;;  %v826_v32 = vld [vmem:[%s1188_s1 + $0x100] ss:$8 sps:$4 sm:$0xff]  }
   0xc   :  { %553 = vmatprep.subr.bf16.mxu0 %v797_v11  ;;  %593 = vmatpush1.bf16.msra.mxu1 %v796_v12  ;;  %v830_v33 = vld [vmem:[%s1188_s1 + $0x1f4] ss:$8 sps:$4 sm:$0xff]   ;;  %v829_v34 = vld [vmem:[%s1188_s1 + $0xf0] ss:$8 sps:$4 sm:$0xff]   ;;  %v833_v35 = vld [vmem:[%s1188_s1 + $0xe4] ss:$8 sps:$4 sm:$0xff]  }
   0xd   :  { %594 = vmatprep.subr.bf16.mxu1 %v800_v13  ;;  %v832_v36 = vld [vmem:[%s1188_s1 + $0x1f0] ss:$8 sps:$4 sm:$0xff]   ;;  %v836_v37 = vld [vmem:[%s1188_s1 + $0x1e4] ss:$8 sps:$4 sm:$0xff]   ;;  %v835_v38 = vld [vmem:[%s1188_s1 + $0xe0] ss:$8 sps:$4 sm:$0xff]  }
   0xe   :  { %v839_v39 = vld [vmem:[%s1188_s1 + $0xd4] ss:$8 sps:$4 sm:$0xff]   ;;  %v838_v40 = vld [vmem:[%s1188_s1 + $0x1e0] ss:$8 sps:$4 sm:$0xff]   ;;  %v841_v42 = vld [vmem:[%s1188_s1 + $0xd0] ss:$8 sps:$4 sm:$0xff]  }
   0xf   :  { %554 = vmatpush1.bf16.msra.mxu0 %v799_v14  ;;  %v842_v41 = vld [vmem:[%s1188_s1 + $0x1d4] ss:$8 sps:$4 sm:$0xff]   ;;  %v845_v43 = vld [vmem:[%s1188_s1 + $0xc4] ss:$8 sps:$4 sm:$0xff]   ;;  %v844_v44 = vld [vmem:[%s1188_s1 + $0x1d0] ss:$8 sps:$4 sm:$0xff]  }
  0x10   :  { %555 = vmatprep.subr.bf16.mxu0 %v803_v15  ;;  %595 = vmatpush1.bf16.msra.mxu1 %v802_v16  ;;  %v848_v45 = vld [vmem:[%s1188_s1 + $0x1c4] ss:$8 sps:$4 sm:$0xff]   ;;  %v847_v47 = vld [vmem:[%s1188_s1 + $0xc0] ss:$8 sps:$4 sm:$0xff]   ;;  %v851_v49 = vld [vmem:[%s1188_s1 + $0xb4] ss:$8 sps:$4 sm:$0xff]  }
  0x11   :  { %596 = vmatprep.subr.bf16.mxu1 %v806_v17  ;;  %v15_v46 = vld [vmem:[%s1189_s0] sm:$0xff]  ;;  %v16_v50 = vld [vmem:[%s1189_s0 + $0x8] sm:$0xff]  ;;  %v854_v53 = vld [vmem:[%s1188_s1 + $0x1b4] ss:$8 sps:$4 sm:$0xff]  }
  0x12   :  { %v688_v48 = vcombine.high %v15_v46, %v15_v46  ;;  %v850_v51 = vld [vmem:[%s1188_s1 + $0x1c0] ss:$8 sps:$4 sm:$0xff]   ;;  %v690_v52 = vcombine.high %v16_v50, %v16_v50  ;;  %v853_v54 = vld [vmem:[%s1188_s1 + $0xb0] ss:$8 sps:$4 sm:$0xff]   ;;  %v857_v55 = vld [vmem:[%s1188_s1 + $0xa4] ss:$8 sps:$4 sm:$0xff]   ;;  %v687_v6 = vcombine.low %v15_v46, %v15_v46  ;;  %v689_v9 = vcombine.low %v16_v50, %v16_v50 }
  0x13   :  { %556 = vmatpush1.bf16.msra.mxu0 %v805_v18  ;;  %v856_v56 = vld [vmem:[%s1188_s1 + $0x1b0] ss:$8 sps:$4 sm:$0xff]   ;;  %v860_v57 = vld [vmem:[%s1188_s1 + $0x1a4] ss:$8 sps:$4 sm:$0xff]   ;;  %v859_v58 = vld [vmem:[%s1188_s1 + $0xa0] ss:$8 sps:$4 sm:$0xff]  }
  0x14   :  { %557 = vmatprep.subr.bf16.mxu0 %v809_v19  ;;  %597 = vmatpush1.bf16.msra.mxu1 %v808_v20  ;;  %v863_v59 = vld [vmem:[%s1188_s1 + $0x94] ss:$8 sps:$4 sm:$0xff]   ;;  %v862_v60 = vld [vmem:[%s1188_s1 + $0x1a0] ss:$8 sps:$4 sm:$0xff]   ;;  %v865_v62 = vld [vmem:[%s1188_s1 + $0x90] ss:$8 sps:$4 sm:$0xff]  }
  0x15   :  { %598 = vmatprep.subr.bf16.mxu1 %v812_v21  ;;  %579 = vmatprep.mubr.bf16.mxu0 %v688_v48  ;;  %v866_v61 = vld [vmem:[%s1188_s1 + $0x194] ss:$8 sps:$4 sm:$0xff]   ;;  %v869_v63 = vld [vmem:[%s1188_s1 + $0x84] ss:$8 sps:$4 sm:$0xff]   ;;  %v868_v0 = vld [vmem:[%s1188_s1 + $0x190] ss:$8 sps:$4 sm:$0xff]  }
  0x16   :  { %620 = vmatprep.mubr.bf16.mxu1 %v690_v52  ;;  %v872_v1 = vld [vmem:[%s1188_s1 + $0x184] ss:$8 sps:$4 sm:$0xff]   ;;  %v871_v2 = vld [vmem:[%s1188_s1 + $0x80] ss:$8 sps:$4 sm:$0xff]   ;;  %v17_v3 = vld [vmem:[%s1189_s0 + $0x10] sm:$0xff] }
  0x17   :  { %558 = vmatpush1.bf16.msra.mxu0 %v811_v22  ;;  %v881_v4 = vld [vmem:[%s1188_s1 + $0x274] ss:$8 sps:$4 sm:$0xff]   ;;  %v878_v5 = vld [vmem:[%s1188_s1 + $0x180] ss:$8 sps:$4 sm:$0xff]   ;;  %v692_v7 = vcombine.high %v17_v3, %v17_v3  ;;  %v879_v8 = vld [vmem:[%s1188_s1 + $0x270] ss:$8 sps:$4 sm:$0xff]  }
  0x18   :  { %559 = vmatprep.subr.bf16.mxu0 %v815_v23  ;;  %599 = vmatpush1.bf16.msra.mxu1 %v814_v24  ;;  %v886_v10 = vld [vmem:[%s1188_s1 + $0x264] ss:$8 sps:$4 sm:$0xff]   ;;  %v884_v11 = vld [vmem:[%s1188_s1 + $0x260] ss:$8 sps:$4 sm:$0xff]   ;;  %v889_v12 = vld [vmem:[%s1188_s1 + $0x254] ss:$8 sps:$4 sm:$0xff]  }
  0x19   :  { %600 = vmatprep.subr.bf16.mxu1 %v818_v25  ;;  %v887_v13 = vld [vmem:[%s1188_s1 + $0x250] ss:$8 sps:$4 sm:$0xff]   ;;  %v892_v14 = vld [vmem:[%s1188_s1 + $0x244] ss:$8 sps:$4 sm:$0xff]   ;;  %v890_v15 = vld [vmem:[%s1188_s1 + $0x240] ss:$8 sps:$4 sm:$0xff]  }
  0x1a   :  { %v895_v16 = vld [vmem:[%s1188_s1 + $0x234] ss:$8 sps:$4 sm:$0xff]   ;;  %v893_v17 = vld [vmem:[%s1188_s1 + $0x230] ss:$8 sps:$4 sm:$0xff]   ;;  %v898_v18 = vld [vmem:[%s1188_s1 + $0x224] ss:$8 sps:$4 sm:$0xff]  }
  0x1b   :  { %560 = vmatpush1.bf16.msra.mxu0 %v817_v26  ;;  %v896_v19 = vld [vmem:[%s1188_s1 + $0x220] ss:$8 sps:$4 sm:$0xff]   ;;  %v901_v20 = vld [vmem:[%s1188_s1 + $0x214] ss:$8 sps:$4 sm:$0xff]   ;;  %v899_v21 = vld [vmem:[%s1188_s1 + $0x210] ss:$8 sps:$4 sm:$0xff]  }
  0x1c   :  { %561 = vmatprep.subr.bf16.mxu0 %v821_v27  ;;  %601 = vmatpush1.bf16.msra.mxu1 %v820_v28  ;;  %v904_v22 = vld [vmem:[%s1188_s1 + $0x204] ss:$8 sps:$4 sm:$0xff]   ;;  %v902_v24 = vld [vmem:[%s1188_s1 + $0x200] ss:$8 sps:$4 sm:$0xff]   ;;  %v691_v28 = vcombine.low %v17_v3, %v17_v3  ;;  %vm681_vm3 = vmor %vm680_vm2, %vm540_vm1 }
  0x1d   :  { %602 = vmatprep.subr.bf16.mxu1 %v824_v29  ;;  %v98_v23 = vld [vmem:[%s1188_s1 + $0x280] sm:$0xff] }
  0x1e   :  { %v774_v25 = vcombine.high %v98_v23, %v98_v23  ;;  %v773_v26 = vcombine.low %v98_v23, %v98_v23 }
  0x1f   :  { %562 = vmatpush1.bf16.msra.mxu0 %v823_v30 }
  0x20   :  { %563 = vmatprep.subr.bf16.mxu0 %v827_v31  ;;  %603 = vmatpush1.bf16.msra.mxu1 %v826_v32  ;;  %v542_v27 = vsel %vm540_vm1, %v773_v26, 0 }
  0x21   :  { %604 = vmatprep.subr.bf16.mxu1 %v830_v33 }
  0x23   :  { %564 = vmatpush2.bf16.msra.mxu0 %v829_v34 }
  0x24   :  { %565 = vmatprep.subr.bf16.mxu0 %v833_v35  ;;  %605 = vmatpush2.bf16.msra.mxu1 %v832_v36 }
  0x25   :  { %606 = vmatprep.subr.bf16.mxu1 %v836_v37  ;;  %v101_v37 = vlaneseq }
  0x27   :  { %566 = vmatpush2.bf16.msra.mxu0 %v835_v38  ;;  %v102_v38 = vshrl.u32 %v101_v37, 7 }
  0x28   :  { %567 = vmatprep.subr.bf16.mxu0 %v839_v39  ;;  %607 = vmatpush2.bf16.msra.mxu1 %v838_v40  ;;  %v99_v40 = vld [vmem:[%s1190_s2] sm:$0x3] }
  0x29   :  { %608 = vmatprep.subr.bf16.mxu1 %v842_v41  ;;  %v103_v39 = vsub.s32 0, %v102_v38  ;;  %v107_v41 = vsub.s32 1, %v102_v38 }
  0x2b   :  { %568 = vmatpush2.bf16.msra.mxu0 %v841_v42  ;;  %v104_v42 = vrot.slane %v99_v40, %v103_v39 }
  0x2c   :  { %569 = vmatprep.subr.bf16.mxu0 %v845_v43  ;;  %609 = vmatpush2.bf16.msra.mxu1 %v844_v44  ;;  %v108_v43 = vrot.slane %v99_v40, %v107_v41 }
  0x2d   :  { %610 = vmatprep.subr.bf16.mxu1 %v848_v45 }
  0x2f   :  { %570 = vmatpush2.bf16.msra.mxu0 %v847_v47 }
  0x30   :  { %571 = vmatprep.subr.bf16.mxu0 %v851_v49  ;;  %611 = vmatpush2.bf16.msra.mxu1 %v850_v51 }
  0x31   :  { %612 = vmatprep.subr.bf16.mxu1 %v854_v53 }
  0x33   :  { %572 = vmatpush2.bf16.msra.mxu0 %v853_v54 }
  0x34   :  { %573 = vmatprep.subr.bf16.mxu0 %v857_v55  ;;  %613 = vmatpush2.bf16.msra.mxu1 %v856_v56 }
  0x35   :  { %614 = vmatprep.subr.bf16.mxu1 %v860_v57 }
  0x37   :  { %574 = vmatpush2.bf16.msra.mxu0 %v859_v58 }
  0x38   :  { %575 = vmatprep.subr.bf16.mxu0 %v863_v59  ;;  %615 = vmatpush2.bf16.msra.mxu1 %v862_v60 }
  0x39   :  { %616 = vmatprep.subr.bf16.mxu1 %v866_v61 }
  0x3b   :  { %576 = vmatpush2.bf16.msra.mxu0 %v865_v62 }
  0x3c   :  { %577 = vmatprep.subr.bf16.mxu0 %v869_v63  ;;  %617 = vmatpush2.bf16.msra.mxu1 %v868_v0 }
  0x3d   :  { %618 = vmatprep.subr.bf16.mxu1 %v872_v1 }
  0x3f   :  { %578 = vmatpush2.bf16.msra.mxu0 %v871_v2 }
  0x40   :  { %629 = vmatprep.subr.bf16.mxu0 %v881_v4  ;;  %619 = vmatpush2.bf16.msra.mxu1 %v878_v5 }
  0x42   :  { %580 = vmatmul.mubr.bf16.vlgmr.msra.gmra.mxu0 %v687_v6 }
  0x43   :  { %630 = vmatpush1.bf16.msra.mxu0 %v879_v8  ;;  %776 = vmatprep.mubr.msk.bf16.mxu0 %vm536_vm0, %v692_v7 }
  0x44   :  { %621 = vmatmul.mubr.bf16.vlgmr.msra.gmra.mxu1 %v689_v9  ;;  %631 = vmatprep.subr.bf16.mxu0 %v886_v10 }
  0x47   :  { %632 = vmatpush1.bf16.msra.mxu0 %v884_v11 }
  0x48   :  { %633 = vmatprep.subr.bf16.mxu0 %v889_v12 }
  0x4b   :  { %634 = vmatpush1.bf16.msra.mxu0 %v887_v13 }
  0x4c   :  { %635 = vmatprep.subr.bf16.mxu0 %v892_v14 }
  0x4f   :  { %636 = vmatpush1.bf16.msra.mxu0 %v890_v15 }
  0x50   :  { %637 = vmatprep.subr.bf16.mxu0 %v895_v16 }
  0x53   :  { %638 = vmatpush1.bf16.msra.mxu0 %v893_v17 }
  0x54   :  { %639 = vmatprep.subr.bf16.mxu0 %v898_v18 }
  0x57   :  { %640 = vmatpush1.bf16.msra.mxu0 %v896_v19 }
  0x58   :  { %641 = vmatprep.subr.bf16.mxu0 %v901_v20 }
  0x5b   :  { %642 = vmatpush1.bf16.msra.mxu0 %v899_v21 }
  0x5c   :  { %643 = vmatprep.subr.bf16.mxu0 %v904_v22 }
  0x5f   :  { %644 = vmatpush1.bf16.msra.mxu0 %v902_v24 }
  0x60   :  { %775 = vmatprep.subr.msk.bf16.mxu0 %vm540_vm1, %v774_v25 }
  0x63   :  { %660 = vmatpush2.bf16.msra.mxu0 %v542_v27 }
  0x66   :  { %662 = vmatmul.mubr.bf16.vlgmr.msra.gmra.mxu0 %v691_v28 }
 0x102   :  { %v581_v29 = vpop.f32.mrf.mxu0 }
 0x103   :  { %v582_v44 = vadd.f32 %v581_v29, %v104_v42 }
 0x104   :  { %v583_v30 = vpop.f32.mrf.mxu0  ;;  %v622_v31 = vpop.f32.mrf.mxu1 }
 0x105   :  { %v584_v45 = vadd.f32 %v583_v30, %v108_v43  ;;  %v623_v46 = vadd.f32 %v622_v31, %v582_v44 }
 0x106   :  { %v585_v32 = vpop.f32.mrf.mxu0  ;;  %v624_v33 = vpop.f32.mrf.mxu1 }
 0x107   :  { %v625_v48 = vadd.f32 %v624_v33, %v584_v45 }
 0x108   :  { %v586_v34 = vpop.f32.mrf.mxu0  ;;  %v626_v35 = vpop.f32.mrf.mxu1 }
 0x10a   :  { %v627_v36 = vpop.f32.mrf.mxu1 }
 0x126   :  { %v663_v47 = vpop.f32.mrf.mxu0 }
 0x127   :  { %v664_v49 = vadd.f32 %v663_v47, %v623_v46 }
 0x128   :  { %v665_v50 = vpop.f32.mrf.mxu0 }
 0x129   :  { %v666_v51 = vadd.f32 %v665_v50, %v625_v48  ;;  %v670_v53 = vmax.f32 %v664_v49, 0.0 }
 0x12a   :  { %v667_v52 = vpop.f32.mrf.mxu0 }
 0x12b   :  { %v671_v54 = vmax.f32 %v666_v51, 0.0 }
 0x12c   :  { %v668_v55 = vpop.f32.mrf.mxu0 }
 0x12d   :  { %v778_v56 = vpack.c.bf16 %v671_v54, %v670_v53 }
 0x12f   :  { %682 = vst.msk [vmem:[%s1191_s3] sm:$0xff] %vm681_vm3, %v778_v56 }

// kernel: vltenet_forward.17
= control target key start
LH: loop header
LB: loop body
LE: loop exit
PB: predicated region body
PF: predicated region fallthrough
CT: control target
= control target key end

     0   :  { %vm63_vm0 = vcmask 1043456   ;;  %v148_v0 = vmov 0.0   ;;  %vm149_vm1 = vmmov 0   ;;  %vm59_vm2 = vcmask 588800   ;;  %s194_s1 = inlined_call_operand.vmem [shape: bf16[72,64], index: 1, kind: input, shape index: {}]   ;;  %s195_s0 = inlined_call_operand.vmem [shape: bf16[8,72], index: 0, kind: input, shape index: {}]   ;;  %s196_s2 = inlined_call_operand.vmem [shape: f32[1,64], index: 2, kind: input, shape index: {}]   ;;  %s197_s3 = inlined_call_operand.vmem [shape: bf16[8,64], index: 3, kind: output, shape index: {}]  }
   0x1   :  { %127 = vmatprep.subr.bf16.mxu0 %v148_v0  ;;  %v143_v1 = vld [vmem:[%s194_s1 + $0x20] ss:$0 sps:$4 sm:$0xff]   ;;  %137 = vmatprep.mubr.msk.bf16.mxu0 %vm149_vm1, %v148_v0  ;;  %v144_v3 = vld [vmem:[%s194_s1 + $0x18] sm:$0xff]   ;;  %v145_v4 = vld [vmem:[%s194_s1 + $0x10] sm:$0xff]   ;;  %vm108_vm3 = vcmask 519168  }
   0x2   :  { %v65_v2 = vsel %vm63_vm0, %v143_v1, 0  ;;  %v146_v5 = vld [vmem:[%s194_s1 + $0x8] sm:$0xff]   ;;  %v147_v6 = vld [vmem:[%s194_s1] sm:$0xff]  }
   0x3   :  { %128 = vmatpush3.bf16.msra.mxu0 %v65_v2  ;;  %v15_v7 = vld [vmem:[%s195_s0] sm:$0xf] }
   0x4   :  { %129 = vmatprep.subr.bf16.mxu0 %v148_v0  ;;  %v114_v8 = vld [vmem:[%s196_s2] ss:$0 sm:$0xff] }
   0x7   :  { %130 = vmatpush3.bf16.msra.mxu0 %v144_v3 }
   0x8   :  { %131 = vmatprep.subr.bf16.mxu0 %v148_v0 }
   0xb   :  { %132 = vmatpush3.bf16.msra.mxu0 %v145_v4 }
   0xc   :  { %133 = vmatprep.subr.bf16.mxu0 %v148_v0 }
   0xf   :  { %134 = vmatpush3.bf16.msra.mxu0 %v146_v5 }
  0x10   :  { %135 = vmatprep.subr.bf16.mxu0 %v148_v0 }
  0x13   :  { %136 = vmatpush3.bf16.msra.mxu0 %v147_v6 }
  0x16   :  { %138 = vmatmul.mubr.msk.bf16.vlgmr.msra.gmra.mxu0 %vm59_vm2, %v15_v7 }
  0xd6   :  { %v101_v9 = vpop.f32.mrf.mxu0 }
  0xd7   :  { %v102_v10 = vadd.f32 %v114_v8, %v101_v9 }
  0xd8   :  { %v139_v11 = vpop.f32.mrf.mxu0 }
  0xd9   :  { %v107_v12 = vpack.c.bf16 %v102_v10, %v102_v10 }
  0xda   :  { %v104_v13 = vpop.f32.mrf.mxu0 }
  0xdb   :  { %109 = vst.msk [vmem:[%s197_s3] sm:$0xf] %vm108_vm3, %v107_v12 }
  0xdc   :  { %v140_v14 = vpop.f32.mrf.mxu0 }

// kernel: vltenet_forward.18
= control target key start
LH: loop header
LB: loop body
LE: loop exit
PB: predicated region body
PF: predicated region fallthrough
CT: control target
= control target key end

     0   :  { %v177_v0 = vmov 0   ;;  %vm101_vm0 = vcmask 130048   ;;  %vm146_vm1 = vcmask 519168   ;;  %s234_s1 = inlined_call_operand.vmem [shape: bf16[144,64], index: 1, kind: input, shape index: {}]   ;;  %s235_s0 = inlined_call_operand.vmem [shape: bf16[8,144], index: 0, kind: input, shape index: {}]   ;;  %s236_s2 = inlined_call_operand.vmem [shape: f32[1,64], index: 2, kind: input, shape index: {}]   ;;  %s237_s3 = inlined_call_operand.vmem [shape: bf16[8,64], index: 3, kind: output, shape index: {}]  }
   0x1   :  { %105 = vmatprep.subr.bf16.mxu0 %v177_v0  ;;  %v166_v1 = vld [vmem:[%s234_s1 + $0x38] sm:$0xff]   ;;  %v167_v2 = vld [vmem:[%s234_s1 + $0x30] sm:$0xff]   ;;  %v168_v3 = vld [vmem:[%s234_s1 + $0x28] sm:$0xff]  }
   0x2   :  { %106 = vmatpush1.bf16.msra.mxu0 %v166_v1  ;;  %v15_v4 = vld [vmem:[%s235_s0] sm:$0xff]  ;;  %v170_v7 = vld [vmem:[%s234_s1 + $0x18] sm:$0xff]   ;;  %v171_v8 = vld [vmem:[%s234_s1 + $0x10] sm:$0xff]  }
   0x3   :  { %107 = vmatprep.subr.bf16.mxu0 %v177_v0  ;;  %v169_v5 = vld [vmem:[%s234_s1 + $0x20] sm:$0xff]   ;;  %v154_v6 = vcombine.high %v15_v4, %v15_v4  ;;  %v172_v9 = vld [vmem:[%s234_s1 + $0x8] sm:$0xff]   ;;  %v153_v12 = vcombine.low %v15_v4, %v15_v4 }
   0x4   :  { %v173_v10 = vld [vmem:[%s234_s1] sm:$0xff]  }
   0x5   :  { %164 = vmatprep.mubr.msk.bf16.mxu0 %vm101_vm0, %v154_v6  ;;  %v174_v11 = vld [vmem:[%s234_s1 + $0x40] sm:$0xff]  }
   0x6   :  { %108 = vmatpush1.bf16.msra.mxu0 %v167_v2  ;;  %v152_v13 = vld [vmem:[%s236_s2] ss:$0 sm:$0xff] }
   0x7   :  { %109 = vmatprep.subr.bf16.mxu0 %v177_v0 }
   0xa   :  { %110 = vmatpush1.bf16.msra.mxu0 %v168_v3 }
   0xb   :  { %111 = vmatprep.subr.bf16.mxu0 %v177_v0 }
   0xe   :  { %112 = vmatpush1.bf16.msra.mxu0 %v169_v5 }
   0xf   :  { %113 = vmatprep.subr.bf16.mxu0 %v177_v0 }
  0x12   :  { %114 = vmatpush1.bf16.msra.mxu0 %v170_v7 }
  0x13   :  { %115 = vmatprep.subr.bf16.mxu0 %v177_v0 }
  0x16   :  { %116 = vmatpush1.bf16.msra.mxu0 %v171_v8 }
  0x17   :  { %117 = vmatprep.subr.bf16.mxu0 %v177_v0 }
  0x1a   :  { %118 = vmatpush1.bf16.msra.mxu0 %v172_v9 }
  0x1b   :  { %119 = vmatprep.subr.bf16.mxu0 %v177_v0 }
  0x1e   :  { %120 = vmatpush1.bf16.msra.mxu0 %v173_v10 }
  0x1f   :  { %135 = vmatprep.subr.bf16.mxu0 %v177_v0 }
  0x22   :  { %136 = vmatpush2.bf16.msra.mxu0 %v174_v11 }
  0x25   :  { %138 = vmatmul.mubr.bf16.vlgmr.msra.gmra.mxu0 %v153_v12 }
  0xe5   :  { %v139_v14 = vpop.f32.mrf.mxu0 }
  0xe6   :  { %v140_v15 = vadd.f32 %v152_v13, %v139_v14 }
  0xe7   :  { %v141_v16 = vpop.f32.mrf.mxu0 }
  0xe8   :  { %v145_v17 = vpack.c.bf16 %v140_v15, %v140_v15 }
  0xe9   :  { %v142_v18 = vpop.f32.mrf.mxu0 }
  0xea   :  { %147 = vst.msk [vmem:[%s237_s3] sm:$0xf] %vm146_vm1, %v145_v17 }
  0xeb   :  { %v143_v19 = vpop.f32.mrf.mxu0 }

// kernel: vltenet_forward.16
= control target key start
LH: loop header
LB: loop body
LE: loop exit
PB: predicated region body
PF: predicated region fallthrough
CT: control target
= control target key end

     0   :  { %s404_s12 = smov 0   ;;  %s433_s0 = inlined_call_operand.vmem [shape: bf16[32,36], index: 0, kind: input, shape index: {}]   ;;  %s434_s1 = inlined_call_operand.vmem [shape: bf16[36,64], index: 1, kind: input, shape index: {}]   ;;  %s435_s2 = inlined_call_operand.vmem [shape: f32[1,64], index: 2, kind: input, shape index: {}]   ;;  %s436_s3 = inlined_call_operand.vmem [shape: bf16[32,64], index: 3, kind: output, shape index: {}]  }
   0x1 LB: > { %s325_s13 = sadd.s32 4294967295, %s380_s12   ;;  %p329_p0 = scmp.ge.s32.totalorder %s380_s12, 1  ;;  %s380_s12 = sphi %s404_s12, %s13_s12  }
   0x2   : > { %p138_p1 = scmp.lt.s32.totalorder %s380_s12, 3 }
   0x4   : > { %p139_p2 = pnand %p329_p0, %p138_p1 }
   0x5   : > { %s330_s18 = sshll.u32 (!%p139_p2), %s325_s13, 1 }
   0x6   : > { %142 = sbr.rel (%p139_p2) target bundleno = 226 (0xe2), region = 32  ;;  %p163_p3 = scmp.lt.s32.totalorder (!%p139_p2), %s330_s18, 3 }
   0xb   : > { %v370_v0 = vld [vmem:[%s434_s1 + $0x10] ss:$0 sps:$4 sm:$0x33]   ;;  %v382_v1 = vmov 0.0   ;;  %vm213_vm0 = vcmask 1041408   ;;  %v371_v3 = vld [vmem:[%s434_s1 + $0x8] sm:$0xff]  }
   0xc   : > { %350 = vmatprep.subr.bf16.mxu0 %v382_v1  ;;  %v215_v2 = vsel %vm213_vm0, %v370_v0, 0  ;;  %vm383_vm1 = vmmov 0   ;;  %s438_s18 = smov (!%p163_p3, %s330_s18), 3  ;;  %v372_v4 = vld [vmem:[%s434_s1] sm:$0xff]   ;;  %vm209_vm2 = vcmask 293888   ;;  %vm266_vm3 = vcmask 519168  }
   0xd   : > { %351 = vmatpush3.bf16.msra.mxu0 %v215_v2  ;;  %356 = vmatprep.mubr.msk.bf16.mxu0 %vm383_vm1, %v382_v1  ;;  %s331_s21 = sshll.u32 %s438_s18, 2  ;;  %v334_v6 = vld [vmem:[%s435_s2] ss:$0 sm:$0xff] }
   0xe   : > { %352 = vmatprep.subr.bf16.mxu0 %v382_v1  ;;  %s166_s24 = scalar_lea.vmem %s433_s0, %s331_s21  ;;  %s172_s29 = scalar_lea.vmem %s436_s3, %s331_s21 }
   0xf   : > { %v373_v5 = vld [vmem:[%s166_s24] sm:$0xff]  }
  0x11   : > { %353 = vmatpush3.bf16.msra.mxu0 %v371_v3 }
  0x12   : > { %354 = vmatprep.subr.bf16.mxu0 %v382_v1 }
  0x15   : > { %355 = vmatpush3.bf16.msra.mxu0 %v372_v4 }
  0x18   : > { %357 = vmatmul.mubr.msk.bf16.vlgmr.msra.gmra.mxu0 %vm209_vm2, %v373_v5 }
  0xd8   : > { %v251_v7 = vpop.f32.mrf.mxu0 }
  0xd9   : > { %v252_v8 = vadd.f32 %v334_v6, %v251_v7 }
  0xda   : > { %v358_v9 = vpop.f32.mrf.mxu0 }
  0xdb   : > { %v344_v10 = vpack.c.bf16 %v252_v8, %v252_v8 }
  0xdc   : > { %v254_v11 = vpop.f32.mrf.mxu0 }
  0xdd   : > { %267 = vst.msk [vmem:[%s172_s29] sm:$0xf] %vm266_vm3, %v344_v10  ;;  %v255_v12 = vadd.f32 %v334_v6, %v254_v11 }
  0xde   : > { %v359_v13 = vpop.f32.mrf.mxu0 }
  0xdf   : > { %v345_v14 = vpack.c.bf16 %v255_v12, %v255_v12 }
  0xe1   : > { %268 = vst.msk [vmem:[%s172_s29 + $0x4] sm:$0xf] %vm266_vm3, %v345_v14 }
  0xe2 PF: > { %s13_s12 = sadd.s32 1, %s380_s12  }
  0xe3   : > { %p10_p4 = scmp.ge.s32.totalorder %s13_s12, 4  }
  0xe5   :  { %12 = sbr.rel (!%p10_p4) target bundleno = 1 (0x1), region = 62 }

// kernel: vltenet_forward.15
= control target key start
LH: loop header
LB: loop body
LE: loop exit
PB: predicated region body
PF: predicated region fallthrough
CT: control target
= control target key end

     0   :  { %s505_s12 = smov 0   ;;  %s539_s0 = inlined_call_operand.vmem [shape: bf16[128,18], index: 0, kind: input, shape index: {}]   ;;  %s540_s1 = inlined_call_operand.vmem [shape: bf16[18,64], index: 1, kind: input, shape index: {}]   ;;  %s541_s2 = inlined_call_operand.vmem [shape: f32[1,64], index: 2, kind: input, shape index: {}]   ;;  %s542_s3 = inlined_call_operand.vmem [shape: bf16[128,64], index: 3, kind: output, shape index: {}]  }
   0x1 LB: > { %s401_s13 = sadd.s32 4294967295, %s483_s12   ;;  %p405_p0 = scmp.ge.s32.totalorder %s483_s12, 1  ;;  %s483_s12 = sphi %s505_s12, %s13_s12  }
   0x2   : > { %p138_p1 = scmp.lt.s32.totalorder %s483_s12, 3 }
   0x4   : > { %p139_p2 = pnand %p405_p0, %p138_p1 }
   0x5   : > { %s406_s18 = sshll.u32 (!%p139_p2), %s401_s13, 3 }
   0x6   : > { %142 = sbr.rel (%p139_p2) target bundleno = 224 (0xe0), region = 32  ;;  %p163_p3 = scmp.lt.s32.totalorder (!%p139_p2), %s406_s18, 15 }
   0xb   : > { %v471_v0 = vld [vmem:[%s540_s1 + $0x8] ss:$0 sps:$4 sm:$0x11]   ;;  %vm235_vm0 = vcmask 1040384   ;;  %v472_v1 = vld [vmem:[%s540_s1] sm:$0xff]   ;;  %s544_s18 = smov (!%p163_p3, %s406_s18), 15 }
   0xc   : > { %461 = vmatprep.subr.msk.bf16.mxu0 %vm235_vm0, %v471_v0  ;;  %462 = vmatprep.subr.msk.bf16.mxu1 %vm235_vm0, %v471_v0  ;;  %v237_v2 = vsel %vm235_vm0, %v471_v0, 0  ;;  %s407_s19 = sshll.u32 %s544_s18, 2  ;;  %vm222_vm1 = vcmask 146432   ;;  %v410_v7 = vld [vmem:[%s541_s2] ss:$0 sm:$0xff]  ;;  %vm336_vm2 = vcmask 519168  }
   0xd   : > { %446 = vmatpush3.bf16.msra.mxu0 %v237_v2  ;;  %459 = vmatpush3.bf16.msra.mxu1 %v237_v2  ;;  %s166_s22 = scalar_lea.vmem %s539_s0, %s407_s19  ;;  %s172_s27 = scalar_lea.vmem %s542_s3, %s407_s19 }
   0xe   : > { %447 = vmatprep.subr.bf16.mxu0 %v472_v1  ;;  %458 = vmatprep.subr.bf16.mxu1 %v472_v1  ;;  %v473_v3 = vld [vmem:[%s166_s22] sm:$0xff]   ;;  %v474_v4 = vld [vmem:[%s166_s22 + $0x10] sm:$0xff]   ;;  %v475_v5 = vld [vmem:[%s166_s22 + $0x8] sm:$0xff]  }
   0xf   : > { %449 = vmatprep.mubr.msk.bf16.mxu0 %vm222_vm1, %v473_v3  ;;  %453 = vmatprep.mubr.msk.bf16.mxu1 %vm222_vm1, %v474_v4  ;;  %v476_v6 = vld [vmem:[%s166_s22 + $0x18] sm:$0xff]  }
  0x11   : > { %448 = vmatpush3.bf16.msra.mxu0 %v472_v1  ;;  %460 = vmatpush3.bf16.msra.mxu1 %v472_v1 }
  0x14   : > { %450 = vmatmul.mubr.msk.bf16.vlgmr.msra.gmra.mxu0 %vm222_vm1, %v475_v5  ;;  %454 = vmatmul.mubr.msk.bf16.vlgmr.msra.gmra.mxu1 %vm222_vm1, %v476_v6 }
  0xd4   : > { %v451_v8 = vpop.f32.mrf.mxu0  ;;  %v455_v10 = vpop.f32.mrf.mxu1 }
  0xd5   : > { %v282_v9 = vadd.f32 %v451_v8, %v410_v7  ;;  %v298_v11 = vadd.f32 %v455_v10, %v410_v7 }
  0xd6   : > { %v273_v12 = vpop.f32.mrf.mxu0  ;;  %v289_v15 = vpop.f32.mrf.mxu1 }
  0xd7   : > { %v433_v13 = vpack.c.bf16 %v282_v9, %v282_v9  ;;  %v274_v14 = vadd.f32 %v410_v7, %v273_v12  ;;  %v437_v16 = vpack.c.bf16 %v298_v11, %v298_v11  ;;  %v290_v17 = vadd.f32 %v410_v7, %v289_v15 }
  0xd8   : > { %v452_v18 = vpop.f32.mrf.mxu0  ;;  %v456_v21 = vpop.f32.mrf.mxu1 }
  0xd9   : > { %339 = vst.msk [vmem:[%s172_s27 + $0x8] sm:$0xf] %vm336_vm2, %v433_v13  ;;  %v431_v19 = vpack.c.bf16 %v274_v14, %v274_v14  ;;  %v285_v20 = vadd.f32 %v452_v18, %v410_v7  ;;  %343 = vst.msk [vmem:[%s172_s27 + $0x18] sm:$0xf] %vm336_vm2, %v437_v16  ;;  %v435_v22 = vpack.c.bf16 %v290_v17, %v290_v17 }
  0xda   : > { %v301_v23 = vadd.f32 %v456_v21, %v410_v7  ;;  %v276_v24 = vpop.f32.mrf.mxu0  ;;  %v292_v27 = vpop.f32.mrf.mxu1 }
  0xdb   : > { %337 = vst.msk [vmem:[%s172_s27] sm:$0xf] %vm336_vm2, %v431_v19  ;;  %v434_v25 = vpack.c.bf16 %v285_v20, %v285_v20  ;;  %v277_v26 = vadd.f32 %v410_v7, %v276_v24  ;;  %341 = vst.msk [vmem:[%s172_s27 + $0x10] sm:$0xf] %vm336_vm2, %v435_v22  ;;  %v293_v29 = vadd.f32 %v410_v7, %v292_v27 }
  0xdc   : > { %v438_v28 = vpack.c.bf16 %v301_v23, %v301_v23 }
  0xdd   : > { %340 = vst.msk [vmem:[%s172_s27 + $0xc] sm:$0xf] %vm336_vm2, %v434_v25  ;;  %v432_v30 = vpack.c.bf16 %v277_v26, %v277_v26  ;;  %v436_v31 = vpack.c.bf16 %v293_v29, %v293_v29 }
  0xde   : > { %344 = vst.msk [vmem:[%s172_s27 + $0x1c] sm:$0xf] %vm336_vm2, %v438_v28 }
  0xdf   : > { %338 = vst.msk [vmem:[%s172_s27 + $0x4] sm:$0xf] %vm336_vm2, %v432_v30  ;;  %342 = vst.msk [vmem:[%s172_s27 + $0x14] sm:$0xf] %vm336_vm2, %v436_v31 }
  0xe0 PF: > { %s13_s12 = sadd.s32 1, %s483_s12  }
  0xe1   : > { %p10_p4 = scmp.ge.s32.totalorder %s13_s12, 4  }
  0xe3   :  { %12 = sbr.rel (!%p10_p4) target bundleno = 1 (0x1), region = 62 }

// kernel: vltenet_forward.19
= control target key start
LH: loop header
LB: loop body
LE: loop exit
PB: predicated region body
PF: predicated region fallthrough
CT: control target
= control target key end

     0   :  { %s3357_s18 = smov 0   ;;  %s3359_s19 = smov 0   ;;  %s4506_s0 = inlined_call_operand.vmem [shape: bf16[2,10,10,64], index: 0, kind: input, shape index: {}]   ;;  %s4507_s1 = inlined_call_operand.vmem [shape: bf16[576,512], index: 1, kind: input, shape index: {}]   ;;  %s4508_s2 = inlined_call_operand.vmem [shape: f32[1,512], index: 2, kind: input, shape index: {}]   ;;  %s4509_s3 = inlined_call_operand.vmem [shape: f32[512,3], index: 3, kind: input, shape index: {}]   ;;  %s4510_s4 = inlined_call_operand.vmem [shape: f32[1,3], index: 4, kind: input, shape index: {}]   ;;  %s4511_s5 = inlined_call_operand.vmem [shape: f32[2,8,3,8], index: 5, kind: output, shape index: {}]  }
   0x1   :  { %s3361_s20 = smov 0  }
   0x2 LB: > { %s27_s21 = sadd.s32 1, %s3319_s19  ;;  %p2692_p0 = scmp.ge.s32.totalorder %s3323_s20, 1  ;;  %s3323_s20 = sphi %s3361_s20, %s15_s20   ;;  %s3319_s19 = sphi %s3359_s19, %s4513_s19   ;;  %s3315_s18 = sphi %s3357_s18, %s4512_s18  }
   0x3   : > { %p29_p1 = scmp.ge.s32.totalorder %s27_s21, 2  ;;  %p201_p2 = scmp.lt.s32.totalorder %s3323_s20, 3 }
   0x5   : > { %s4515_s21 = smov (%p29_p1, %s27_s21), 0  ;;  %p202_p3 = pnand %p2692_p0, %p201_p2 }
   0x6   : > { %p233_p4 = scmp.lt.s32.totalorder (!%p202_p3), %s3315_s18, 1  ;;  %s3325_s23 = smov (!%p202_p3), 64  }
   0x7   : > { %205 = sbr.rel (%p202_p3) target bundleno = 840 (0x348), region = 40 }
   0xc   : > { %v3053_v0 = vld [vmem:[%s4507_s1 + $0xe4] ss:$16 sps:$4 sm:$0xff]   ;;  %v3055_v1 = vld [vmem:[%s4507_s1 + $0xe0] ss:$16 sps:$4 sm:$0xff]   ;;  %s4517_s18 = smov (!%p233_p4, %s3315_s18), 1  ;;  %vm463_vm0 = vcmask 523264  }
   0xd   : > { %1530 = vmatprep.subr.bf16.mxu0 %v3053_v0  ;;  %v3056_v2 = vld [vmem:[%s4507_s1 + $0xc4] ss:$16 sps:$4 sm:$0xff]   ;;  %v3058_v3 = vld [vmem:[%s4507_s1 + $0xc0] ss:$16 sps:$4 sm:$0xff]   ;;  %s3007_s7 = smul.u32 80, %s4517_s18  ;;  %s2894_s8 = sshll.u32 %s4517_s18, 5 }
   0xe   : > { %1531 = vmatpush1.bf16.msra.mxu0 %v3055_v1  ;;  %v3059_v4 = vld [vmem:[%s4507_s1 + $0x2e4] ss:$16 sps:$4 sm:$0xff]   ;;  %v3063_v6 = vld [vmem:[%s4507_s1 + $0x2e0] ss:$16 sps:$4 sm:$0xff]   ;;  %s246_s11 = scalar_lea.vmem %s4511_s5, %s2894_s8  ;;  %vm2596_vm2 = vcmask 59392  }
   0xf   : > { %1532 = vmatprep.subr.bf16.mxu0 %v3056_v2  ;;  %v3061_v5 = vld [vmem:[%s4507_s1 + $0xa4] ss:$16 sps:$4 sm:$0xff]   ;;  %1603 = vmatprep.subr.bf16.mxu1 %v3059_v4  ;;  %v3064_v7 = vld [vmem:[%s4507_s1 + $0xa0] ss:$16 sps:$4 sm:$0xff]   ;;  %s3405_s16 = scalar_lea.vmem %s4506_s0, %s3007_s7 }
  0x10   : > { %1604 = vmatpush1.bf16.msra.mxu1 %v3063_v6  ;;  %v3065_v8 = vld [vmem:[%s4507_s1 + $0x2c4] ss:$16 sps:$4 sm:$0xff]   ;;  %v3411_v9 = vld [vmem:[%s3405_s16 + $0x8] sm:$0xf]  ;;  %v256_v10 = vld [vmem:[%s3405_s16 + $0xc] sm:$0x1] }
  0x11   : > { %v3415_v11 = vld [vmem:[%s3405_s16 + $0x10] sm:$0xf]  ;;  %v2704_v12 = vcombine.low %v3411_v9, %v3411_v9  ;;  %v3420_v13 = vcombine.low %v3411_v9, %v256_v10  ;;  %v258_v14 = vld [vmem:[%s3405_s16 + $0x14] sm:$0x1]  ;;  %v3424_v15 = vld [vmem:[%s3405_s16] sm:$0xf]  ;;  %1605 = vmatprep.subr.bf16.mxu1 %v3065_v8 }
  0x12   : > { %1533 = vmatpush1.bf16.msra.mxu0 %v3058_v3  ;;  %v254_v16 = vld [vmem:[%s3405_s16 + $0x4] sm:$0x1]  ;;  %v3428_v17 = vcombine.low %v3415_v11, %v258_v14  ;;  %v3434_v19 = vld [vmem:[%s3405_s16 + $0x18] sm:$0xf]  ;;  %v260_v20 = vld [vmem:[%s3405_s16 + $0x1c] sm:$0x1]  ;;  %v2705_v21 = vcombine.low %v3415_v11, %v3415_v11 }
  0x13   : > { %1534 = vmatprep.subr.bf16.mxu0 %v3061_v5  ;;  %v3431_v18 = vcombine.low %v3424_v15, %v254_v16  ;;  %403 = vrot.lane.b32.xlu0 %v2704_v12, %s3325_s23  ;;  %v323_v22 = vshll.u32 %v3420_v13, 16  ;;  %v3442_v23 = vcombine.low %v3434_v19, %v260_v20  ;;  %v321_v30 = vshrl.u32 %v3420_v13, 16  ;;  %v262_v35 = vld [vmem:[%s3405_s16 + $0x24] sm:$0x1]  ;;  %v3456_v38 = vld [vmem:[%s3405_s16 + $0x20] sm:$0xf] }
  0x14   : > { %v328_v26 = vshrl.u32 %v3428_v17, 16  ;;  %v330_v27 = vshll.u32 %v3428_v17, 16  ;;  %v3067_v39 = vld [vmem:[%s4507_s1 + $0x84] ss:$16 sps:$4 sm:$0xff]   ;;  %v3069_v42 = vld [vmem:[%s4507_s1 + $0x2c0] ss:$16 sps:$4 sm:$0xff]   ;;  %v3475_v45 = vcombine.low %v3456_v38, %v262_v35  ;;  %v2706_v56 = vcombine.low %v3434_v19, %v3434_v19 }
  0x15   : > { %v314_v24 = vshrl.u32 %v3431_v18, 16  ;;  %v316_v25 = vshll.u32 %v3431_v18, 16  ;;  %v337_v28 = vshll.u32 %v3442_v23, 16  ;;  %v325_v31 = vrot.slane %v323_v22, 1  ;;  %v270_v41 = vld [vmem:[%s3405_s16 + $0x44] sm:$0x1]  ;;  %1606 = vmatpush1.bf16.msra.mxu1 %v3069_v42 }
  0x16   : > { %1535 = vmatpush1.bf16.msra.mxu0 %v3064_v7  ;;  %v332_v32 = vrot.slane %v330_v27, 1  ;;  %v335_v36 = vshrl.u32 %v3442_v23, 16  ;;  %v3070_v43 = vld [vmem:[%s4507_s1 + $0x80] ss:$16 sps:$4 sm:$0xff]   ;;  %v386_v44 = vrot.slane %v3420_v13, 1  ;;  %v344_v57 = vshll.u32 %v3475_v45, 16 }
  0x17   : > { %v318_v29 = vrot.slane %v316_v25, 1  ;;  %405 = vrot.lane.b32.xlu0 %v2705_v21, %s3325_s23  ;;  %v339_v37 = vrot.slane %v337_v28, 1  ;;  %v3462_v40 = vor.u32 %v325_v31, %v321_v30  ;;  %1536 = vmatprep.subr.bf16.mxu0 %v3067_v39  ;;  %v3071_v46 = vld [vmem:[%s4507_s1 + $0x2a4] ss:$16 sps:$4 sm:$0xff]   ;;  %v3481_v47 = vld [vmem:[%s3405_s16 + $0x48] sm:$0xf] }
  0x18   : > { %v3451_v34 = vor.u32 %v332_v32, %v328_v26  ;;  %v272_v48 = vld [vmem:[%s3405_s16 + $0x4c] sm:$0x1]  ;;  %v3073_v49 = vld [vmem:[%s4507_s1 + $0x64] ss:$16 sps:$4 sm:$0xff]   ;;  %v3488_v50 = vld [vmem:[%s3405_s16 + $0x28] sm:$0xf]  ;;  %1607 = vmatprep.subr.bf16.mxu1 %v3071_v46 }
  0x19   : > { %v319_v33 = vor.u32 %v318_v29, %v314_v24  ;;  %v264_v51 = vld [vmem:[%s3405_s16 + $0x2c] sm:$0x1]  ;;  %v3075_v52 = vld [vmem:[%s4507_s1 + $0x2a0] ss:$16 sps:$4 sm:$0xff]   ;;  %v3496_v53 = vor.u32 %v339_v37, %v335_v36  ;;  %v3514_v59 = vcombine.low %v3481_v47, %v272_v48  ;;  %v3077_v60 = vld [vmem:[%s4507_s1 + $0x284] ss:$16 sps:$4 sm:$0xff]   ;;  %v2708_v6 = vcombine.low %v3488_v50, %v3488_v50 }
  0x1a   : > { %1537 = vmatpush1.bf16.msra.mxu0 %v3070_v43  ;;  %v3499_v54 = vld [vmem:[%s3405_s16 + $0x40] sm:$0xf]  ;;  %v266_v61 = vld [vmem:[%s3405_s16 + $0x34] sm:$0x1]  ;;  %1608 = vmatpush1.bf16.msra.mxu1 %v3075_v52  ;;  %v3527_v0 = vld [vmem:[%s3405_s16 + $0x30] sm:$0xf]  ;;  %v3540_v5 = vcombine.low %v3488_v50, %v264_v51  ;;  %v2707_v24 = vcombine.low %v3456_v38, %v3456_v38 }
  0x1b   : > { %369 = vrot.lane.b32.xlu1 %v319_v33, %s3325_s23  ;;  %373 = vrot.lane.b32.xlu0 %v3451_v34, %s3325_s23  ;;  %v3076_v55 = vld [vmem:[%s4507_s1 + $0x60] ss:$16 sps:$4 sm:$0xff]   ;;  %v3511_v58 = vcombine.low %v3499_v54, %v270_v41  ;;  %v3079_v62 = vld [vmem:[%s4507_s1 + $0x44] ss:$16 sps:$4 sm:$0xff]   ;;  %v462_v2 = vrot.slane %v3514_v59, 1  ;;  %v3537_v4 = vrot.slane %v3428_v17, 1  ;;  %v3549_v8 = vcombine.low %v3527_v0, %v266_v61 }
  0x1c   : > { %1538 = vmatprep.subr.bf16.mxu0 %v3073_v49  ;;  %v3081_v63 = vld [vmem:[%s4507_s1 + $0x280] ss:$16 sps:$4 sm:$0xff]   ;;  %1609 = vmatprep.subr.bf16.mxu1 %v3077_v60  ;;  %v3083_v7 = vld [vmem:[%s4507_s1 + $0x264] ss:$16 sps:$4 sm:$0xff]   ;;  %v342_v10 = vshrl.u32 %v3475_v45, 16  ;;  %v346_v12 = vrot.slane %v344_v57, 1  ;;  %v2709_v35 = vcombine.low %v3527_v0, %v3527_v0 }
  0x1d   : > { %v429_v1 = vrot.slane %v3511_v58, 1  ;;  %v3082_v3 = vld [vmem:[%s4507_s1 + $0x40] ss:$16 sps:$4 sm:$0xff]   ;;  %v3085_v16 = vld [vmem:[%s4507_s1 + $0x24] ss:$16 sps:$4 sm:$0xff]   ;;  %v351_v25 = vshll.u32 %v3540_v5, 16 }
  0x1e   : > { %1539 = vmatpush1.bf16.msra.mxu0 %v3076_v55  ;;  %1610 = vmatpush1.bf16.msra.mxu1 %v3081_v63  ;;  %v3087_v17 = vld [vmem:[%s4507_s1 + $0x260] ss:$16 sps:$4 sm:$0xff]   ;;  %v3566_v21 = vld [vmem:[%s3405_s16 + $0x38] sm:$0xf]  ;;  %v3089_v22 = vld [vmem:[%s4507_s1 + $0x244] ss:$16 sps:$4 sm:$0xff]   ;;  %v3581_v28 = vor.u32 %v346_v12, %v342_v10  ;;  %v2711_v63 = vcombine.low %v3499_v54, %v3499_v54 }
  0x1f   : > { %371 = vrot.lane.b32.xlu1 %v3462_v40, %s3325_s23  ;;  %430 = vrot.lane.b32.xlu0 %v386_v44, %s3325_s23  ;;  %v3554_v14 = vcombine.low %v429_v1, %v462_v2  ;;  %v3088_v20 = vld [vmem:[%s4507_s1 + $0x20] ss:$16 sps:$4 sm:$0xff]   ;;  %v268_v26 = vld [vmem:[%s3405_s16 + $0x3c] sm:$0x1]  ;;  %v358_v29 = vshll.u32 %v3549_v8, 16  ;;  %v349_v36 = vshrl.u32 %v3540_v5, 16  ;;  %v2710_v41 = vcombine.low %v3566_v21, %v3566_v21 }
  0x20   : > { %1540 = vmatprep.subr.bf16.mxu0 %v3079_v62  ;;  %1611 = vmatprep.subr.bf16.mxu1 %v3083_v7  ;;  %v3091_v27 = vld [vmem:[%s4507_s1 + $0x4] ss:$16 sps:$4 sm:$0xff]   ;;  %v3093_v30 = vld [vmem:[%s4507_s1 + $0x240] ss:$16 sps:$4 sm:$0xff]   ;;  %v353_v37 = vrot.slane %v351_v25, 1  ;;  %v3601_v39 = vcombine.low %v3566_v21, %v268_v26  ;;  %v356_v42 = vshrl.u32 %v3549_v8, 16 }
  0x21   : > { %v3094_v31 = vld [vmem:[%s4507_s1] ss:$16 sps:$4 sm:$0xff]   ;;  %v3095_v32 = vld [vmem:[%s4507_s1 + $0x224] ss:$16 sps:$4 sm:$0xff]   ;;  %v360_v43 = vrot.slane %v358_v29, 1  ;;  %v425_v7 = vshll.u32 %v3511_v58, 16 }
  0x22   : > { %1541 = vmatpush1.bf16.msra.mxu0 %v3082_v3  ;;  %1612 = vmatpush1.bf16.msra.mxu1 %v3087_v17  ;;  %v3097_v33 = vld [vmem:[%s4507_s1 + $0x1e4] ss:$16 sps:$4 sm:$0xff]   ;;  %v3099_v46 = vld [vmem:[%s4507_s1 + $0x220] ss:$16 sps:$4 sm:$0xff]   ;;  %v3621_v52 = vor.u32 %v353_v37, %v349_v36  ;;  %v365_v55 = vshll.u32 %v3601_v39, 16  ;;  %v363_v2 = vshrl.u32 %v3601_v39, 16 }
  0x23   : > { %375 = vrot.lane.b32.xlu1 %v3496_v53, %s3325_s23  ;;  %407 = vrot.lane.b32.xlu0 %v2706_v56, %s3325_s23  ;;  %v3100_v48 = vld [vmem:[%s4507_s1 + $0x1e0] ss:$16 sps:$4 sm:$0xff]   ;;  %v3101_v49 = vld [vmem:[%s4507_s1 + $0x204] ss:$16 sps:$4 sm:$0xff]   ;;  %v3625_v56 = vor.u32 %v360_v43, %v356_v42  ;;  %v3686_v29 = vrot.slane %v3475_v45, 1  ;;  %v3708_v36 = vrot.slane %v3549_v8, 1 }
  0x24   : > { %1542 = vmatprep.subr.bf16.mxu0 %v3085_v16  ;;  %1613 = vmatprep.subr.bf16.mxu1 %v3089_v22  ;;  %v3103_v51 = vld [vmem:[%s4507_s1 + $0x1c4] ss:$16 sps:$4 sm:$0xff]   ;;  %v3105_v57 = vld [vmem:[%s4507_s1 + $0x200] ss:$16 sps:$4 sm:$0xff]   ;;  %v367_v3 = vrot.slane %v365_v55, 1  ;;  %v423_v22 = vshrl.u32 %v3511_v58, 16 }
  0x25   : > { %v3106_v60 = vld [vmem:[%s4507_s1 + $0x1c0] ss:$16 sps:$4 sm:$0xff]   ;;  %v3107_v61 = vld [vmem:[%s4507_s1 + $0x3e4] ss:$16 sps:$4 sm:$0xff]   ;;  %v452_v37 = vshrl.u32 %v3514_v59, 16  ;;  %v3714_v42 = vrot.slane %v3601_v39, 1 }
  0x26   : > { %1543 = vmatpush1.bf16.msra.mxu0 %v3088_v20  ;;  %1614 = vmatpush1.bf16.msra.mxu1 %v3093_v30  ;;  %v3109_v62 = vld [vmem:[%s4507_s1 + $0x1a4] ss:$16 sps:$4 sm:$0xff]   ;;  %v3111_v10 = vld [vmem:[%s4507_s1 + $0x3e0] ss:$16 sps:$4 sm:$0xff]   ;;  %v3663_v17 = vor.u32 %v367_v3, %v363_v2  ;;  %v3666_v20 = vrot.slane %v3540_v5, 1  ;;  %v454_v30 = vshll.u32 %v3514_v59, 16 }
  0x27   : > { %432 = vrot.lane.b32.xlu1 %v3537_v4, %s3325_s23  ;;  %411 = vrot.lane.b32.xlu0 %v2708_v6, %s3325_s23  ;;  %v3647_v6 = vrot.slane %v3442_v23, 1  ;;  %v3112_v12 = vld [vmem:[%s4507_s1 + $0x1a0] ss:$16 sps:$4 sm:$0xff]   ;;  %v3113_v16 = vld [vmem:[%s4507_s1 + $0x3c4] ss:$16 sps:$4 sm:$0xff]  }
  0x28   : > { %1544 = vmatprep.subr.bf16.mxu0 %v3091_v27  ;;  %1615 = vmatprep.subr.bf16.mxu1 %v3095_v32  ;;  %v3115_v23 = vld [vmem:[%s4507_s1 + $0x184] ss:$16 sps:$4 sm:$0xff]   ;;  %v3117_v25 = vld [vmem:[%s4507_s1 + $0x3c0] ss:$16 sps:$4 sm:$0xff]   ;;  %v3154_v58 = vld [vmem:[%s4507_s1 + $0xec] ss:$16 sps:$4 sm:$0xff]  }
  0x29   : > { %v3118_v26 = vld [vmem:[%s4507_s1 + $0x180] ss:$16 sps:$4 sm:$0xff]   ;;  %v3119_v5 = vld [vmem:[%s4507_s1 + $0x3a4] ss:$16 sps:$4 sm:$0xff]  }
  0x2a   : > { %1545 = vmatpush1.bf16.msra.mxu0 %v3094_v31  ;;  %1616 = vmatpush1.bf16.msra.mxu1 %v3099_v46  ;;  %v3121_v27 = vld [vmem:[%s4507_s1 + $0x164] ss:$16 sps:$4 sm:$0xff]   ;;  %v3123_v32 = vld [vmem:[%s4507_s1 + $0x3a0] ss:$16 sps:$4 sm:$0xff]  }
  0x2b   : > { %409 = vrot.lane.b32.xlu1 %v2707_v24, %s3325_s23  ;;  %377 = vrot.lane.b32.xlu0 %v3581_v28, %s3325_s23  ;;  %v427_v24 = vrot.slane %v425_v7, 1  ;;  %v3125_v45 = vld [vmem:[%s4507_s1 + $0x384] ss:$16 sps:$4 sm:$0xff]   ;;  %v3129_v43 = vld [vmem:[%s4507_s1 + $0x380] ss:$16 sps:$4 sm:$0xff]  }
  0x2c   : > { %1546 = vmatprep.subr.bf16.mxu0 %v3097_v33  ;;  %1617 = vmatprep.subr.bf16.mxu1 %v3101_v49  ;;  %v3124_v33 = vld [vmem:[%s4507_s1 + $0x160] ss:$16 sps:$4 sm:$0xff]   ;;  %v3131_v59 = vld [vmem:[%s4507_s1 + $0x364] ss:$16 sps:$4 sm:$0xff]  }
  0x2d   : > { %v3691_v31 = vor.u32 %v427_v24, %v423_v22  ;;  %v3130_v8 = vld [vmem:[%s4507_s1 + $0x140] ss:$16 sps:$4 sm:$0xff]   ;;  %v3133_v39 = vld [vmem:[%s4507_s1 + $0x124] ss:$16 sps:$4 sm:$0xff]  }
  0x2e   : > { %1547 = vmatpush2.bf16.msra.mxu0 %v3100_v48  ;;  %1618 = vmatpush1.bf16.msra.mxu1 %v3105_v57  ;;  %v3135_v48 = vld [vmem:[%s4507_s1 + $0x360] ss:$16 sps:$4 sm:$0xff]   ;;  %v3139_v55 = vld [vmem:[%s4507_s1 + $0x104] ss:$16 sps:$4 sm:$0xff]  }
  0x2f   : > { %413 = vrot.lane.b32.xlu1 %v2709_v35, %s3325_s23  ;;  %415 = vrot.lane.b32.xlu0 %v2710_v41, %s3325_s23  ;;  %v3127_v35 = vld [vmem:[%s4507_s1 + $0x144] ss:$16 sps:$4 sm:$0xff]   ;;  %v456_v41 = vrot.slane %v454_v30, 1  ;;  %v3136_v49 = vld [vmem:[%s4507_s1 + $0x120] ss:$16 sps:$4 sm:$0xff]  }
  0x30   : > { %1548 = vmatprep.subr.bf16.mxu0 %v3103_v51  ;;  %1619 = vmatprep.subr.bf16.mxu1 %v3107_v61  ;;  %v3137_v51 = vld [vmem:[%s4507_s1 + $0x344] ss:$16 sps:$4 sm:$0xff]   ;;  %v3141_v57 = vld [vmem:[%s4507_s1 + $0x340] ss:$16 sps:$4 sm:$0xff]  }
  0x31   : > { %v457_v46 = vor.u32 %v456_v41, %v452_v37  ;;  %v3143_v61 = vld [vmem:[%s4507_s1 + $0x324] ss:$16 sps:$4 sm:$0xff]   ;;  %v3148_v3 = vld [vmem:[%s4507_s1 + $0x300] ss:$16 sps:$4 sm:$0xff]   ;;  %v3152_v41 = vld [vmem:[%s4507_s1 + $0xe8] ss:$16 sps:$4 sm:$0xff]  }
  0x32   : > { %1549 = vmatpush2.bf16.msra.mxu0 %v3106_v60  ;;  %1620 = vmatpush2.bf16.msra.mxu1 %v3111_v10  ;;  %v3142_v60 = vld [vmem:[%s4507_s1 + $0x100] ss:$16 sps:$4 sm:$0xff]   ;;  %v3146_v2 = vld [vmem:[%s4507_s1 + $0x304] ss:$16 sps:$4 sm:$0xff]  }
  0x33   : > { %379 = vrot.lane.b32.xlu1 %v3621_v52, %s3325_s23  ;;  %381 = vrot.lane.b32.xlu0 %v3625_v56, %s3325_s23  ;;  %v3149_v13 = vld [vmem:[%s4507_s1 + $0x460] ss:$16 sps:$4 sm:$0xff]  }
  0x34   : > { %1550 = vmatprep.subr.bf16.mxu0 %v3109_v62  ;;  %1621 = vmatprep.subr.bf16.mxu1 %v3113_v16  ;;  %v3151_v62 = vld [vmem:[%s4507_s1 + $0x464] ss:$16 sps:$4 sm:$0xff]  }
  0x36   : > { %1551 = vmatpush2.bf16.msra.mxu0 %v3112_v12  ;;  %1622 = vmatpush2.bf16.msra.mxu1 %v3117_v25 }
  0x37   : > { %417 = vrot.lane.b32.xlu1 %v2711_v63, %s3325_s23  ;;  %434 = vrot.lane.b32.xlu0 %v3647_v6, %s3325_s23  ;;  %v3145_v63 = vld [vmem:[%s4507_s1 + $0x320] ss:$16 sps:$4 sm:$0xff]  }
  0x38   : > { %1552 = vmatprep.subr.bf16.mxu0 %v3115_v23  ;;  %1623 = vmatprep.subr.bf16.mxu1 %v3119_v5 }
  0x3a   : > { %1553 = vmatpush2.bf16.msra.mxu0 %v3118_v26  ;;  %1624 = vmatpush2.bf16.msra.mxu1 %v3123_v32 }
  0x3b   : > { %383 = vrot.lane.b32.xlu1 %v3663_v17, %s3325_s23  ;;  %438 = vrot.lane.b32.xlu0 %v3666_v20, %s3325_s23 }
  0x3c   : > { %1554 = vmatprep.subr.bf16.mxu0 %v3121_v27  ;;  %1625 = vmatprep.subr.bf16.mxu1 %v3125_v45 }
  0x3e   : > { %1555 = vmatpush2.bf16.msra.mxu0 %v3124_v33  ;;  %1626 = vmatpush2.bf16.msra.mxu1 %v3129_v43  ;;  %v3158_v33 = vld [vmem:[%s4507_s1 + $0x440] ss:$16 sps:$4 sm:$0xff]  }
  0x3f   : > { %436 = vrot.lane.b32.xlu1 %v3686_v29, %s3325_s23  ;;  %458 = vrot.lane.b32.xlu0 %v3691_v31, %s3325_s23 }
  0x40   : > { %1556 = vmatprep.subr.bf16.mxu0 %v3127_v35  ;;  %1627 = vmatprep.subr.bf16.mxu1 %v3131_v59  ;;  %v3169_v35 = vld [vmem:[%s4507_s1 + $0x424] ss:$16 sps:$4 sm:$0xff]  }
  0x42   : > { %1557 = vmatpush2.bf16.msra.mxu0 %v3130_v8  ;;  %1628 = vmatpush2.bf16.msra.mxu1 %v3135_v48  ;;  %v3167_v8 = vld [vmem:[%s4507_s1 + $0x420] ss:$16 sps:$4 sm:$0xff]  }
  0x43   : > { %440 = vrot.lane.b32.xlu1 %v3708_v36, %s3325_s23  ;;  %442 = vrot.lane.b32.xlu0 %v3714_v42, %s3325_s23 }
  0x44   : > { %1558 = vmatprep.subr.bf16.mxu0 %v3133_v39  ;;  %1629 = vmatprep.subr.bf16.mxu1 %v3137_v51 }
  0x46   : > { %1559 = vmatpush2.bf16.msra.mxu0 %v3136_v49  ;;  %1630 = vmatpush2.bf16.msra.mxu1 %v3141_v57  ;;  %v3155_v49 = vld [vmem:[%s4507_s1 + $0xc8] ss:$16 sps:$4 sm:$0xff]   ;;  %v3163_v57 = vld [vmem:[%s4507_s1 + $0xac] ss:$16 sps:$4 sm:$0xff]  }
  0x47   : > { %460 = vrot.lane.b32.xlu1 %v457_v46, %s3325_s23  ;;  %1560 = vmatprep.subr.bf16.mxu0 %v3139_v55 }
  0x48   : > { %1631 = vmatprep.subr.bf16.mxu1 %v3143_v61 }
  0x4a   : > { %1561 = vmatpush2.bf16.msra.mxu0 %v3142_v60  ;;  %1632 = vmatpush2.bf16.msra.mxu1 %v3145_v63  ;;  %v3176_v60 = vld [vmem:[%s4507_s1 + $0x400] ss:$16 sps:$4 sm:$0xff]  }
  0x4b   : > { %444 = vrot.lane.b32.xlu1 %v429_v1, %s3325_s23  ;;  %1684 = vmatprep.subr.bf16.mxu0 %v3151_v62  ;;  %v385_v1 = vrot.slane %v3431_v18, 1  ;;  %v3187_v62 = vld [vmem:[%s4507_s1 + $0x2ec] ss:$16 sps:$4 sm:$0xff]  }
  0x4c   : > { %1633 = vmatprep.subr.bf16.mxu1 %v3146_v2 }
  0x4e   : > { %1634 = vmatpush2.bf16.msra.mxu1 %v3148_v3  ;;  %v3161_v3 = vld [vmem:[%s4507_s1 + $0xa8] ss:$16 sps:$4 sm:$0xff]  }
  0x4f   : > { %1749 = vmatprep.subr.bf16.mxu1 %v3154_v58 }
  0x85   : > { %v404_v7 = vpop.permute.xlu0 %403 }
  0x86   : > { %v490_v10 = vsel %vm463_vm0, %v385_v1, %v404_v7  ;;  %v3166_v7 = vld [vmem:[%s4507_s1 + $0x8c] ss:$16 sps:$4 sm:$0xff]  }
  0x89   : > { %v406_v12 = vpop.permute.xlu0 %405 }
  0x8a   : > { %v493_v16 = vsel %vm463_vm0, %v386_v44, %v406_v12  ;;  %v3160_v44 = vld [vmem:[%s4507_s1 + $0x444] ss:$16 sps:$4 sm:$0xff]  }
  0x8b   : > { %v3777_v23 = vcombine.low %v490_v10, %v493_v16 }
  0x8d   : > { %v370_v22 = vpop.permute.xlu1 %369  ;;  %1562 = vmatprep.mubr.bf16.mxu0 %v3777_v23  ;;  %v374_v24 = vpop.permute.xlu0 %373 }
  0x8e   : > { %v466_v26 = vsel %vm463_vm0, %v3424_v15, %v370_v22  ;;  %v472_v30 = vsel %vm463_vm0, %v3415_v11, %v374_v24  ;;  %v3164_v22 = vld [vmem:[%s4507_s1 + $0x88] ss:$16 sps:$4 sm:$0xff]  }
  0x91   : > { %v372_v25 = vpop.permute.xlu1 %371  ;;  %v431_v5 = vpop.permute.xlu0 %430 }
  0x92   : > { %v469_v18 = vsel %vm463_vm0, %v3411_v9, %v372_v25  ;;  %v514_v11 = vsel %vm463_vm0, %v3462_v40, %v431_v5  ;;  %v3157_v40 = vld [vmem:[%s4507_s1 + $0xcc] ss:$16 sps:$4 sm:$0xff]   ;;  %v3170_v5 = vld [vmem:[%s4507_s1 + $0x68] ss:$16 sps:$4 sm:$0xff]  }
  0x93   : > { %v3787_v27 = vcombine.low %v466_v26, %v469_v18 }
  0x95   : > { %1563 = vmatmul.mubr.bf16.vlgmr.msra.gmra.mxu0 %v3787_v27  ;;  %v376_v15 = vpop.permute.xlu1 %375  ;;  %v408_v32 = vpop.permute.xlu0 %407 }
  0x96   : > { %v475_v9 = vsel %vm463_vm0, %v3434_v19, %v376_v15  ;;  %1685 = vmatpush1.bf16.msra.mxu0 %v3149_v13  ;;  %v496_v39 = vsel %vm463_vm0, %v3537_v4, %v408_v32 }
  0x97   : > { %v3800_v45 = vcombine.low %v472_v30, %v475_v9  ;;  %1686 = vmatprep.subr.bf16.mxu0 %v3160_v44  ;;  %v3175_v44 = vld [vmem:[%s4507_s1 + $0x4c] ss:$16 sps:$4 sm:$0xff]  }
  0x99   : > { %1635 = vmatprep.mubr.bf16.mxu1 %v3800_v45  ;;  %v433_v37 = vpop.permute.xlu1 %432  ;;  %v412_v43 = vpop.permute.xlu0 %411 }
  0x9a   : > { %v517_v19 = vsel %vm463_vm0, %v3451_v34, %v433_v37  ;;  %1687 = vmatpush1.bf16.msra.mxu0 %v3158_v33  ;;  %v3178_v34 = vld [vmem:[%s4507_s1 + $0x404] ss:$16 sps:$4 sm:$0xff]   ;;  %v502_v61 = vsel %vm463_vm0, %v3686_v29, %v412_v43  ;;  %v3173_v33 = vld [vmem:[%s4507_s1 + $0x48] ss:$16 sps:$4 sm:$0xff]  }
  0x9b   : > { %v3816_v59 = vcombine.low %v514_v11, %v517_v19  ;;  %1688 = vmatprep.subr.bf16.mxu0 %v3169_v35  ;;  %v3181_v11 = vld [vmem:[%s4507_s1 + $0x2c] ss:$16 sps:$4 sm:$0xff]  }
  0x9d   : > { %1636 = vmatmul.mubr.bf16.vlgmr.msra.gmra.mxu1 %v3816_v59  ;;  %v410_v46 = vpop.permute.xlu1 %409  ;;  %v378_v51 = vpop.permute.xlu0 %377 }
  0x9e   : > { %1750 = vmatpush1.bf16.msra.mxu1 %v3152_v41  ;;  %v499_v48 = vsel %vm463_vm0, %v3647_v6, %v410_v46  ;;  %1689 = vmatpush1.bf16.msra.mxu0 %v3167_v8  ;;  %v478_v10 = vsel %vm463_vm0, %v3456_v38, %v378_v51  ;;  %v3172_v38 = vld [vmem:[%s4507_s1 + $0x6c] ss:$16 sps:$4 sm:$0xff]   ;;  %v3179_v41 = vld [vmem:[%s4507_s1 + $0x28] ss:$16 sps:$4 sm:$0xff]  }
  0x9f   : > { %v3832_v55 = vcombine.low %v496_v39, %v499_v48  ;;  %1751 = vmatprep.subr.bf16.mxu1 %v3157_v40  ;;  %1690 = vmatprep.subr.bf16.mxu0 %v3178_v34  ;;  %v3184_v8 = vld [vmem:[%s4507_s1 + $0xc] ss:$16 sps:$4 sm:$0xff]   ;;  %v3326_v40 = vmov 0   ;;  %v3914_v34 = vcombine.low %v3537_v4, %v3647_v6  ;;  %v3182_v39 = vld [vmem:[%s4507_s1 + $0x8] ss:$16 sps:$4 sm:$0xff]  }
  0xa0   : > { %v3190_v4 = vld [vmem:[%s4507_s1 + $0x1ec] ss:$16 sps:$4 sm:$0xff]  }
  0xa1   : > { %1572 = vmatprep.mubr.bf16.mxu0 %v3832_v55  ;;  %v414_v63 = vpop.permute.xlu1 %413  ;;  %v416_v58 = vpop.permute.xlu0 %415  ;;  %v3193_v51 = vld [vmem:[%s4507_s1 + $0x2cc] ss:$16 sps:$4 sm:$0xff]  }
  0xa2   : > { %1752 = vmatpush1.bf16.msra.mxu1 %v3155_v49  ;;  %v505_v2 = vsel %vm463_vm0, %v3666_v20, %v414_v63  ;;  %1573 = vmatmul.mubr.bf16.gmra.mxu0 %v3800_v45  ;;  %v508_v26 = vsel %vm463_vm0, %v3708_v36, %v416_v58  ;;  %v3185_v49 = vld [vmem:[%s4507_s1 + $0x2e8] ss:$16 sps:$4 sm:$0xff]  }
  0xa3   : > { %v3852_v1 = vcombine.low %v502_v61, %v505_v2  ;;  %1753 = vmatprep.subr.bf16.mxu1 %v3163_v57  ;;  %1691 = vmatpush1.bf16.msra.mxu0 %v3176_v60 }
  0xa4   : > { %1822 = vmatprep.subr.bf16.mxu0 %v3187_v62  ;;  %v3196_v62 = vld [vmem:[%s4507_s1 + $0x1cc] ss:$16 sps:$4 sm:$0xff]  }
  0xa5   : > { %v380_v12 = vpop.permute.xlu1 %379  ;;  %1582 = vmatprep.mubr.bf16.mxu0 %v3852_v1  ;;  %v382_v24 = vpop.permute.xlu0 %381 }
  0xa6   : > { %1754 = vmatpush1.bf16.msra.mxu1 %v3161_v3  ;;  %v481_v16 = vsel %vm463_vm0, %v3488_v50, %v380_v12  ;;  %v484_v15 = vsel %vm463_vm0, %v3527_v0, %v382_v24  ;;  %v3194_v3 = vld [vmem:[%s4507_s1 + $0x1c8] ss:$16 sps:$4 sm:$0xff]   ;;  %v3211_v24 = vld [vmem:[%s4507_s1 + $0x26c] ss:$16 sps:$4 sm:$0xff]  }
  0xa7   : > { %v3865_v25 = vcombine.low %v478_v10, %v481_v16  ;;  %1755 = vmatprep.subr.bf16.mxu1 %v3166_v7  ;;  %v3966_v10 = vcombine.low %v3686_v29, %v3666_v20  ;;  %v3197_v12 = vld [vmem:[%s4507_s1 + $0x2a8] ss:$16 sps:$4 sm:$0xff]   ;;  %v3202_v16 = vld [vmem:[%s4507_s1 + $0x1ac] ss:$16 sps:$4 sm:$0xff]  }
  0xa8   : > { %v3200_v20 = vld [vmem:[%s4507_s1 + $0x1a8] ss:$16 sps:$4 sm:$0xff]  }
  0xa9   : > { %v418_v18 = vpop.permute.xlu1 %417  ;;  %1645 = vmatprep.mubr.bf16.mxu1 %v3865_v25  ;;  %v435_v30 = vpop.permute.xlu0 %434  ;;  %v3203_v29 = vld [vmem:[%s4507_s1 + $0x288] ss:$16 sps:$4 sm:$0xff]  }
  0xaa   : > { %1756 = vmatpush1.bf16.msra.mxu1 %v3164_v22  ;;  %v511_v50 = vsel %vm463_vm0, %v3714_v42, %v418_v18  ;;  %1583 = vmatmul.mubr.bf16.gmra.mxu0 %v3865_v25  ;;  %v520_v0 = vsel %vm463_vm0, %v3496_v53, %v435_v30  ;;  %v3208_v22 = vld [vmem:[%s4507_s1 + $0x18c] ss:$16 sps:$4 sm:$0xff]   ;;  %v3209_v18 = vld [vmem:[%s4507_s1 + $0x268] ss:$16 sps:$4 sm:$0xff]  }
  0xab   : > { %v3879_v13 = vcombine.low %v508_v26, %v511_v50  ;;  %1757 = vmatprep.subr.bf16.mxu1 %v3172_v38  ;;  %v3206_v38 = vld [vmem:[%s4507_s1 + $0x188] ss:$16 sps:$4 sm:$0xff]   ;;  %v4002_v26 = vcombine.low %v3708_v36, %v3714_v42  ;;  %v3214_v50 = vld [vmem:[%s4507_s1 + $0x16c] ss:$16 sps:$4 sm:$0xff]  }
  0xac   : > { %v3212_v36 = vld [vmem:[%s4507_s1 + $0x168] ss:$16 sps:$4 sm:$0xff]  }
  0xad   : > { %v384_v9 = vpop.permute.xlu1 %383  ;;  %1592 = vmatprep.mubr.bf16.mxu0 %v3879_v13  ;;  %v439_v37 = vpop.permute.xlu0 %438  ;;  %v3215_v42 = vld [vmem:[%s4507_s1 + $0x248] ss:$16 sps:$4 sm:$0xff]  }
  0xae   : > { %1758 = vmatpush1.bf16.msra.mxu1 %v3170_v5  ;;  %v487_v32 = vsel %vm463_vm0, %v3566_v21, %v384_v9  ;;  %v526_v46 = vsel %vm463_vm0, %v3621_v52, %v439_v37  ;;  %v3220_v5 = vld [vmem:[%s4507_s1 + $0x14c] ss:$16 sps:$4 sm:$0xff]   ;;  %v3218_v30 = vld [vmem:[%s4507_s1 + $0x148] ss:$16 sps:$4 sm:$0xff]  }
  0xaf   : > { %v3892_v35 = vcombine.low %v484_v15, %v487_v32  ;;  %1759 = vmatprep.subr.bf16.mxu1 %v3175_v44  ;;  %v3223_v44 = vld [vmem:[%s4507_s1 + $0x22c] ss:$16 sps:$4 sm:$0xff]   ;;  %v3221_v15 = vld [vmem:[%s4507_s1 + $0x228] ss:$16 sps:$4 sm:$0xff]  }
  0xb0   : > { %v3226_v9 = vld [vmem:[%s4507_s1 + $0x12c] ss:$16 sps:$4 sm:$0xff]  }
  0xb1   : > { %v437_v19 = vpop.permute.xlu1 %436  ;;  %v3229_v32 = vld [vmem:[%s4507_s1 + $0x20c] ss:$16 sps:$4 sm:$0xff]  }
  0xb2   : > { %1760 = vmatpush1.bf16.msra.mxu1 %v3173_v33  ;;  %v523_v21 = vsel %vm463_vm0, %v3581_v28, %v437_v19  ;;  %1593 = vmatmul.mubr.bf16.gmra.mxu0 %v3892_v35  ;;  %v459_v28 = vpop.permute.xlu0 %458  ;;  %v3224_v33 = vld [vmem:[%s4507_s1 + $0x128] ss:$16 sps:$4 sm:$0xff]   ;;  %v3232_v37 = vld [vmem:[%s4507_s1 + $0x10c] ss:$16 sps:$4 sm:$0xff]  }
  0xb3   : > { %v3905_v43 = vcombine.low %v520_v0, %v523_v21  ;;  %1761 = vmatprep.subr.bf16.mxu1 %v3181_v11  ;;  %1708 = vmatprep.mubr.bf16.mxu0 %v3326_v40  ;;  %v538_v6 = vsel %vm463_vm0, %v3499_v54, %v459_v28  ;;  %v3191_v54 = vld [vmem:[%s4507_s1 + $0x2c8] ss:$16 sps:$4 sm:$0xff]   ;;  %v3235_v0 = vld [vmem:[%s4507_s1 + $0x3ec] ss:$16 sps:$4 sm:$0xff]  }
  0xb4   : > { %v3227_v11 = vld [vmem:[%s4507_s1 + $0x208] ss:$16 sps:$4 sm:$0xff]  }
  0xb5   : > { %1646 = vmatmul.mubr.bf16.gmra.mxu1 %v3905_v43  ;;  %v441_v53 = vpop.permute.xlu1 %440  ;;  %v3230_v19 = vld [vmem:[%s4507_s1 + $0x108] ss:$16 sps:$4 sm:$0xff]  }
  0xb6   : > { %1762 = vmatpush1.bf16.msra.mxu1 %v3179_v41  ;;  %1655 = vmatprep.mubr.bf16.mxu1 %v3892_v35  ;;  %v529_v48 = vsel %vm463_vm0, %v3625_v56, %v441_v53  ;;  %v3188_v56 = vld [vmem:[%s4507_s1 + $0x1e8] ss:$16 sps:$4 sm:$0xff]   ;;  %v443_v63 = vpop.permute.xlu0 %442  ;;  %v3238_v41 = vld [vmem:[%s4507_s1 + $0x46c] ss:$16 sps:$4 sm:$0xff]  }
  0xb7   : > { %1763 = vmatprep.subr.bf16.mxu1 %v3184_v8  ;;  %v3935_v52 = vcombine.low %v526_v46, %v529_v48  ;;  %v532_v58 = vsel %vm463_vm0, %v3663_v17, %v443_v63  ;;  %v3205_v17 = vld [vmem:[%s4507_s1 + $0x28c] ss:$16 sps:$4 sm:$0xff]   ;;  %v3233_v21 = vld [vmem:[%s4507_s1 + $0x3e8] ss:$16 sps:$4 sm:$0xff]  }
  0xb8   : > { %v3241_v8 = vld [vmem:[%s4507_s1 + $0x3cc] ss:$16 sps:$4 sm:$0xff]   ;;  %v3236_v53 = vld [vmem:[%s4507_s1 + $0x468] ss:$16 sps:$4 sm:$0xff]  }
  0xb9   : > { %v461_v57 = vpop.permute.xlu1 %460  ;;  %v3239_v28 = vld [vmem:[%s4507_s1 + $0x3c8] ss:$16 sps:$4 sm:$0xff]   ;;  %v3244_v46 = vld [vmem:[%s4507_s1 + $0x3ac] ss:$16 sps:$4 sm:$0xff]  }
  0xba   : > { %1764 = vmatpush1.bf16.msra.mxu1 %v3182_v39  ;;  %2875 = vmatmul.mubr.msk.bf16.vlgmr.msra.gmra.mxu0 %vm463_vm0, %v3914_v34  ;;  %v541_v60 = vsel %vm463_vm0, %v3481_v47, %v461_v57  ;;  %v3199_v47 = vld [vmem:[%s4507_s1 + $0x2ac] ss:$16 sps:$4 sm:$0xff]   ;;  %v3245_v48 = vld [vmem:[%s4507_s1 + $0x448] ss:$16 sps:$4 sm:$0xff]  }
  0xbb   : > { %1823 = vmatpush1.bf16.msra.mxu0 %v3185_v49  ;;  %1765 = vmatprep.subr.bf16.mxu1 %v3190_v4  ;;  %v3947_v61 = vcombine.low %v538_v6, %v541_v60  ;;  %v3247_v39 = vld [vmem:[%s4507_s1 + $0x44c] ss:$16 sps:$4 sm:$0xff]   ;;  %v3242_v49 = vld [vmem:[%s4507_s1 + $0x3a8] ss:$16 sps:$4 sm:$0xff]  }
  0xbc   : > { %1824 = vmatprep.subr.bf16.mxu0 %v3193_v51  ;;  %1718 = vmatprep.mubr.bf16.mxu0 %v3326_v40  ;;  %v3256_v4 = vld [vmem:[%s4507_s1 + $0x42c] ss:$16 sps:$4 sm:$0xff]   ;;  %v3248_v6 = vld [vmem:[%s4507_s1 + $0x388] ss:$16 sps:$4 sm:$0xff]  }
  0xbd   : > { %1656 = vmatmul.mubr.bf16.gmra.mxu1 %v3935_v52  ;;  %v445_v2 = vpop.permute.xlu1 %444  ;;  %v3265_v51 = vld [vmem:[%s4507_s1 + $0x40c] ss:$16 sps:$4 sm:$0xff]   ;;  %v3251_v60 = vld [vmem:[%s4507_s1 + $0x368] ss:$16 sps:$4 sm:$0xff]  }
  0xbe   : > { %1766 = vmatpush2.bf16.msra.mxu1 %v3188_v56  ;;  %v535_v7 = vsel %vm463_vm0, %v3691_v31, %v445_v2  ;;  %1665 = vmatprep.mubr.bf16.mxu1 %v3947_v61  ;;  %v3253_v57 = vld [vmem:[%s4507_s1 + $0x36c] ss:$16 sps:$4 sm:$0xff]   ;;  %v3263_v56 = vld [vmem:[%s4507_s1 + $0x408] ss:$16 sps:$4 sm:$0xff]  }
  0xbf   : > { %1825 = vmatpush1.bf16.msra.mxu0 %v3191_v54  ;;  %1767 = vmatprep.subr.bf16.mxu1 %v3196_v62  ;;  %v3978_v31 = vcombine.low %v532_v58, %v535_v7  ;;  %v3259_v54 = vld [vmem:[%s4507_s1 + $0x34c] ss:$16 sps:$4 sm:$0xff]   ;;  %v3260_v62 = vld [vmem:[%s4507_s1 + $0x328] ss:$16 sps:$4 sm:$0xff]   ;;  %v2014_v58 = vld [vmem:[%s4509_s3 + $0x70] sm:$0xff] }
  0xc0   : > { %1826 = vmatprep.subr.bf16.mxu0 %v3199_v47  ;;  %v3268_v63 = vld [vmem:[%s4507_s1 + $0x30c] ss:$16 sps:$4 sm:$0xff]   ;;  %v3266_v47 = vld [vmem:[%s4507_s1 + $0x308] ss:$16 sps:$4 sm:$0xff]  }
  0xc1   : > { %v2015_v2 = vld [vmem:[%s4509_s3 + $0x78] sm:$0xff]  ;;  %v2029_v7 = vld [vmem:[%s4509_s3 + $0xe8] sm:$0xff] }
  0xc2   : > { %1768 = vmatpush2.bf16.msra.mxu1 %v3194_v3  ;;  %2876 = vmatmul.mubr.msk.bf16.gmra.mxu0 %vm463_vm0, %v3966_v10  ;;  %v2030_v3 = vld [vmem:[%s4509_s3 + $0xf0] sm:$0xff] }
  0xc3   : > { %1827 = vmatpush1.bf16.msra.mxu0 %v3197_v12  ;;  %1769 = vmatprep.subr.bf16.mxu1 %v3202_v16  ;;  %v2013_v12 = vld [vmem:[%s4509_s3 + $0x68] sm:$0xff]  ;;  %v2027_v16 = vld [vmem:[%s4509_s3 + $0xd8] sm:$0xff] }
  0xc4   : > { %1828 = vmatprep.subr.bf16.mxu0 %v3205_v17  ;;  %1728 = vmatprep.mubr.bf16.mxu0 %v3326_v40  ;;  %v2026_v17 = vld [vmem:[%s4509_s3 + $0xd0] sm:$0xff] }
  0xc5   : > { %1666 = vmatmul.mubr.bf16.gmra.mxu1 %v3978_v31 }
  0xc6   : > { %1770 = vmatpush2.bf16.msra.mxu1 %v3200_v20  ;;  %1781 = vmatprep.mubr.bf16.mxu1 %v3777_v23  ;;  %v3217_v23 = vld [vmem:[%s4507_s1 + $0x24c] ss:$16 sps:$4 sm:$0xff]   ;;  %v2010_v20 = vld [vmem:[%s4509_s3 + $0x50] sm:$0xff] }
  0xc7   : > { %1829 = vmatpush1.bf16.msra.mxu0 %v3203_v29  ;;  %1771 = vmatprep.subr.bf16.mxu1 %v3208_v22  ;;  %v2025_v29 = vld [vmem:[%s4509_s3 + $0xc8] sm:$0xff] }
  0xc8   : > { %1830 = vmatprep.subr.bf16.mxu0 %v3211_v24  ;;  %v2009_v22 = vld [vmem:[%s4509_s3 + $0x48] sm:$0xff]  ;;  %v2023_v24 = vld [vmem:[%s4509_s3 + $0xb8] sm:$0xff] }
  0xca   : > { %1772 = vmatpush2.bf16.msra.mxu1 %v3206_v38  ;;  %2877 = vmatmul.mubr.msk.bf16.gmra.mxu0 %vm463_vm0, %v4002_v26  ;;  %v2022_v38 = vld [vmem:[%s4509_s3 + $0xb0] sm:$0xff] }
  0xcb   : > { %1831 = vmatpush1.bf16.msra.mxu0 %v3209_v18  ;;  %1773 = vmatprep.subr.bf16.mxu1 %v3214_v50  ;;  %v2006_v18 = vld [vmem:[%s4509_s3 + $0x30] sm:$0xff]  ;;  %v2021_v50 = vld [vmem:[%s4509_s3 + $0xa8] sm:$0xff] }
  0xcc   : > { %1832 = vmatprep.subr.bf16.mxu0 %v3217_v23  ;;  %1738 = vmatprep.mubr.bf16.mxu0 %v3326_v40  ;;  %v2005_v23 = vld [vmem:[%s4509_s3 + $0x28] sm:$0xff] }
  0xce   : > { %1774 = vmatpush2.bf16.msra.mxu1 %v3212_v36  ;;  %v2019_v36 = vld [vmem:[%s4509_s3 + $0x98] sm:$0xff] }
  0xcf   : > { %1833 = vmatpush1.bf16.msra.mxu0 %v3215_v42  ;;  %1775 = vmatprep.subr.bf16.mxu1 %v3220_v5  ;;  %v2002_v42 = vld [vmem:[%s4509_s3 + $0x10] sm:$0xff]  ;;  %v2017_v5 = vld [vmem:[%s4509_s3 + $0x88] sm:$0xff] }
  0xd0   : > { %1834 = vmatprep.subr.bf16.mxu0 %v3223_v44  ;;  %v2001_v44 = vld [vmem:[%s4509_s3 + $0x8] sm:$0xff] }
  0xd2   : > { %1776 = vmatpush2.bf16.msra.mxu1 %v3218_v30  ;;  %2878 = vmatmul.mubr.msk.bf16.gmra.mxu0 %vm463_vm0, %v3554_v14  ;;  %v2000_v30 = vld [vmem:[%s4509_s3] sm:$0xff] }
  0xd3   : > { %1835 = vmatpush1.bf16.msra.mxu0 %v3221_v15  ;;  %1854 = vmatprep.mubr.bf16.mxu0 %v3800_v45  ;;  %v2063_v15 = vld [vmem:[%s4509_s3 + $0x1f8] sm:$0xff] }
  0xd4   : > { %1777 = vmatprep.subr.bf16.mxu1 %v3226_v9  ;;  %1836 = vmatprep.subr.bf16.mxu0 %v3229_v32  ;;  %v2062_v9 = vld [vmem:[%s4509_s3 + $0x1f0] sm:$0xff] }
  0xd5   : > { %v2046_v32 = vld [vmem:[%s4509_s3 + $0x170] sm:$0xff] }
  0xd6   : > { %1778 = vmatpush2.bf16.msra.mxu1 %v3224_v33  ;;  %v2061_v33 = vld [vmem:[%s4509_s3 + $0x1e8] sm:$0xff] }
  0xd7   : > { %1837 = vmatpush1.bf16.msra.mxu0 %v3227_v11  ;;  %1779 = vmatprep.subr.bf16.mxu1 %v3232_v37  ;;  %v2045_v11 = vld [vmem:[%s4509_s3 + $0x168] sm:$0xff]  ;;  %v2060_v37 = vld [vmem:[%s4509_s3 + $0x1e0] sm:$0xff] }
  0xd8   : > { %1838 = vmatprep.subr.bf16.mxu0 %v3235_v0  ;;  %v2044_v0 = vld [vmem:[%s4509_s3 + $0x160] sm:$0xff] }
  0xda   : > { %1780 = vmatpush2.bf16.msra.mxu1 %v3230_v19  ;;  %v2059_v19 = vld [vmem:[%s4509_s3 + $0x1d8] sm:$0xff] }
  0xdb   : > { %1839 = vmatpush2.bf16.msra.mxu0 %v3233_v21  ;;  %1903 = vmatprep.subr.bf16.mxu1 %v3238_v41  ;;  %v2043_v21 = vld [vmem:[%s4509_s3 + $0x158] sm:$0xff]  ;;  %v2058_v41 = vld [vmem:[%s4509_s3 + $0x1d0] sm:$0xff] }
  0xdc   : > { %1840 = vmatprep.subr.bf16.mxu0 %v3241_v8  ;;  %v2042_v8 = vld [vmem:[%s4509_s3 + $0x150] sm:$0xff] }
  0xdd   : > { %1782 = vmatmul.mubr.bf16.vlgmr.msra.gmra.mxu1 %v3787_v27  ;;  %v3250_v27 = vld [vmem:[%s4507_s1 + $0x38c] ss:$16 sps:$4 sm:$0xff]  }
  0xde   : > { %1791 = vmatprep.mubr.bf16.mxu1 %v3832_v55  ;;  %1904 = vmatpush1.bf16.msra.mxu1 %v3236_v53  ;;  %v3254_v55 = vld [vmem:[%s4507_s1 + $0x428] ss:$16 sps:$4 sm:$0xff]  }
  0xdf   : > { %1841 = vmatpush2.bf16.msra.mxu0 %v3239_v28  ;;  %1905 = vmatprep.subr.bf16.mxu1 %v3247_v39  ;;  %v2057_v53 = vld [vmem:[%s4509_s3 + $0x1c8] sm:$0xff]  ;;  %v2056_v39 = vld [vmem:[%s4509_s3 + $0x1c0] sm:$0xff] }
  0xe0   : > { %1842 = vmatprep.subr.bf16.mxu0 %v3244_v46  ;;  %v2041_v28 = vld [vmem:[%s4509_s3 + $0x148] sm:$0xff]  ;;  %v2040_v46 = vld [vmem:[%s4509_s3 + $0x140] sm:$0xff] }
  0xe2   : > { %1906 = vmatpush1.bf16.msra.mxu1 %v3245_v48  ;;  %v2055_v48 = vld [vmem:[%s4509_s3 + $0x1b8] sm:$0xff] }
  0xe3   : > { %1843 = vmatpush2.bf16.msra.mxu0 %v3242_v49  ;;  %1907 = vmatprep.subr.bf16.mxu1 %v3256_v4  ;;  %v2039_v49 = vld [vmem:[%s4509_s3 + $0x138] sm:$0xff]  ;;  %v2054_v4 = vld [vmem:[%s4509_s3 + $0x1b0] sm:$0xff] }
  0xe4   : > { %1844 = vmatprep.subr.bf16.mxu0 %v3250_v27  ;;  %v2038_v27 = vld [vmem:[%s4509_s3 + $0x130] sm:$0xff] }
  0xe5   : > { %1792 = vmatmul.mubr.bf16.gmra.mxu1 %v3800_v45  ;;  %v3257_v45 = vld [vmem:[%s4507_s1 + $0x348] ss:$16 sps:$4 sm:$0xff]  }
  0xe6   : > { %1801 = vmatprep.mubr.bf16.mxu1 %v3852_v1  ;;  %1908 = vmatpush1.bf16.msra.mxu1 %v3254_v55  ;;  %v3262_v1 = vld [vmem:[%s4507_s1 + $0x32c] ss:$16 sps:$4 sm:$0xff]  }
  0xe7   : > { %1845 = vmatpush2.bf16.msra.mxu0 %v3248_v6  ;;  %1909 = vmatprep.subr.bf16.mxu1 %v3265_v51  ;;  %v2053_v55 = vld [vmem:[%s4509_s3 + $0x1a8] sm:$0xff]  ;;  %v2052_v51 = vld [vmem:[%s4509_s3 + $0x1a0] sm:$0xff] }
  0xe8   : > { %1846 = vmatprep.subr.bf16.mxu0 %v3253_v57  ;;  %v2037_v6 = vld [vmem:[%s4509_s3 + $0x128] sm:$0xff]  ;;  %v2036_v57 = vld [vmem:[%s4509_s3 + $0x120] sm:$0xff] }
  0xea   : > { %1910 = vmatpush1.bf16.msra.mxu1 %v3263_v56  ;;  %v2051_v56 = vld [vmem:[%s4509_s3 + $0x198] sm:$0xff] }
  0xeb   : > { %1847 = vmatpush2.bf16.msra.mxu0 %v3251_v60  ;;  %2951 = vmatprep.subr.mxu1 %v2063_v15  ;;  %v2035_v60 = vld [vmem:[%s4509_s3 + $0x118] sm:$0xff] }
  0xec   : > { %1848 = vmatprep.subr.bf16.mxu0 %v3259_v54  ;;  %v2050_v54 = vld [vmem:[%s4509_s3 + $0x190] sm:$0xff] }
  0xed   : > { %1802 = vmatmul.mubr.bf16.gmra.mxu1 %v3865_v25 }
  0xee   : > { %1811 = vmatprep.mubr.bf16.mxu1 %v3879_v13  ;;  %v2031_v13 = vld [vmem:[%s4509_s3 + $0xf8] sm:$0xff] }
  0xef   : > { %1849 = vmatpush2.bf16.msra.mxu0 %v3257_v45  ;;  %v2034_v45 = vld [vmem:[%s4509_s3 + $0x110] sm:$0xff] }
  0xf0   : > { %1850 = vmatprep.subr.bf16.mxu0 %v3262_v1  ;;  %v2049_v1 = vld [vmem:[%s4509_s3 + $0x188] sm:$0xff] }
  0xf3   : > { %1851 = vmatpush2.bf16.msra.mxu0 %v3260_v62  ;;  %v2033_v62 = vld [vmem:[%s4509_s3 + $0x108] sm:$0xff] }
  0xf4   : > { %1852 = vmatprep.subr.bf16.mxu0 %v3268_v63  ;;  %v2048_v63 = vld [vmem:[%s4509_s3 + $0x180] sm:$0xff] }
  0xf5   : > { %1812 = vmatmul.mubr.bf16.gmra.mxu1 %v3892_v35 }
  0xf6   : > { %1927 = vmatprep.mubr.bf16.mxu1 %v3326_v40 }
  0xf7   : > { %1853 = vmatpush2.bf16.msra.mxu0 %v3266_v47  ;;  %v2032_v47 = vld [vmem:[%s4509_s3 + $0x100] sm:$0xff] }
  0xf8   : > { %2895 = vmatprep.subr.mxu0 %v2031_v13 }
  0xfa   : > { %1855 = vmatmul.mubr.bf16.vlgmr.msra.gmra.mxu0 %v3816_v59  ;;  %v2028_v59 = vld [vmem:[%s4509_s3 + $0xe0] sm:$0xff] }
  0xfb   : > { %1864 = vmatprep.mubr.bf16.mxu0 %v3865_v25  ;;  %2896 = vmatpush3.msra.mxu0 %v2015_v2  ;;  %v2012_v25 = vld [vmem:[%s4509_s3 + $0x60] sm:$0xff] }
  0xfc   : > { %2897 = vmatprep.subr.mxu0 %v2030_v3 }
  0xfd   : > { %2879 = vmatmul.mubr.msk.bf16.vlgmr.msra.gmra.mxu1 %vm463_vm0, %v3914_v34  ;;  %2898 = vmatpush3.msra.mxu0 %v2014_v58  ;;  %v2011_v34 = vld [vmem:[%s4509_s3 + $0x58] sm:$0xff] }
  0xfe   : > { %1937 = vmatprep.mubr.bf16.mxu1 %v3326_v40  ;;  %2899 = vmatprep.subr.mxu0 %v2029_v7 }
  0xff   : > { %2900 = vmatpush3.msra.mxu0 %v2013_v12 }
 0x100   : > { %2901 = vmatprep.subr.mxu0 %v2028_v59 }
 0x101   : > { %2902 = vmatpush3.msra.mxu0 %v2012_v25 }
 0x102   : > { %1865 = vmatmul.mubr.bf16.gmra.mxu0 %v3905_v43  ;;  %2903 = vmatprep.subr.mxu0 %v2027_v16  ;;  %v2024_v43 = vld [vmem:[%s4509_s3 + $0xc0] sm:$0xff]  ;;  %v748_v16 = vlaneseq }
 0x103   : > { %1874 = vmatprep.mubr.bf16.mxu0 %v3892_v35  ;;  %2904 = vmatpush3.msra.mxu0 %v2011_v34  ;;  %v2008_v35 = vld [vmem:[%s4509_s3 + $0x40] sm:$0xff] }
 0x104   : > { %2905 = vmatprep.subr.mxu0 %v2026_v17 }
 0x105   : > { %2880 = vmatmul.mubr.msk.bf16.gmra.mxu1 %vm463_vm0, %v3966_v10  ;;  %2906 = vmatpush3.msra.mxu0 %v2010_v20  ;;  %v2007_v10 = vld [vmem:[%s4509_s3 + $0x38] sm:$0xff] }
 0x106   : > { %1947 = vmatprep.mubr.bf16.mxu1 %v3326_v40  ;;  %2907 = vmatprep.subr.mxu0 %v2025_v29  ;;  %v4348_v29 = vshrl.u32 %v748_v16, 7 }
 0x107   : > { %2908 = vmatpush3.msra.mxu0 %v2009_v22 }
 0x108   : > { %2909 = vmatprep.subr.mxu0 %v2024_v43 }
 0x109   : > { %2910 = vmatpush3.msra.mxu0 %v2008_v35 }
 0x10a   : > { %1875 = vmatmul.mubr.bf16.gmra.mxu0 %v3935_v52  ;;  %2911 = vmatprep.subr.mxu0 %v2023_v24  ;;  %v2020_v52 = vld [vmem:[%s4509_s3 + $0xa0] sm:$0xff]  ;;  %v750_v24 = vsub.s32 0, %v4348_v29 }
 0x10b   : > { %1884 = vmatprep.mubr.bf16.mxu0 %v3947_v61  ;;  %2912 = vmatpush3.msra.mxu0 %v2007_v10  ;;  %v2004_v61 = vld [vmem:[%s4509_s3 + $0x20] sm:$0xff] }
 0x10c   : > { %2913 = vmatprep.subr.mxu0 %v2022_v38  ;;  %v4360_v38 = vld [vmem:[%s4508_s2] sm:$0xf] }
 0x10d   : > { %2881 = vmatmul.mubr.msk.bf16.gmra.mxu1 %vm463_vm0, %v4002_v26  ;;  %2914 = vmatpush3.msra.mxu0 %v2006_v18  ;;  %v2003_v26 = vld [vmem:[%s4509_s3 + $0x18] sm:$0xff]  ;;  %v754_v18 = vsub.s32 1, %v4348_v29 }
 0x10e   : > { %1957 = vmatprep.mubr.bf16.mxu1 %v3326_v40  ;;  %2915 = vmatprep.subr.mxu0 %v2021_v50  ;;  %v2018_v40 = vld [vmem:[%s4509_s3 + $0x90] sm:$0xff] }
 0x10f   : > { %2916 = vmatpush3.msra.mxu0 %v2005_v23 }
 0x110   : > { %2917 = vmatprep.subr.mxu0 %v2020_v52  ;;  %v4366_v52 = vrot.slane %v4360_v38, %v750_v24 }
 0x111   : > { %2918 = vmatpush3.msra.mxu0 %v2004_v61 }
 0x112   : > { %1885 = vmatmul.mubr.bf16.gmra.mxu0 %v3978_v31  ;;  %2919 = vmatprep.subr.mxu0 %v2019_v36  ;;  %v2016_v31 = vld [vmem:[%s4509_s3 + $0x80] sm:$0xff]  ;;  %v4371_v36 = vrot.slane %v4360_v38, %v754_v18 }
 0x113   : > { %2920 = vmatpush3.msra.mxu0 %v2003_v26 }
 0x114   : > { %2921 = vmatprep.subr.mxu0 %v2018_v40 }
 0x115   : > { %2882 = vmatmul.mubr.msk.bf16.gmra.mxu1 %vm463_vm0, %v3554_v14  ;;  %2922 = vmatpush3.msra.mxu0 %v2002_v42  ;;  %v2047_v14 = vld [vmem:[%s4509_s3 + $0x178] sm:$0xff] }
 0x116   : > { %2923 = vmatprep.subr.mxu0 %v2017_v5  ;;  %2952 = vmatpush3.msra.mxu1 %v2047_v14 }
 0x117   : > { %2924 = vmatpush3.msra.mxu0 %v2001_v44  ;;  %2953 = vmatprep.subr.mxu1 %v2062_v9 }
 0x118   : > { %2925 = vmatprep.subr.mxu0 %v2016_v31  ;;  %2954 = vmatpush3.msra.mxu1 %v2046_v32 }
 0x119   : > { %2926 = vmatpush3.msra.mxu0 %v2000_v30  ;;  %2955 = vmatprep.subr.mxu1 %v2061_v33 }
 0x11a   : > { %2956 = vmatpush3.msra.mxu1 %v2045_v11 }
 0x11b   : > { %2957 = vmatprep.subr.mxu1 %v2060_v37 }
 0x11c   : > { %2958 = vmatpush3.msra.mxu1 %v2044_v0 }
 0x11d   : > { %2959 = vmatprep.subr.mxu1 %v2059_v19 }
 0x11e   : > { %2960 = vmatpush3.msra.mxu1 %v2043_v21 }
 0x11f   : > { %2961 = vmatprep.subr.mxu1 %v2058_v41 }
 0x120   : > { %2962 = vmatpush3.msra.mxu1 %v2042_v8 }
 0x121   : > { %2963 = vmatprep.subr.mxu1 %v2057_v53 }
 0x122   : > { %2964 = vmatpush3.msra.mxu1 %v2041_v28 }
 0x123   : > { %2965 = vmatprep.subr.mxu1 %v2056_v39 }
 0x124   : > { %2966 = vmatpush3.msra.mxu1 %v2040_v46 }
 0x125   : > { %2967 = vmatprep.subr.mxu1 %v2055_v48 }
 0x126   : > { %2968 = vmatpush3.msra.mxu1 %v2039_v49 }
 0x127   : > { %2969 = vmatprep.subr.mxu1 %v2054_v4 }
 0x128   : > { %2970 = vmatpush3.msra.mxu1 %v2038_v27 }
 0x129   : > { %2971 = vmatprep.subr.mxu1 %v2053_v55 }
 0x12a   : > { %2972 = vmatpush3.msra.mxu1 %v2037_v6 }
 0x12b   : > { %2973 = vmatprep.subr.mxu1 %v2052_v51 }
 0x12c   : > { %2974 = vmatpush3.msra.mxu1 %v2036_v57 }
 0x12d   : > { %2975 = vmatprep.subr.mxu1 %v2051_v56 }
 0x12e   : > { %2976 = vmatpush3.msra.mxu1 %v2035_v60 }
 0x12f   : > { %2977 = vmatprep.subr.mxu1 %v2050_v54 }
 0x130   : > { %2978 = vmatpush3.msra.mxu1 %v2034_v45 }
 0x131   : > { %2979 = vmatprep.subr.mxu1 %v2049_v1 }
 0x132   : > { %2980 = vmatpush3.msra.mxu1 %v2033_v62 }
 0x133   : > { %2981 = vmatprep.subr.mxu1 %v2048_v63 }
 0x134   : > { %2982 = vmatpush3.msra.mxu1 %v2032_v47 }
 0x155   : > { %v1564_v13 = vpop.f32.mrf.mxu0 }
 0x156   : > { %v1565_v5 = vadd.f32 %v1564_v13, %v4366_v52 }
 0x157   : > { %v1566_v2 = vpop.f32.mrf.mxu0 }
 0x158   : > { %v1567_v31 = vadd.f32 %v1566_v2, %v4371_v36 }
 0x159   : > { %v1568_v3 = vpop.f32.mrf.mxu0 }
 0x15a   : > { %v1569_v33 = vadd.f32 %v1568_v3, %v4366_v52 }
 0x15b   : > { %v1570_v58 = vpop.f32.mrf.mxu0 }
 0x15c   : > { %v1571_v0 = vadd.f32 %v1570_v58, %v4371_v36 }
 0x15d   : > { %v1637_v25 = vpop.f32.mrf.mxu1 }
 0x15e   : > { %v1638_v15 = vadd.f32 %v1637_v25, %v1565_v5 }
 0x15f   : > { %v1639_v20 = vpop.f32.mrf.mxu1 }
 0x160   : > { %v1640_v9 = vadd.f32 %v1639_v20, %v1567_v31 }
 0x161   : > { %v1641_v35 = vpop.f32.mrf.mxu1 }
 0x162   : > { %v1574_v7 = vpop.f32.mrf.mxu0  ;;  %v1642_v41 = vadd.f32 %v1641_v35, %v1569_v33 }
 0x163   : > { %v1643_v23 = vpop.f32.mrf.mxu1  ;;  %v1575_v46 = vadd.f32 %v1574_v7, %v4366_v52 }
 0x164   : > { %v1576_v12 = vpop.f32.mrf.mxu0  ;;  %v1644_v53 = vadd.f32 %v1643_v23, %v1571_v0 }
 0x165   : > { %v1577_v27 = vadd.f32 %v1576_v12, %v4371_v36 }
 0x166   : > { %v1578_v59 = vpop.f32.mrf.mxu0 }
 0x167   : > { %v1579_v54 = vadd.f32 %v1578_v59, %v4366_v52 }
 0x168   : > { %v1580_v34 = vpop.f32.mrf.mxu0 }
 0x169   : > { %v1581_v47 = vadd.f32 %v1580_v34, %v4371_v36 }
 0x16a   : > { %v4345_v17 = vpop.f32.mrf.mxu0 }
 0x16b   : > { %v1585_v12 = vadd.f32 %v4345_v17, %v4366_v52 }
 0x16c   : > { %v4350_v22 = vpop.f32.mrf.mxu0 }
 0x16d   : > { %v1587_v24 = vadd.f32 %v4350_v22, %v4371_v36 }
 0x16e   : > { %v4352_v43 = vpop.f32.mrf.mxu0 }
 0x16f   : > { %v1589_v5 = vadd.f32 %v4352_v43, %v4366_v52 }
 0x170   : > { %v4355_v10 = vpop.f32.mrf.mxu0 }
 0x172   : > { %v4363_v50 = vpop.f32.mrf.mxu0 }
 0x174   : > { %v4368_v61 = vpop.f32.mrf.mxu0 }
 0x175   : > { %v1647_v26 = vpop.f32.mrf.mxu1 }
 0x176   : > { %v4373_v40 = vpop.f32.mrf.mxu0  ;;  %v1648_v51 = vadd.f32 %v1647_v26, %v1575_v46 }
 0x177   : > { %v1649_v42 = vpop.f32.mrf.mxu1  ;;  %v1599_v46 = vadd.f32 %v4373_v40, %v4366_v52 }
 0x178   : > { %v4376_v44 = vpop.f32.mrf.mxu0  ;;  %v1650_v56 = vadd.f32 %v1649_v42, %v1577_v27 }
 0x179   : > { %v1651_v30 = vpop.f32.mrf.mxu1  ;;  %v1601_v27 = vadd.f32 %v4376_v44, %v4371_v36 }
 0x17a   : > { %v1710_v14 = vpop.f32.mrf.mxu0  ;;  %v1652_v2 = vadd.f32 %v1651_v30, %v1579_v54 }
 0x17b   : > { %v1653_v32 = vpop.f32.mrf.mxu1  ;;  %v1711_v11 = vadd.f32 %v1710_v14, %v1638_v15  ;;  %v1591_v14 = vadd.f32 %v4355_v10, %v4371_v36 }
 0x17c   : > { %v1712_v37 = vpop.f32.mrf.mxu0  ;;  %v1654_v58 = vadd.f32 %v1653_v32, %v1581_v47 }
 0x17d   : > { %v1713_v19 = vadd.f32 %v1712_v37, %v1640_v9  ;;  %v1657_v21 = vpop.f32.mrf.mxu1  ;;  %v1968_v48 = vmax.f32 %v1711_v11, 0.0  ;;  %v1595_v37 = vadd.f32 %v4363_v50, %v4366_v52 }
 0x17e   : > { %v1714_v8 = vpop.f32.mrf.mxu0  ;;  %v1658_v34 = vadd.f32 %v1657_v21, %v1585_v12 }
 0x17f   : > { %v1969_v28 = vmax.f32 %v1713_v19, 0.0  ;;  %v1659_v39 = vpop.f32.mrf.mxu1  ;;  %v1715_v49 = vadd.f32 %v1714_v8, %v1642_v41  ;;  %v1597_v41 = vadd.f32 %v4368_v61, %v4371_v36 }
 0x180   : > { %v1716_v4 = vpop.f32.mrf.mxu0  ;;  %v1660_v26 = vadd.f32 %v1659_v39, %v1587_v24 }
 0x181   : > { %v1717_v55 = vadd.f32 %v1716_v4, %v1644_v53  ;;  %v1661_v6 = vpop.f32.mrf.mxu1  ;;  %2135 = vmatprep.mubr.f32.mxu0 %v1969_v28  ;;  %v1972_v45 = vmax.f32 %v1715_v49, 0.0 }
 0x182   : > { %v1720_v57 = vpop.f32.mrf.mxu0  ;;  %2136 = vmatmul.mubr.f32.vlgmr.msra.gmra.mxu0 %v1968_v48  ;;  %v1662_v22 = vadd.f32 %v1661_v6, %v1589_v5 }
 0x183   : > { %v1973_v60 = vmax.f32 %v1717_v55, 0.0  ;;  %v1721_v1 = vadd.f32 %v1720_v57, %v1648_v51  ;;  %v1663_v62 = vpop.f32.mrf.mxu1 }
 0x184   : > { %v1722_v63 = vpop.f32.mrf.mxu0  ;;  %v1664_v33 = vadd.f32 %v1663_v62, %v1591_v14 }
 0x185   : > { %v1723_v13 = vadd.f32 %v1722_v63, %v1650_v56  ;;  %2140 = vmatprep.mubr.f32.mxu0 %v1973_v60  ;;  %v1976_v25 = vmax.f32 %v1721_v1, 0.0  ;;  %v1667_v20 = vpop.f32.mrf.mxu1 }
 0x186   : > { %v1724_v3 = vpop.f32.mrf.mxu0  ;;  %2141 = vmatmul.mubr.f32.gmra.mxu0 %v1972_v45  ;;  %v1668_v10 = vadd.f32 %v1667_v20, %v1595_v37 }
 0x187   : > { %v1977_v7 = vmax.f32 %v1723_v13, 0.0  ;;  %v1725_v35 = vadd.f32 %v1724_v3, %v1652_v2  ;;  %v1669_v30 = vpop.f32.mrf.mxu1 }
 0x188   : > { %v1726_v59 = vpop.f32.mrf.mxu0  ;;  %v1670_v28 = vadd.f32 %v1669_v30, %v1597_v41 }
 0x189   : > { %v1727_v18 = vadd.f32 %v1726_v59, %v1654_v58  ;;  %2145 = vmatprep.mubr.f32.mxu0 %v1977_v7  ;;  %v1980_v31 = vmax.f32 %v1725_v35, 0.0  ;;  %v1671_v0 = vpop.f32.mrf.mxu1  ;;  %v758_v7 = vsub.s32 2, %v4348_v29 }
 0x18a   : > { %v1730_v23 = vpop.f32.mrf.mxu0  ;;  %2146 = vmatmul.mubr.f32.gmra.mxu0 %v1976_v25  ;;  %v1672_v61 = vadd.f32 %v1671_v0, %v1599_v46  ;;  %v762_v25 = vsub.s32 3, %v4348_v29 }
 0x18b   : > { %v1981_v42 = vmax.f32 %v1727_v18, 0.0  ;;  %v1731_v17 = vadd.f32 %v1730_v23, %v1658_v34  ;;  %v1673_v48 = vpop.f32.mrf.mxu1  ;;  %v4408_v35 = vrot.slane %v4360_v38, %v758_v7 }
 0x18c   : > { %v1732_v15 = vpop.f32.mrf.mxu0  ;;  %v1674_v51 = vadd.f32 %v1673_v48, %v1601_v27  ;;  %v4413_v24 = vrot.slane %v4360_v38, %v762_v25 }
 0x18d   : > { %v1733_v9 = vadd.f32 %v1732_v15, %v1660_v26  ;;  %2150 = vmatprep.mubr.f32.mxu0 %v1981_v42  ;;  %v1984_v19 = vmax.f32 %v1731_v17, 0.0 }
 0x18e   : > { %v1734_v32 = vpop.f32.mrf.mxu0  ;;  %2151 = vmatmul.mubr.f32.gmra.mxu0 %v1980_v31 }
 0x18f   : > { %v1985_v11 = vmax.f32 %v1733_v9, 0.0  ;;  %v1735_v43 = vadd.f32 %v1734_v32, %v1662_v22 }
 0x190   : > { %v1736_v21 = vpop.f32.mrf.mxu0 }
 0x191   : > { %v1737_v8 = vadd.f32 %v1736_v21, %v1664_v33  ;;  %2155 = vmatprep.mubr.f32.mxu0 %v1985_v11  ;;  %v1988_v49 = vmax.f32 %v1735_v43, 0.0 }
 0x192   : > { %v1740_v53 = vpop.f32.mrf.mxu0  ;;  %2156 = vmatmul.mubr.f32.gmra.mxu0 %v1984_v19 }
 0x193   : > { %v1989_v39 = vmax.f32 %v1737_v8, 0.0  ;;  %v1741_v50 = vadd.f32 %v1740_v53, %v1668_v10 }
 0x194   : > { %v1742_v4 = vpop.f32.mrf.mxu0 }
 0x195   : > { %v1743_v55 = vadd.f32 %v1742_v4, %v1670_v28  ;;  %2160 = vmatprep.mubr.f32.mxu0 %v1989_v39  ;;  %v1992_v56 = vmax.f32 %v1741_v50, 0.0 }
 0x196   : > { %v1744_v6 = vpop.f32.mrf.mxu0  ;;  %2161 = vmatmul.mubr.f32.gmra.mxu0 %v1988_v49 }
 0x197   : > { %v1993_v57 = vmax.f32 %v1743_v55, 0.0  ;;  %v1745_v60 = vadd.f32 %v1744_v6, %v1672_v61 }
 0x198   : > { %v1746_v54 = vpop.f32.mrf.mxu0 }
 0x199   : > { %v1747_v45 = vadd.f32 %v1746_v54, %v1674_v51  ;;  %2165 = vmatprep.mubr.f32.mxu0 %v1993_v57  ;;  %v1996_v40 = vmax.f32 %v1745_v60, 0.0 }
 0x19a   : > { %2166 = vmatmul.mubr.f32.gmra.mxu0 %v1992_v56 }
 0x19b   : > { %v1997_v52 = vmax.f32 %v1747_v45, 0.0 }
 0x19d   : > { %v1783_v1 = vpop.f32.mrf.mxu1  ;;  %2170 = vmatprep.mubr.f32.mxu0 %v1997_v52 }
 0x19e   : > { %2171 = vmatmul.mubr.f32.gmra.mxu0 %v1996_v40  ;;  %v1784_v34 = vadd.f32 %v1783_v1, %v4408_v35 }
 0x19f   : > { %v1785_v62 = vpop.f32.mrf.mxu1 }
 0x1a0   : > { %v1786_v42 = vadd.f32 %v1785_v62, %v4413_v24 }
 0x1a1   : > { %v1787_v36 = vpop.f32.mrf.mxu1 }
 0x1a2   : > { %v1788_v30 = vadd.f32 %v1787_v36, %v4408_v35 }
 0x1a3   : > { %v1789_v44 = vpop.f32.mrf.mxu1 }
 0x1a4   : > { %v1790_v38 = vadd.f32 %v1789_v44, %v4413_v24 }
 0x1a5   : > { %v1793_v63 = vpop.f32.mrf.mxu1 }
 0x1a6   : > { %v1794_v37 = vadd.f32 %v1793_v63, %v4408_v35 }
 0x1a7   : > { %v1795_v47 = vpop.f32.mrf.mxu1 }
 0x1a8   : > { %v1796_v41 = vadd.f32 %v1795_v47, %v4413_v24 }
 0x1a9   : > { %v1797_v13 = vpop.f32.mrf.mxu1 }
 0x1aa   : > { %v1798_v48 = vadd.f32 %v1797_v13, %v4408_v35 }
 0x1ab   : > { %v1799_v2 = vpop.f32.mrf.mxu1 }
 0x1ac   : > { %v1800_v55 = vadd.f32 %v1799_v2, %v4413_v24 }
 0x1ad   : > { %v1803_v3 = vpop.f32.mrf.mxu1 }
 0x1ae   : > { %v1804_v54 = vadd.f32 %v1803_v3, %v4408_v35 }
 0x1af   : > { %v1805_v58 = vpop.f32.mrf.mxu1 }
 0x1b0   : > { %v1806_v62 = vadd.f32 %v1805_v58, %v4413_v24 }
 0x1b1   : > { %v4402_v12 = vpop.f32.mrf.mxu1 }
 0x1b2   : > { %v1808_v7 = vadd.f32 %v4402_v12, %v4408_v35 }
 0x1b3   : > { %v4405_v20 = vpop.f32.mrf.mxu1 }
 0x1b5   : > { %v4410_v59 = vpop.f32.mrf.mxu1 }
 0x1b7   : > { %v4415_v18 = vpop.f32.mrf.mxu1 }
 0x1b9   : > { %v4418_v23 = vpop.f32.mrf.mxu1 }
 0x1ba   : > { %v1856_v26 = vpop.f32.mrf.mxu0 }
 0x1bb   : > { %v1857_v29 = vadd.f32 %v1856_v26, %v1784_v34  ;;  %v4421_v5 = vpop.f32.mrf.mxu1 }
 0x1bc   : > { %v1858_v31 = vpop.f32.mrf.mxu0 }
 0x1bd   : > { %v1859_v17 = vadd.f32 %v1858_v31, %v1786_v42  ;;  %v1929_v15 = vpop.f32.mrf.mxu1  ;;  %v1810_v42 = vadd.f32 %v4405_v20, %v4413_v24 }
 0x1be   : > { %v1860_v14 = vpop.f32.mrf.mxu0  ;;  %v1930_v9 = vadd.f32 %v1929_v15, %v1857_v29 }
 0x1bf   : > { %v1861_v22 = vadd.f32 %v1860_v14, %v1788_v30  ;;  %v1931_v32 = vpop.f32.mrf.mxu1  ;;  %v1814_v14 = vadd.f32 %v4410_v59, %v4408_v35 }
 0x1c0   : > { %v1932_v33 = vadd.f32 %v1931_v32, %v1859_v17  ;;  %v1862_v11 = vpop.f32.mrf.mxu0  ;;  %v1970_v8 = vmax.f32 %v1930_v9, 0.0  ;;  %v1816_v32 = vadd.f32 %v4415_v18, %v4413_v24 }
 0x1c1   : > { %v1863_v0 = vadd.f32 %v1862_v11, %v1790_v38  ;;  %v1933_v19 = vpop.f32.mrf.mxu1 }
 0x1c2   : > { %v1971_v43 = vmax.f32 %v1932_v33, 0.0  ;;  %v1866_v21 = vpop.f32.mrf.mxu0  ;;  %v1934_v10 = vadd.f32 %v1933_v19, %v1861_v22 }
 0x1c3   : > { %v1867_v53 = vadd.f32 %v1866_v21, %v1794_v37  ;;  %v1935_v28 = vpop.f32.mrf.mxu1 }
 0x1c4   : > { %v1936_v39 = vadd.f32 %v1935_v28, %v1863_v0  ;;  %v1868_v46 = vpop.f32.mrf.mxu0  ;;  %2240 = vmatprep.mubr.f32.mxu1 %v1971_v43  ;;  %v1974_v61 = vmax.f32 %v1934_v10, 0.0  ;;  %v1818_v43 = vadd.f32 %v4418_v23, %v4408_v35  ;;  %v1820_v10 = vadd.f32 %v4421_v5, %v4413_v24 }
 0x1c5   : > { %v1869_v49 = vadd.f32 %v1868_v46, %v1796_v41  ;;  %v1939_v50 = vpop.f32.mrf.mxu1  ;;  %2241 = vmatmul.mubr.f32.vlgmr.msra.gmra.mxu1 %v1970_v8 }
 0x1c6   : > { %v1975_v4 = vmax.f32 %v1936_v39, 0.0  ;;  %v1870_v27 = vpop.f32.mrf.mxu0  ;;  %v1940_v6 = vadd.f32 %v1939_v50, %v1867_v53 }
 0x1c7   : > { %v1871_v51 = vadd.f32 %v1870_v27, %v1798_v48  ;;  %v1941_v57 = vpop.f32.mrf.mxu1 }
 0x1c8   : > { %v1942_v56 = vadd.f32 %v1941_v57, %v1869_v49  ;;  %v1872_v60 = vpop.f32.mrf.mxu0  ;;  %2245 = vmatprep.mubr.f32.mxu1 %v1975_v4  ;;  %v1978_v36 = vmax.f32 %v1940_v6, 0.0 }
 0x1c9   : > { %v1873_v45 = vadd.f32 %v1872_v60, %v1800_v55  ;;  %v1943_v52 = vpop.f32.mrf.mxu1  ;;  %2246 = vmatmul.mubr.f32.gmra.mxu1 %v1974_v61 }
 0x1ca   : > { %v1979_v40 = vmax.f32 %v1942_v56, 0.0  ;;  %v1876_v1 = vpop.f32.mrf.mxu0  ;;  %v1944_v44 = vadd.f32 %v1943_v52, %v1871_v51 }
 0x1cb   : > { %v1877_v63 = vadd.f32 %v1876_v1, %v1804_v54  ;;  %v1945_v47 = vpop.f32.mrf.mxu1  ;;  %v4446_v1 = vld [vmem:[%s4510_s4] ss:$0 sm:$0xff] }
 0x1cc   : > { %v1946_v13 = vadd.f32 %v1945_v47, %v1873_v45  ;;  %v1878_v2 = vpop.f32.mrf.mxu0  ;;  %2250 = vmatprep.mubr.f32.mxu1 %v1979_v40  ;;  %v1982_v29 = vmax.f32 %v1944_v44, 0.0 }
 0x1cd   : > { %v1879_v25 = vadd.f32 %v1878_v2, %v1806_v62  ;;  %v1949_v34 = vpop.f32.mrf.mxu1  ;;  %2251 = vmatmul.mubr.f32.gmra.mxu1 %v1978_v36 }
 0x1ce   : > { %v1983_v3 = vmax.f32 %v1946_v13, 0.0  ;;  %v1880_v26 = vpop.f32.mrf.mxu0  ;;  %v1950_v58 = vadd.f32 %v1949_v34, %v1877_v63 }
 0x1cf   : > { %v1881_v31 = vadd.f32 %v1880_v26, %v1808_v7  ;;  %v1951_v30 = vpop.f32.mrf.mxu1 }
 0x1d0   : > { %v1952_v17 = vadd.f32 %v1951_v30, %v1879_v25  ;;  %v1882_v15 = vpop.f32.mrf.mxu0  ;;  %2255 = vmatprep.mubr.f32.mxu1 %v1983_v3  ;;  %v1986_v33 = vmax.f32 %v1950_v58, 0.0 }
 0x1d1   : > { %v1883_v38 = vadd.f32 %v1882_v15, %v1810_v42  ;;  %v1953_v12 = vpop.f32.mrf.mxu1  ;;  %2256 = vmatmul.mubr.f32.gmra.mxu1 %v1982_v29 }
 0x1d2   : > { %v1987_v9 = vmax.f32 %v1952_v17, 0.0  ;;  %v1886_v22 = vpop.f32.mrf.mxu0  ;;  %v1954_v20 = vadd.f32 %v1953_v12, %v1881_v31 }
 0x1d3   : > { %v1887_v11 = vadd.f32 %v1886_v22, %v1814_v14  ;;  %v1955_v37 = vpop.f32.mrf.mxu1 }
 0x1d4   : > { %v1956_v0 = vadd.f32 %v1955_v37, %v1883_v38  ;;  %v1888_v19 = vpop.f32.mrf.mxu0  ;;  %2260 = vmatprep.mubr.f32.mxu1 %v1987_v9  ;;  %v1990_v53 = vmax.f32 %v1954_v20, 0.0 }
 0x1d5   : > { %v1889_v21 = vadd.f32 %v1888_v19, %v1816_v32  ;;  %v1959_v59 = vpop.f32.mrf.mxu1  ;;  %2261 = vmatmul.mubr.f32.gmra.mxu1 %v1986_v33 }
 0x1d6   : > { %v1991_v41 = vmax.f32 %v1956_v0, 0.0  ;;  %v1890_v8 = vpop.f32.mrf.mxu0  ;;  %v1960_v18 = vadd.f32 %v1959_v59, %v1887_v11 }
 0x1d7   : > { %v1891_v28 = vadd.f32 %v1890_v8, %v1818_v43  ;;  %v1961_v39 = vpop.f32.mrf.mxu1 }
 0x1d8   : > { %v1962_v46 = vadd.f32 %v1961_v39, %v1889_v21  ;;  %v1892_v48 = vpop.f32.mrf.mxu0  ;;  %2265 = vmatprep.mubr.f32.mxu1 %v1991_v41  ;;  %v1994_v35 = vmax.f32 %v1960_v18, 0.0 }
 0x1d9   : > { %v1893_v49 = vadd.f32 %v1892_v48, %v1820_v10  ;;  %v1963_v50 = vpop.f32.mrf.mxu1  ;;  %2266 = vmatmul.mubr.f32.gmra.mxu1 %v1990_v53 }
 0x1da   : > { %v1995_v4 = vmax.f32 %v1962_v46, 0.0  ;;  %v1964_v23 = vadd.f32 %v1963_v50, %v1891_v28 }
 0x1db   : > { %v1965_v27 = vpop.f32.mrf.mxu1 }
 0x1dc   : > { %v1966_v55 = vadd.f32 %v1965_v27, %v1893_v49  ;;  %2270 = vmatprep.mubr.f32.mxu1 %v1995_v4  ;;  %v1998_v6 = vmax.f32 %v1964_v23, 0.0 }
 0x1dd   : > { %2271 = vmatmul.mubr.f32.gmra.mxu1 %v1994_v35 }
 0x1de   : > { %v1999_v61 = vmax.f32 %v1966_v55, 0.0 }
 0x1e0   : > { %2275 = vmatprep.mubr.f32.mxu1 %v1999_v61 }
 0x1e1   : > { %2276 = vmatmul.mubr.f32.gmra.mxu1 %v1998_v6 }
 0x242   : > { %v2927_v24 = vpop.f32.mrf.mxu0 }
 0x244   : > { %v2928_v5 = vpop.f32.mrf.mxu0 }
 0x245   : > { %v2929_v40 = vadd.f32 %v2928_v5, %v2927_v24 }
 0x246   : > { %v2930_v51 = vpop.f32.mrf.mxu0 }
 0x247   : > { %v2138_v63 = vadd.f32 %v2929_v40, %v4446_v1 }
 0x248   : > { %v2931_v57 = vpop.f32.mrf.mxu0 }
 0x249   : > { %v2932_v47 = vadd.f32 %v2931_v57, %v2930_v51 }
 0x24a   : > { %v2933_v56 = vpop.f32.mrf.mxu0 }
 0x24b   : > { %v2143_v3 = vadd.f32 %v2932_v47, %v4446_v1  ;;  %v2282_v47 = vand.u32 127, %v748_v16 }
 0x24c   : > { %v2934_v60 = vpop.f32.mrf.mxu0 }
 0x24d   : > { %v2935_v26 = vadd.f32 %v2934_v60, %v2933_v56  ;;  %vm2283_vm1 = vcmp.eq.s32.totalorder %v2282_v47, 0 }
 0x24e   : > { %v2936_v54 = vpop.f32.mrf.mxu0 }
 0x24f   : > { %v2148_v15 = vadd.f32 %v2935_v26, %v4446_v1 }
 0x250   : > { %v2937_v45 = vpop.f32.mrf.mxu0 }
 0x251   : > { %v2938_v14 = vadd.f32 %v2937_v45, %v2936_v54 }
 0x252   : > { %v2939_v52 = vpop.f32.mrf.mxu0 }
 0x253   : > { %v2153_v20 = vadd.f32 %v2938_v14, %v4446_v1 }
 0x254   : > { %v2940_v62 = vpop.f32.mrf.mxu0 }
 0x255   : > { %v2941_v11 = vadd.f32 %v2940_v62, %v2939_v52 }
 0x256   : > { %v2942_v2 = vpop.f32.mrf.mxu0 }
 0x257   : > { %v2158_v41 = vadd.f32 %v2941_v11, %v4446_v1 }
 0x258   : > { %v2943_v58 = vpop.f32.mrf.mxu0 }
 0x259   : > { %v2944_v8 = vadd.f32 %v2943_v58, %v2942_v2 }
 0x25a   : > { %v2945_v9 = vpop.f32.mrf.mxu0 }
 0x25b   : > { %v2163_v50 = vadd.f32 %v2944_v8, %v4446_v1 }
 0x25c   : > { %v2946_v19 = vpop.f32.mrf.mxu0 }
 0x25d   : > { %v2947_v48 = vadd.f32 %v2946_v19, %v2945_v9 }
 0x25e   : > { %v2948_v18 = vpop.f32.mrf.mxu0 }
 0x25f   : > { %v2168_v24 = vadd.f32 %v2947_v48, %v4446_v1 }
 0x260   : > { %v2949_v27 = vpop.f32.mrf.mxu0 }
 0x261   : > { %v2950_v51 = vadd.f32 %v2949_v27, %v2948_v18 }
 0x263   : > { %v2173_v62 = vadd.f32 %v2950_v51, %v4446_v1 }
 0x285   : > { %v2983_v36 = vpop.f32.mrf.mxu1 }
 0x287   : > { %v2984_v44 = vpop.f32.mrf.mxu1 }
 0x288   : > { %v2985_v13 = vadd.f32 %v2984_v44, %v2983_v36 }
 0x289   : > { %v2986_v7 = vpop.f32.mrf.mxu1 }
 0x28a   : > { %v4449_v25 = vadd.f32 %v2985_v13, %v2138_v63 }
 0x28b   : > { %v2987_v34 = vpop.f32.mrf.mxu1 }
 0x28c   : > { %v2884_v42 = vmul.f32 -1.442695, %v4449_v25  ;;  %v2988_v29 = vadd.f32 %v2987_v34, %v2986_v7 }
 0x28d   : > { %v2989_v31 = vpop.f32.mrf.mxu1 }
 0x28e   : > { %3269 = vpow2.f32 %v2884_v42  ;;  %v4453_v30 = vadd.f32 %v2988_v29, %v2143_v3 }
 0x28f   : > { %v2990_v17 = vpop.f32.mrf.mxu1 }
 0x290   : > { %v2885_v38 = vmul.f32 -1.442695, %v4453_v30  ;;  %v2991_v12 = vadd.f32 %v2990_v17, %v2989_v31 }
 0x291   : > { %v2992_v22 = vpop.f32.mrf.mxu1 }
 0x292   : > { %3271 = vpow2.f32 %v2885_v38  ;;  %v4457_v32 = vadd.f32 %v2991_v12, %v2148_v15 }
 0x293   : > { %v2993_v33 = vpop.f32.mrf.mxu1 }
 0x294   : > { %v2886_v37 = vmul.f32 -1.442695, %v4457_v32  ;;  %v2994_v0 = vadd.f32 %v2993_v33, %v2992_v22 }
 0x295   : > { %v2995_v43 = vpop.f32.mrf.mxu1 }
 0x296   : > { %3273 = vpow2.f32 %v2886_v37  ;;  %v4461_v21 = vadd.f32 %v2994_v0, %v2153_v20 }
 0x297   : > { %v2996_v59 = vpop.f32.mrf.mxu1 }
 0x298   : > { %v2887_v10 = vmul.f32 -1.442695, %v4461_v21  ;;  %v2997_v53 = vadd.f32 %v2996_v59, %v2995_v43 }
 0x299   : > { %v2998_v28 = vpop.f32.mrf.mxu1 }
 0x29a   : > { %3275 = vpow2.f32 %v2887_v10  ;;  %v4465_v39 = vadd.f32 %v2997_v53, %v2158_v41 }
 0x29b   : > { %v3270_v46 = vpop.eup %3269  ;;  %v2999_v49 = vpop.f32.mrf.mxu1 }
 0x29c   : > { %v2308_v4 = vadd.f32 1.0, %v3270_v46  ;;  %v2888_v35 = vmul.f32 -1.442695, %v4465_v39  ;;  %v3000_v23 = vadd.f32 %v2999_v49, %v2998_v28 }
 0x29d   : > { %v3001_v55 = vpop.f32.mrf.mxu1 }
 0x29e   : > { %3277 = vrcp.f32 %v2308_v4  ;;  %v2268_v61 = vadd.f32 %v3000_v23, %v2163_v50 }
 0x29f   : > { %v3272_v6 = vpop.eup %3271  ;;  %3279 = vpow2.f32 %v2888_v35  ;;  %v3002_v5 = vpop.f32.mrf.mxu1 }
 0x2a0   : > { %v2309_v57 = vadd.f32 1.0, %v3272_v6  ;;  %v2889_v56 = vmul.f32 -1.442695, %v2268_v61  ;;  %v3003_v60 = vadd.f32 %v3002_v5, %v3001_v55 }
 0x2a1   : > { %v3004_v54 = vpop.f32.mrf.mxu1 }
 0x2a2   : > { %3281 = vrcp.f32 %v2309_v57  ;;  %v2273_v45 = vadd.f32 %v3003_v60, %v2168_v24 }
 0x2a3   : > { %v3274_v52 = vpop.eup %3273  ;;  %3283 = vpow2.f32 %v2889_v56  ;;  %v3005_v40 = vpop.f32.mrf.mxu1 }
 0x2a4   : > { %v2310_v36 = vadd.f32 1.0, %v3274_v52  ;;  %v2890_v44 = vmul.f32 -1.442695, %v2273_v45  ;;  %v3006_v63 = vadd.f32 %v3005_v40, %v3004_v54 }
 0x2a6   : > { %3285 = vrcp.f32 %v2310_v36  ;;  %v2278_v13 = vadd.f32 %v3006_v63, %v2173_v62 }
 0x2a7   : > { %v3276_v2 = vpop.eup %3275  ;;  %3287 = vpow2.f32 %v2890_v44 }
 0x2a8   : > { %v2311_v7 = vadd.f32 1.0, %v3276_v2  ;;  %v2891_v34 = vmul.f32 -1.442695, %v2278_v13 }
 0x2aa   : > { %3289 = vrcp.f32 %v2311_v7 }
 0x2ab   : > { %v3278_v3 = vpop.eup %3277  ;;  %3291 = vpow2.f32 %v2891_v34 }
 0x2ac   : > { %v3280_v26 = vpop.eup %3279  ;;  %v2332_v42 = vsel %vm2283_vm1, %v3278_v3, %v4449_v25 }
 0x2ad   : > { %v2312_v1 = vadd.f32 1.0, %v3280_v26  ;;  %2340 = vxpose.xlu0.b32.start.end [1/1] (short) (narrow) %v2332_v42, 8 }
 0x2af   : > { %v3282_v29 = vpop.eup %3281  ;;  %3293 = vrcp.f32 %v2312_v1 }
 0x2b0   : > { %v3284_v58 = vpop.eup %3283  ;;  %v2333_v16 = vsel %vm2283_vm1, %v3282_v29, %v4453_v30 }
 0x2b1   : > { %v2313_v31 = vadd.f32 1.0, %v3284_v58  ;;  %2372 = vxpose.xlu1.b32.start.end [1/1] (short) (narrow) %v2333_v16, 8 }
 0x2b3   : > { %v3286_v17 = vpop.eup %3285  ;;  %3295 = vrcp.f32 %v2313_v31 }
 0x2b4   : > { %v3288_v15 = vpop.eup %3287  ;;  %v2334_v14 = vsel %vm2283_vm1, %v3286_v17, %v4457_v32 }
 0x2b5   : > { %v2314_v38 = vadd.f32 1.0, %v3288_v15  ;;  %2404 = vxpose.xlu0.b32.start.end [1/1] (short) (narrow) %v2334_v14, 8 }
 0x2b7   : > { %v3290_v12 = vpop.eup %3289  ;;  %3297 = vrcp.f32 %v2314_v38 }
 0x2b8   : > { %v3292_v25 = vpop.eup %3291  ;;  %v2335_v9 = vsel %vm2283_vm1, %v3290_v12, %v4461_v21 }
 0x2b9   : > { %v2315_v22 = vadd.f32 1.0, %v3292_v25  ;;  %2436 = vxpose.xlu0.b32.start.end [1/1] (short) (narrow) %v2335_v9, 8 }
 0x2bb   : > { %3299 = vrcp.f32 %v2315_v22 }
 0x2bc   : > { %v3294_v30 = vpop.eup %3293 }
 0x2bd   : > { %v2336_v33 = vsel %vm2283_vm1, %v3294_v30, %v4465_v39 }
 0x2be   : > { %2468 = vxpose.xlu0.b32.start.end [1/1] (short) (narrow) %v2336_v33, 8 }
 0x2c0   : > { %v3296_v20 = vpop.eup %3295 }
 0x2c1   : > { %v2337_v32 = vsel %vm2283_vm1, %v3296_v20, %v2268_v61 }
 0x2c2   : > { %2500 = vxpose.xlu1.b32.start.end [1/1] (short) (narrow) %v2337_v32, 8 }
 0x2c4   : > { %v3298_v11 = vpop.eup %3297 }
 0x2c5   : > { %v2338_v37 = vsel %vm2283_vm1, %v3298_v11, %v2273_v45 }
 0x2c6   : > { %2532 = vxpose.xlu0.b32.start.end [1/1] (short) (narrow) %v2338_v37, 8 }
 0x2c8   : > { %v3300_v0 = vpop.eup %3299 }
 0x2c9   : > { %v2339_v19 = vsel %vm2283_vm1, %v3300_v0, %v2278_v13 }
 0x2ca   : > { %2564 = vxpose.xlu1.b32.start.end [1/1] (short) (narrow) %v2339_v19, 8 }
 0x329   : > { %v2356_v43 = vpop.trf.xlu0 }
 0x32a   : > { %2597 = vst.msk [vmem:[%s246_s11] sm:$0x7] %vm2596_vm2, %v2356_v43 }
 0x32d   : > { %v2388_v21 = vpop.trf.xlu1 }
 0x32e   : > { %2598 = vst.msk [vmem:[%s246_s11 + $0x4] sm:$0x7] %vm2596_vm2, %v2388_v21 }
 0x331   : > { %v2420_v59 = vpop.trf.xlu0 }
 0x332   : > { %2599 = vst.msk [vmem:[%s246_s11 + $0x8] sm:$0x7] %vm2596_vm2, %v2420_v59 }
 0x335   : > { %v2452_v41 = vpop.trf.xlu0 }
 0x336   : > { %2600 = vst.msk [vmem:[%s246_s11 + $0xc] sm:$0x7] %vm2596_vm2, %v2452_v41 }
 0x33a   : > { %v2484_v8 = vpop.trf.xlu0 }
 0x33b   : > { %2601 = vst.msk [vmem:[%s246_s11 + $0x10] sm:$0x7] %vm2596_vm2, %v2484_v8 }
 0x33e   : > { %v2516_v10 = vpop.trf.xlu1 }
 0x33f   : > { %2602 = vst.msk [vmem:[%s246_s11 + $0x14] sm:$0x7] %vm2596_vm2, %v2516_v10 }
 0x342   : > { %v2548_v53 = vpop.trf.xlu0 }
 0x343   : > { %2603 = vst.msk [vmem:[%s246_s11 + $0x18] sm:$0x7] %vm2596_vm2, %v2548_v53 }
 0x346   : > { %v2580_v18 = vpop.trf.xlu1 }
 0x347   : > { %2604 = vst.msk [vmem:[%s246_s11 + $0x1c] sm:$0x7] %vm2596_vm2, %v2580_v18 }
 0x348 PF: > { %s15_s20 = sadd.s32 1, %s3323_s20   ;;  %s4512_s18 = smov %s3319_s19 }
 0x349   : > { %p12_p5 = scmp.ge.s32.totalorder %s15_s20, 4   ;;  %s4513_s19 = smov %s4515_s21 }
 0x34b   :  { %14 = sbr.rel (!%p12_p5) target bundleno = 2 (0x2), region = 71 }

</bundles_post_ra>
